<compile_context>
chip_gen: v6e
topology: v6e:2x2x1
jax: 0.10.0
libtpu: 0.0.40
codegen_flags: <defaults>
</compile_context>

<pallas_src>
import functools

import jax
import jax.numpy as jnp
from jax.experimental import pallas as pl
from jax.experimental.pallas import tpu as pltpu


# ----------------------------------------------------------------------------
# Generation-aware tile / VMEM-budget selection (N must be a multiple of 128).
# ----------------------------------------------------------------------------
def _chip_vmem_bytes():
    try:
        return int(pltpu.get_tpu_info().vmem_capacity_bytes)
    except Exception:
        return 64 * 1024 * 1024          # conservative (v7x-like) default


def _tile_candidates(n, cap):
    cap = max(128, min(cap, n))
    return [t for t in range(128, cap + 1, 128) if n % t == 0]


def _row_tile(n, cap):
    cands = _tile_candidates(n, cap)
    if not cands:
        return n
    even = [t for t in cands if (n // t) % 2 == 0]    # even row-block count
    multi = [t for t in cands if (n // t) >= 2]       # >=2 blocks (megacore)
    if even:
        return max(even)
    if multi:
        return max(multi)
    return max(cands)


def _col_tile(n, cap):
    cands = _tile_candidates(n, cap)
    return max(cands) if cands else n


def _select_tiles(n):
    vmem = _chip_vmem_bytes()
    if vmem >= 100 * 1024 * 1024:        # v5e / v6e: 128 MiB physical VMEM
        tm_cap, tk_cap, vmem_limit = 2048, 2048, 96 * 1024 * 1024
    else:                                # v7x (64 MiB / TC) or unknown
        tm_cap, tk_cap, vmem_limit = 2048, 1024, 48 * 1024 * 1024
    return _row_tile(n, tm_cap), _col_tile(n, tk_cap), vmem_limit


# ----------------------------------------------------------------------------
# Kernel 1: fused  side = G @ ego ;  scores = fc_g(leaky(fc(ego + side)))
#   one_hot = eq(scores, rowwise max) with item-row override, and the
#   lane-dense initial grouped state z0 = m_g * ego  (bf16, (tm, groups*D)).
# ----------------------------------------------------------------------------
def _group_assign_kernel(g_ref, xb_ref, ego_ref, w1_ref, b1_ref, w2_ref, b2_ref,
                         oh_ref, z0_ref, acc_ref, *,
                         num_users, block_m, groups, dim):
    # NOTE: program_id / num_programs must stay at the kernel top level
    # (outside pl.when bodies) so they resolve in interpret mode too.
    k = pl.program_id(1)
    num_k = pl.num_programs(1)
    row_start = pl.program_id(0) * block_m

    @pl.when(k == 0)
    def _():
        acc_ref[...] = jnp.zeros_like(acc_ref)

    # side-embedding accumulation: bf16 MXU matmul, f32 accumulate.
    acc_ref[...] += jnp.dot(g_ref[...], xb_ref[...],
                            preferred_element_type=jnp.float32)

    @pl.when(k == num_k - 1)
    def _():
        ego = ego_ref[...]                                   # f32 (tm, D)
        t = (acc_ref[...] + ego).astype(jnp.bfloat16)        # ego + side
        h = jnp.dot(t, w1_ref[...],
                    preferred_element_type=jnp.float32) + b1_ref[...]
        h = jnp.where(h > 0, h, 0.01 * h)                    # LeakyReLU(0.01)
        s = jnp.dot(h.astype(jnp.bfloat16), w2_ref[...],
                    preferred_element_type=jnp.float32) + b2_ref[...]
        top = jnp.max(s, axis=-1, keepdims=True)             # topk(k=1)
        oh = (s == top).astype(jnp.float32)                  # torch.eq(scores, top)
        # item rows (global row >= num_users) belong to every group.
        rows = row_start + jax.lax.broadcasted_iota(jnp.int32, (block_m, 1), 0)
        oh = jnp.where(rows < num_users, oh, 1.0)
        oh_ref[...] = oh
        # z0[:, g*D:(g+1)*D] = m_g * ego   (bf16, lane-dense 512-wide output)
        for g in range(groups):
            z0_ref[:, g * dim:(g + 1) * dim] = (
                oh[:, g:g + 1] * ego).astype(jnp.bfloat16)


def group_assign(g_bf16, x_bf16, ego_f32, w1_bf16, b1, w2_bf16, b2, *,
                 num_users, groups, tm, tk, vmem_limit):
    N, D = ego_f32.shape
    W = groups * D
    kernel = functools.partial(_group_assign_kernel, num_users=num_users,
                               block_m=tm, groups=groups, dim=D)
    return pl.pallas_call(
        kernel,
        out_shape=(jax.ShapeDtypeStruct((N, groups), jnp.float32),
                   jax.ShapeDtypeStruct((N, W), jnp.bfloat16)),
        grid_spec=pltpu.PrefetchScalarGridSpec(
            num_scalar_prefetch=0,
            grid=(N // tm, N // tk),
            in_specs=[
                pl.BlockSpec((tm, tk), lambda i, k: (i, k)),      # G tile (bf16)
                pl.BlockSpec((tk, D), lambda i, k: (k, 0)),       # ego bf16 (reduction)
                pl.BlockSpec((tm, D), lambda i, k: (i, 0)),       # ego f32 (row side)
                pl.BlockSpec((D, D), lambda i, k: (0, 0)),        # w_fc   (bf16, resident)
                pl.BlockSpec((1, D), lambda i, k: (0, 0)),        # b_fc
                pl.BlockSpec((D, groups), lambda i, k: (0, 0)),   # w_fcg  (bf16)
                pl.BlockSpec((1, groups), lambda i, k: (0, 0)),   # b_fcg
            ],
            out_specs=[
                pl.BlockSpec((tm, groups), lambda i, k: (i, 0)),  # one-hot
                pl.BlockSpec((tm, W), lambda i, k: (i, 0)),       # z0 (bf16)
            ],
            scratch_shapes=[pltpu.VMEM((tm, D), jnp.float32)],
        ),
        compiler_params=pltpu.CompilerParams(
            dimension_semantics=("parallel", "arbitrary"),
            vmem_limit_bytes=vmem_limit),
    )(g_bf16, x_bf16, ego_f32, w1_bf16, b1, w2_bf16, b2)


# ----------------------------------------------------------------------------
# Kernel 2: fused grouped propagation for one layer.
#   Z (bf16) holds [m_0*e_0 | m_1*e_1 | ...] as an (N, groups*D) wide state:
#       Z_new = m_wide * (G @ Z)                (one pass over G per layer)
#       layer_sum = sum_g Z_new[:, g*D:(g+1)*D]
#   f32 accumulation in VMEM scratch; bf16 Z_new + f32 layer_sum outputs.
#   The mask arrives as the tiny (tm, groups) one-hot and is expanded in-register.
# ----------------------------------------------------------------------------
def _group_prop_kernel(g_ref, z_ref, oh_ref, znew_ref, sum_ref, acc_ref, *,
                       groups, dim):
    k = pl.program_id(1)
    num_k = pl.num_programs(1)

    @pl.when(k == 0)
    def _():
        acc_ref[...] = jnp.zeros_like(acc_ref)

    acc_ref[...] += jnp.dot(g_ref[...], z_ref[...],
                            preferred_element_type=jnp.float32)

    @pl.when(k == num_k - 1)
    def _():
        oh = oh_ref[...]                                   # (tm, groups) f32
        z0 = oh[:, 0:1] * acc_ref[:, 0:dim]                # row mask (= next col mask)
        znew_ref[:, 0:dim] = z0.astype(jnp.bfloat16)
        s = z0
        for g in range(1, groups):
            zg = oh[:, g:g + 1] * acc_ref[:, g * dim:(g + 1) * dim]
            znew_ref[:, g * dim:(g + 1) * dim] = zg.astype(jnp.bfloat16)
            s = s + zg
        sum_ref[...] = s


def group_propagate(g_bf16, z_bf16, oh, *, groups, dim, tm, tk, vmem_limit):
    N = g_bf16.shape[0]
    W = groups * dim
    kernel = functools.partial(_group_prop_kernel, groups=groups, dim=dim)
    return pl.pallas_call(
        kernel,
        out_shape=(jax.ShapeDtypeStruct((N, W), jnp.bfloat16),
                   jax.ShapeDtypeStruct((N, dim), jnp.float32)),
        grid_spec=pltpu.PrefetchScalarGridSpec(
            num_scalar_prefetch=0,
            grid=(N // tm, N // tk),
            in_specs=[
                pl.BlockSpec((tm, tk), lambda i, k: (i, k)),      # G tile (bf16)
                pl.BlockSpec((tk, W), lambda i, k: (k, 0)),       # wide state Z (bf16)
                pl.BlockSpec((tm, groups), lambda i, k: (i, 0)),  # narrow one-hot
            ],
            out_specs=[
                pl.BlockSpec((tm, W), lambda i, k: (i, 0)),       # Z_new (bf16)
                pl.BlockSpec((tm, dim), lambda i, k: (i, 0)),     # per-layer group sum
            ],
            scratch_shapes=[pltpu.VMEM((tm, W), jnp.float32)],
        ),
        compiler_params=pltpu.CompilerParams(
            dimension_semantics=("parallel", "arbitrary"),
            vmem_limit_bytes=vmem_limit),
    )(g_bf16, z_bf16, oh)


# ----------------------------------------------------------------------------
# IMP_GCN forward (computer() + dot-product scoring), eval-mode semantics.
# ----------------------------------------------------------------------------
@functools.partial(jax.jit, static_argnames=("num_users", "num_items", "n_layers",
                                             "groups", "tm", "tk", "vmem_limit"))
def _imp_gcn_forward(params, graph, users, items, *, num_users, num_items,
                     n_layers, groups, tm, tk, vmem_limit):
    all_emb = jnp.concatenate([params["user_emb"], params["item_emb"]], axis=0)
    N, D = all_emb.shape

    # Cast streamed operands to bf16 once on the XLA side.
    g_bf16 = graph.astype(jnp.bfloat16)
    x_bf16 = all_emb.astype(jnp.bfloat16)
    w1_b = params["w_fc"].astype(jnp.bfloat16)
    w2_b = params["w_fcg"].astype(jnp.bfloat16)

    # Group assignment + initial grouped state (m_g * ego), fused in one kernel.
    # NOTE: bf16 matmuls can flip the (s == top) one-hot on near-ties vs f32.
    oh, z = group_assign(g_bf16, x_bf16, all_emb, w1_b, params["b_fc"],
                         w2_b, params["b_fcg"],
                         num_users=num_users, groups=groups,
                         tm=tm, tk=tk, vmem_limit=vmem_limit)

    # Layer-0 contribution: every group starts from the (unmasked) ego embedding.
    total = float(groups) * all_emb
    # The reference zips n_layers layer-sums with a length-5 weight list (0.2 each),
    # so only the first min(n_layers, 5) terms contribute; extras are discarded.
    for _ in range(1, min(n_layers, 5)):
        z, layer_sum = group_propagate(g_bf16, z, oh, groups=groups, dim=D,
                                       tm=tm, tk=tk, vmem_limit=vmem_limit)
        total = total + layer_sum

    all_final = 0.2 * total
    u_emb = all_final[:num_users][users]
    i_emb = all_final[num_users:][items]
    # Tiny batch (B=8): plain jnp beats a pallas_call launch here.
    return jnp.sum(u_emb * i_emb, axis=1)


def imp_gcn_forward(params, graph, users, items, *, num_users, num_items,
                    n_layers, groups):
    N = num_users + num_items
    assert N % 128 == 0, "pad num_users+num_items to a multiple of 128"
    tm, tk, vmem_limit = _select_tiles(N)       # generation-aware, outside jit
    return _imp_gcn_forward(params, graph, users, items,
                            num_users=num_users, num_items=num_items,
                            n_layers=n_layers, groups=groups,
                            tm=tm, tk=tk, vmem_limit=vmem_limit)


# ----------------------------------------------------------------------------
# Deterministic synthetic setup
# ----------------------------------------------------------------------------
def xavier_uniform(key, shape):
    fan_in, fan_out = shape
    limit = (6.0 / (fan_in + fan_out)) ** 0.5
    return jax.random.uniform(key, shape, jnp.float32, -limit, limit)


def build_graph(key, num_users, num_items):
    N = num_users + num_items
    R = (jax.random.uniform(key, (num_users, num_items)) < 0.08).astype(jnp.float32)
    A = jnp.zeros((N, N), jnp.float32)
    A = A.at[:num_users, num_users:].set(R)
    A = A.at[num_users:, :num_users].set(R.T)
    deg = A.sum(axis=1)
    d_inv_sqrt = jnp.where(deg > 0, deg ** -0.5, 0.0)
    return d_inv_sqrt[:, None] * A * d_inv_sqrt[None, :]


if __name__ == "__main__":
    # small but TPU-tile-friendly shapes (N multiple of 128)
    num_users, num_items = 112, 144            # N = 256
    latent_dim, groups, n_layers = 128, 4, 6
    batch = 8

    key = jax.random.PRNGKey(0)
    k_ue, k_ie, k_w1, k_w2, k_g, k_u, k_i = jax.random.split(key, 7)

    params = {
        "user_emb": xavier_uniform(k_ue, (num_users, latent_dim)),
        "item_emb": xavier_uniform(k_ie, (num_items, latent_dim)),
        "w_fc":  xavier_uniform(k_w1, (latent_dim, latent_dim)),
        "b_fc":  jnp.zeros((1, latent_dim), jnp.float32),
        "w_fcg": xavier_uniform(k_w2, (latent_dim, groups)),
        "b_fcg": jnp.zeros((1, groups), jnp.float32),
    }
    graph = build_graph(k_g, num_users, num_items)

    users = jax.random.randint(k_u, (batch,), 0, num_users)
    items = jax.random.randint(k_i, (batch,), 0, num_items)

    gamma = imp_gcn_forward(params, graph, users, items,
                            num_users=num_users, num_items=num_items,
                            n_layers=n_layers, groups=groups)
    gamma = jax.block_until_ready(gamma)

    assert gamma.shape == (batch,)
    assert bool(jnp.all(jnp.isfinite(gamma)))
    print("KERNEL_OK")
</pallas_src>

<mosaic_0001>
module attributes {stable_mosaic.version = 11 : i64} {
  func.func @_group_prop_kernel(%arg0: i32, %arg1: i32, %arg2: memref<128x256xbf16, #tpu.memory_space<vmem>>, %arg3: memref<256x512xbf16, #tpu.memory_space<vmem>>, %arg4: memref<128x4xf32, #tpu.memory_space<vmem>>, %arg5: memref<128x512xbf16, #tpu.memory_space<vmem>>, %arg6: memref<128x128xf32, #tpu.memory_space<vmem>>, %arg7: memref<128x512xf32, #tpu.memory_space<vmem>>) attributes {dimension_semantics = [#tpu.dimension_semantics<parallel>, #tpu.dimension_semantics<arbitrary>], iteration_bounds = array<i64: 2, 1>, scalar_prefetch = 0 : i64, scratch_operands = 1 : i64, tpu.core_type = #tpu.core_type<tc>, window_params = [{transform_indices = @transform_0, window_bounds = array<i64: 128, 256>}, {transform_indices = @transform_1, window_bounds = array<i64: 256, 512>}, {transform_indices = @transform_2, window_bounds = array<i64: 128, 4>}, {transform_indices = @transform_3, window_bounds = array<i64: 128, 512>}, {transform_indices = @transform_4, window_bounds = array<i64: 128, 128>}]} {
    %c0_i32 = arith.constant 0 : i32
    %0 = arith.cmpi eq, %arg1, %c0_i32 : i32
    %1 = arith.extui %0 : i1 to i32
    %c0_i32_0 = arith.constant 0 : i32
    %2 = arith.cmpi ne, %1, %c0_i32_0 : i32
    scf.if %2 {
      %cst_10 = arith.constant 0.000000e+00 : f32
      %12 = vector.broadcast %cst_10 : f32 to vector<128x512xf32>
      %c0_11 = arith.constant 0 : index
      %c0_12 = arith.constant 0 : index
      %13 = vector.load %arg7[%c0_11, %c0_12] : memref<128x512xf32, #tpu.memory_space<vmem>>, vector<128x512xf32>
      tpu.vector_store %arg7[%c0_11, %c0_12], %12 {strides = array<i32>} : memref<128x512xf32, #tpu.memory_space<vmem>>, vector<128x512xf32>,
    } else {
    }
    %c0 = arith.constant 0 : index
    %c0_1 = arith.constant 0 : index
    %3 = vector.load %arg7[%c0, %c0_1] : memref<128x512xf32, #tpu.memory_space<vmem>>, vector<128x512xf32>
    %c0_2 = arith.constant 0 : index
    %c0_3 = arith.constant 0 : index
    %4 = vector.load %arg2[%c0_2, %c0_3] : memref<128x256xbf16, #tpu.memory_space<vmem>>, vector<128x256xbf16>
    %c0_4 = arith.constant 0 : index
    %c0_5 = arith.constant 0 : index
    %5 = vector.load %arg3[%c0_4, %c0_5] : memref<256x512xbf16, #tpu.memory_space<vmem>>, vector<256x512xbf16>
    %cst = arith.constant dense<0.000000e+00> : vector<128x512xf32>
    %6 = tpu.matmul %4, %5, %cst {dimension_numbers = #tpu.dot_dimension_numbers<[1], [0], [0], [1], [0, 0, 1, 1], [], []>} : vector<128x256xbf16>, vector<256x512xbf16>, vector<128x512xf32> -> vector<128x512xf32>
    %7 = arith.addf %3, %6 : vector<128x512xf32>
    %c0_6 = arith.constant 0 : index
    %c0_7 = arith.constant 0 : index
    %8 = vector.load %arg7[%c0_6, %c0_7] : memref<128x512xf32, #tpu.memory_space<vmem>>, vector<128x512xf32>
    tpu.vector_store %arg7[%c0_6, %c0_7], %7 {strides = array<i32>} : memref<128x512xf32, #tpu.memory_space<vmem>>, vector<128x512xf32>,
    %c0_i32_8 = arith.constant 0 : i32
    %9 = arith.cmpi eq, %arg1, %c0_i32_8 : i32
    %10 = arith.extui %9 : i1 to i32
    %c0_i32_9 = arith.constant 0 : i32
    %11 = arith.cmpi ne, %10, %c0_i32_9 : i32
    scf.if %11 {
      %c0_10 = arith.constant 0 : index
      %c0_11 = arith.constant 0 : index
      %12 = vector.load %arg4[%c0_10, %c0_11] : memref<128x4xf32, #tpu.memory_space<vmem>>, vector<128x4xf32>
      %13 = vector.extract_strided_slice %12 {offsets = [0, 0], sizes = [128, 1], strides = [1, 1]} : vector<128x4xf32> to vector<128x1xf32>
      %c0_12 = arith.constant 0 : index
      %c0_13 = arith.constant 0 : index
      %14 = vector.load %arg7[%c0_12, %c0_13] : memref<128x512xf32, #tpu.memory_space<vmem>>, vector<128x128xf32>
      %15 = vector.broadcast %13 : vector<128x1xf32> to vector<128x128xf32>
      %16 = arith.mulf %15, %14 : vector<128x128xf32>
      %17 = arith.truncf %16 : vector<128x128xf32> to vector<128x128xbf16>
      %c0_14 = arith.constant 0 : index
      %c0_15 = arith.constant 0 : index
      %18 = vector.load %arg5[%c0_14, %c0_15] : memref<128x512xbf16, #tpu.memory_space<vmem>>, vector<128x128xbf16>
      tpu.vector_store %arg5[%c0_14, %c0_15], %17 {strides = array<i32>} : memref<128x512xbf16, #tpu.memory_space<vmem>>, vector<128x128xbf16>,
      %19 = vector.extract_strided_slice %12 {offsets = [0, 1], sizes = [128, 1], strides = [1, 1]} : vector<128x4xf32> to vector<128x1xf32>
      %c0_16 = arith.constant 0 : index
      %c128 = arith.constant 128 : index
      %20 = vector.load %arg7[%c0_16, %c128] : memref<128x512xf32, #tpu.memory_space<vmem>>, vector<128x128xf32>
      %21 = vector.broadcast %19 : vector<128x1xf32> to vector<128x128xf32>
      %22 = arith.mulf %21, %20 : vector<128x128xf32>
      %23 = arith.truncf %22 : vector<128x128xf32> to vector<128x128xbf16>
      %c0_17 = arith.constant 0 : index
      %c128_18 = arith.constant 128 : index
      %24 = vector.load %arg5[%c0_17, %c128_18] : memref<128x512xbf16, #tpu.memory_space<vmem>>, vector<128x128xbf16>
      tpu.vector_store %arg5[%c0_17, %c128_18], %23 {strides = array<i32>} : memref<128x512xbf16, #tpu.memory_space<vmem>>, vector<128x128xbf16>,
      %25 = arith.addf %16, %22 : vector<128x128xf32>
      %26 = vector.extract_strided_slice %12 {offsets = [0, 2], sizes = [128, 1], strides = [1, 1]} : vector<128x4xf32> to vector<128x1xf32>
      %c0_19 = arith.constant 0 : index
      %c256 = arith.constant 256 : index
      %27 = vector.load %arg7[%c0_19, %c256] : memref<128x512xf32, #tpu.memory_space<vmem>>, vector<128x128xf32>
      %28 = vector.broadcast %26 : vector<128x1xf32> to vector<128x128xf32>
      %29 = arith.mulf %28, %27 : vector<128x128xf32>
      %30 = arith.truncf %29 : vector<128x128xf32> to vector<128x128xbf16>
      %c0_20 = arith.constant 0 : index
      %c256_21 = arith.constant 256 : index
      %31 = vector.load %arg5[%c0_20, %c256_21] : memref<128x512xbf16, #tpu.memory_space<vmem>>, vector<128x128xbf16>
      tpu.vector_store %arg5[%c0_20, %c256_21], %30 {strides = array<i32>} : memref<128x512xbf16, #tpu.memory_space<vmem>>, vector<128x128xbf16>,
      %32 = arith.addf %25, %29 : vector<128x128xf32>
      %33 = vector.extract_strided_slice %12 {offsets = [0, 3], sizes = [128, 1], strides = [1, 1]} : vector<128x4xf32> to vector<128x1xf32>
      %c0_22 = arith.constant 0 : index
      %c384 = arith.constant 384 : index
      %34 = vector.load %arg7[%c0_22, %c384] : memref<128x512xf32, #tpu.memory_space<vmem>>, vector<128x128xf32>
      %35 = vector.broadcast %33 : vector<128x1xf32> to vector<128x128xf32>
      %36 = arith.mulf %35, %34 : vector<128x128xf32>
      %37 = arith.truncf %36 : vector<128x128xf32> to vector<128x128xbf16>
      %c0_23 = arith.constant 0 : index
      %c384_24 = arith.constant 384 : index
      %38 = vector.load %arg5[%c0_23, %c384_24] : memref<128x512xbf16, #tpu.memory_space<vmem>>, vector<128x128xbf16>
      tpu.vector_store %arg5[%c0_23, %c384_24], %37 {strides = array<i32>} : memref<128x512xbf16, #tpu.memory_space<vmem>>, vector<128x128xbf16>,
      %39 = arith.addf %32, %36 : vector<128x128xf32>
      %c0_25 = arith.constant 0 : index
      %c0_26 = arith.constant 0 : index
      %40 = vector.load %arg6[%c0_25, %c0_26] : memref<128x128xf32, #tpu.memory_space<vmem>>, vector<128x128xf32>
      tpu.vector_store %arg6[%c0_25, %c0_26], %39 {strides = array<i32>} : memref<128x128xf32, #tpu.memory_space<vmem>>, vector<128x128xf32>,
    } else {
    }
    return
  }
  func.func @transform_0(%arg0: i32, %arg1: i32) -> (i32, i32) {
    %c0_i32 = arith.constant 0 : i32
    return %arg0, %arg1 : i32, i32
  }
  func.func @transform_1(%arg0: i32, %arg1: i32) -> (i32, i32) {
    %c0_i32 = arith.constant 0 : i32
    %c0_i32_0 = arith.constant 0 : i32
    return %arg1, %c0_i32 : i32, i32
  }
  func.func @transform_2(%arg0: i32, %arg1: i32) -> (i32, i32) {
    %c0_i32 = arith.constant 0 : i32
    %c0_i32_0 = arith.constant 0 : i32
    return %arg0, %c0_i32 : i32, i32
  }
  func.func @transform_3(%arg0: i32, %arg1: i32) -> (i32, i32) {
    %c0_i32 = arith.constant 0 : i32
    %c0_i32_0 = arith.constant 0 : i32
    return %arg0, %c0_i32 : i32, i32
  }
  func.func @transform_4(%arg0: i32, %arg1: i32) -> (i32, i32) {
    %c0_i32 = arith.constant 0 : i32
    %c0_i32_0 = arith.constant 0 : i32
    return %arg0, %c0_i32 : i32, i32
  }
}

module attributes {stable_mosaic.version = 11 : i64} {
  func.func @_group_prop_kernel(%arg0: i32, %arg1: i32, %arg2: memref<128x256xbf16, #tpu.memory_space<vmem>>, %arg3: memref<256x512xbf16, #tpu.memory_space<vmem>>, %arg4: memref<128x4xf32, #tpu.memory_space<vmem>>, %arg5: memref<128x512xbf16, #tpu.memory_space<vmem>>, %arg6: memref<128x128xf32, #tpu.memory_space<vmem>>, %arg7: memref<128x512xf32, #tpu.memory_space<vmem>>) attributes {dimension_semantics = [#tpu.dimension_semantics<parallel>, #tpu.dimension_semantics<arbitrary>], iteration_bounds = array<i64: 2, 1>, scalar_prefetch = 0 : i64, scratch_operands = 1 : i64, tpu.core_type = #tpu.core_type<tc>, window_params = [{transform_indices = @transform_0, window_bounds = array<i64: 128, 256>}, {transform_indices = @transform_1, window_bounds = array<i64: 256, 512>}, {transform_indices = @transform_2, window_bounds = array<i64: 128, 4>}, {transform_indices = @transform_3, window_bounds = array<i64: 128, 512>}, {transform_indices = @transform_4, window_bounds = array<i64: 128, 128>}]} {
    %c0_i32 = arith.constant 0 : i32
    %0 = arith.cmpi eq, %arg1, %c0_i32 : i32
    %1 = arith.extui %0 : i1 to i32
    %c0_i32_0 = arith.constant 0 : i32
    %2 = arith.cmpi ne, %1, %c0_i32_0 : i32
    scf.if %2 {
      %cst_10 = arith.constant 0.000000e+00 : f32
      %12 = vector.broadcast %cst_10 : f32 to vector<128x512xf32>
      %c0_11 = arith.constant 0 : index
      %c0_12 = arith.constant 0 : index
      %13 = vector.load %arg7[%c0_11, %c0_12] : memref<128x512xf32, #tpu.memory_space<vmem>>, vector<128x512xf32>
      tpu.vector_store %arg7[%c0_11, %c0_12], %12 {strides = array<i32>} : memref<128x512xf32, #tpu.memory_space<vmem>>, vector<128x512xf32>,
    } else {
    }
    %c0 = arith.constant 0 : index
    %c0_1 = arith.constant 0 : index
    %3 = vector.load %arg7[%c0, %c0_1] : memref<128x512xf32, #tpu.memory_space<vmem>>, vector<128x512xf32>
    %c0_2 = arith.constant 0 : index
    %c0_3 = arith.constant 0 : index
    %4 = vector.load %arg2[%c0_2, %c0_3] : memref<128x256xbf16, #tpu.memory_space<vmem>>, vector<128x256xbf16>
    %c0_4 = arith.constant 0 : index
    %c0_5 = arith.constant 0 : index
    %5 = vector.load %arg3[%c0_4, %c0_5] : memref<256x512xbf16, #tpu.memory_space<vmem>>, vector<256x512xbf16>
    %cst = arith.constant dense<0.000000e+00> : vector<128x512xf32>
    %6 = tpu.matmul %4, %5, %cst {dimension_numbers = #tpu.dot_dimension_numbers<[1], [0], [0], [1], [0, 0, 1, 1], [], []>} : vector<128x256xbf16>, vector<256x512xbf16>, vector<128x512xf32> -> vector<128x512xf32>
    %7 = arith.addf %3, %6 : vector<128x512xf32>
    %c0_6 = arith.constant 0 : index
    %c0_7 = arith.constant 0 : index
    %8 = vector.load %arg7[%c0_6, %c0_7] : memref<128x512xf32, #tpu.memory_space<vmem>>, vector<128x512xf32>
    tpu.vector_store %arg7[%c0_6, %c0_7], %7 {strides = array<i32>} : memref<128x512xf32, #tpu.memory_space<vmem>>, vector<128x512xf32>,
    %c0_i32_8 = arith.constant 0 : i32
    %9 = arith.cmpi eq, %arg1, %c0_i32_8 : i32
    %10 = arith.extui %9 : i1 to i32
    %c0_i32_9 = arith.constant 0 : i32
    %11 = arith.cmpi ne, %10, %c0_i32_9 : i32
    scf.if %11 {
      %c0_10 = arith.constant 0 : index
      %c0_11 = arith.constant 0 : index
      %12 = vector.load %arg4[%c0_10, %c0_11] : memref<128x4xf32, #tpu.memory_space<vmem>>, vector<128x4xf32>
      %13 = vector.extract_strided_slice %12 {offsets = [0, 0], sizes = [128, 1], strides = [1, 1]} : vector<128x4xf32> to vector<128x1xf32>
      %c0_12 = arith.constant 0 : index
      %c0_13 = arith.constant 0 : index
      %14 = vector.load %arg7[%c0_12, %c0_13] : memref<128x512xf32, #tpu.memory_space<vmem>>, vector<128x128xf32>
      %15 = vector.broadcast %13 : vector<128x1xf32> to vector<128x128xf32>
      %16 = arith.mulf %15, %14 : vector<128x128xf32>
      %17 = arith.truncf %16 : vector<128x128xf32> to vector<128x128xbf16>
      %c0_14 = arith.constant 0 : index
      %c0_15 = arith.constant 0 : index
      %18 = vector.load %arg5[%c0_14, %c0_15] : memref<128x512xbf16, #tpu.memory_space<vmem>>, vector<128x128xbf16>
      tpu.vector_store %arg5[%c0_14, %c0_15], %17 {strides = array<i32>} : memref<128x512xbf16, #tpu.memory_space<vmem>>, vector<128x128xbf16>,
      %19 = vector.extract_strided_slice %12 {offsets = [0, 1], sizes = [128, 1], strides = [1, 1]} : vector<128x4xf32> to vector<128x1xf32>
      %c0_16 = arith.constant 0 : index
      %c128 = arith.constant 128 : index
      %20 = vector.load %arg7[%c0_16, %c128] : memref<128x512xf32, #tpu.memory_space<vmem>>, vector<128x128xf32>
      %21 = vector.broadcast %19 : vector<128x1xf32> to vector<128x128xf32>
      %22 = arith.mulf %21, %20 : vector<128x128xf32>
      %23 = arith.truncf %22 : vector<128x128xf32> to vector<128x128xbf16>
      %c0_17 = arith.constant 0 : index
      %c128_18 = arith.constant 128 : index
      %24 = vector.load %arg5[%c0_17, %c128_18] : memref<128x512xbf16, #tpu.memory_space<vmem>>, vector<128x128xbf16>
      tpu.vector_store %arg5[%c0_17, %c128_18], %23 {strides = array<i32>} : memref<128x512xbf16, #tpu.memory_space<vmem>>, vector<128x128xbf16>,
      %25 = arith.addf %16, %22 : vector<128x128xf32>
      %26 = vector.extract_strided_slice %12 {offsets = [0, 2], sizes = [128, 1], strides = [1, 1]} : vector<128x4xf32> to vector<128x1xf32>
      %c0_19 = arith.constant 0 : index
      %c256 = arith.constant 256 : index
      %27 = vector.load %arg7[%c0_19, %c256] : memref<128x512xf32, #tpu.memory_space<vmem>>, vector<128x128xf32>
      %28 = vector.broadcast %26 : vector<128x1xf32> to vector<128x128xf32>
      %29 = arith.mulf %28, %27 : vector<128x128xf32>
      %30 = arith.truncf %29 : vector<128x128xf32> to vector<128x128xbf16>
      %c0_20 = arith.constant 0 : index
      %c256_21 = arith.constant 256 : index
      %31 = vector.load %arg5[%c0_20, %c256_21] : memref<128x512xbf16, #tpu.memory_space<vmem>>, vector<128x128xbf16>
      tpu.vector_store %arg5[%c0_20, %c256_21], %30 {strides = array<i32>} : memref<128x512xbf16, #tpu.memory_space<vmem>>, vector<128x128xbf16>,
      %32 = arith.addf %25, %29 : vector<128x128xf32>
      %33 = vector.extract_strided_slice %12 {offsets = [0, 3], sizes = [128, 1], strides = [1, 1]} : vector<128x4xf32> to vector<128x1xf32>
      %c0_22 = arith.constant 0 : index
      %c384 = arith.constant 384 : index
      %34 = vector.load %arg7[%c0_22, %c384] : memref<128x512xf32, #tpu.memory_space<vmem>>, vector<128x128xf32>
      %35 = vector.broadcast %33 : vector<128x1xf32> to vector<128x128xf32>
      %36 = arith.mulf %35, %34 : vector<128x128xf32>
      %37 = arith.truncf %36 : vector<128x128xf32> to vector<128x128xbf16>
      %c0_23 = arith.constant 0 : index
      %c384_24 = arith.constant 384 : index
      %38 = vector.load %arg5[%c0_23, %c384_24] : memref<128x512xbf16, #tpu.memory_space<vmem>>, vector<128x128xbf16>
      tpu.vector_store %arg5[%c0_23, %c384_24], %37 {strides = array<i32>} : memref<128x512xbf16, #tpu.memory_space<vmem>>, vector<128x128xbf16>,
      %39 = arith.addf %32, %36 : vector<128x128xf32>
      %c0_25 = arith.constant 0 : index
      %c0_26 = arith.constant 0 : index
      %40 = vector.load %arg6[%c0_25, %c0_26] : memref<128x128xf32, #tpu.memory_space<vmem>>, vector<128x128xf32>
      tpu.vector_store %arg6[%c0_25, %c0_26], %39 {strides = array<i32>} : memref<128x128xf32, #tpu.memory_space<vmem>>, vector<128x128xf32>,
    } else {
    }
    return
  }
  func.func @transform_0(%arg0: i32, %arg1: i32) -> (i32, i32) {
    %c0_i32 = arith.constant 0 : i32
    return %arg0, %arg1 : i32, i32
  }
  func.func @transform_1(%arg0: i32, %arg1: i32) -> (i32, i32) {
    %c0_i32 = arith.constant 0 : i32
    %c0_i32_0 = arith.constant 0 : i32
    return %arg1, %c0_i32 : i32, i32
  }
  func.func @transform_2(%arg0: i32, %arg1: i32) -> (i32, i32) {
    %c0_i32 = arith.constant 0 : i32
    %c0_i32_0 = arith.constant 0 : i32
    return %arg0, %c0_i32 : i32, i32
  }
  func.func @transform_3(%arg0: i32, %arg1: i32) -> (i32, i32) {
    %c0_i32 = arith.constant 0 : i32
    %c0_i32_0 = arith.constant 0 : i32
    return %arg0, %c0_i32 : i32, i32
  }
  func.func @transform_4(%arg0: i32, %arg1: i32) -> (i32, i32) {
    %c0_i32 = arith.constant 0 : i32
    %c0_i32_0 = arith.constant 0 : i32
    return %arg0, %c0_i32 : i32, i32
  }
}

module attributes {stable_mosaic.version = 11 : i64} {
  func.func @_group_assign_kernel(%arg0: i32, %arg1: i32, %arg2: memref<128x256xbf16, #tpu.memory_space<vmem>>, %arg3: memref<256x128xbf16, #tpu.memory_space<vmem>>, %arg4: memref<128x128xf32, #tpu.memory_space<vmem>>, %arg5: memref<128x128xbf16, #tpu.memory_space<vmem>>, %arg6: memref<1x128xf32, #tpu.memory_space<vmem>>, %arg7: memref<128x4xbf16, #tpu.memory_space<vmem>>, %arg8: memref<1x4xf32, #tpu.memory_space<vmem>>, %arg9: memref<128x4xf32, #tpu.memory_space<vmem>>, %arg10: memref<128x512xbf16, #tpu.memory_space<vmem>>, %arg11: memref<128x128xf32, #tpu.memory_space<vmem>>) attributes {dimension_semantics = [#tpu.dimension_semantics<parallel>, #tpu.dimension_semantics<arbitrary>], iteration_bounds = array<i64: 2, 1>, scalar_prefetch = 0 : i64, scratch_operands = 1 : i64, tpu.core_type = #tpu.core_type<tc>, window_params = [{transform_indices = @transform_0, window_bounds = array<i64: 128, 256>}, {transform_indices = @transform_1, window_bounds = array<i64: 256, 128>}, {transform_indices = @transform_2, window_bounds = array<i64: 128, 128>}, {pipeline_mode = #tpu.pipeline_mode<synchronous>, transform_indices = @transform_3, window_bounds = array<i64: 128, 128>}, {pipeline_mode = #tpu.pipeline_mode<synchronous>, transform_indices = @transform_4, window_bounds = array<i64: 1, 128>}, {pipeline_mode = #tpu.pipeline_mode<synchronous>, transform_indices = @transform_5, window_bounds = array<i64: 128, 4>}, {pipeline_mode = #tpu.pipeline_mode<synchronous>, transform_indices = @transform_6, window_bounds = array<i64: 1, 4>}, {transform_indices = @transform_7, window_bounds = array<i64: 128, 4>}, {transform_indices = @transform_8, window_bounds = array<i64: 128, 512>}]} {
    %c128_i32 = arith.constant 128 : i32
    %0 = arith.muli %arg0, %c128_i32 : i32
    %c0_i32 = arith.constant 0 : i32
    %1 = arith.cmpi eq, %arg1, %c0_i32 : i32
    %2 = arith.extui %1 : i1 to i32
    %c0_i32_0 = arith.constant 0 : i32
    %3 = arith.cmpi ne, %2, %c0_i32_0 : i32
    scf.if %3 {
      %cst_10 = arith.constant 0.000000e+00 : f32
      %13 = vector.broadcast %cst_10 : f32 to vector<128x128xf32>
      %c0_11 = arith.constant 0 : index
      %c0_12 = arith.constant 0 : index
      %14 = vector.load %arg11[%c0_11, %c0_12] : memref<128x128xf32, #tpu.memory_space<vmem>>, vector<128x128xf32>
      tpu.vector_store %arg11[%c0_11, %c0_12], %13 {strides = array<i32>} : memref<128x128xf32, #tpu.memory_space<vmem>>, vector<128x128xf32>,
    } else {
    }
    %c0 = arith.constant 0 : index
    %c0_1 = arith.constant 0 : index
    %4 = vector.load %arg11[%c0, %c0_1] : memref<128x128xf32, #tpu.memory_space<vmem>>, vector<128x128xf32>
    %c0_2 = arith.constant 0 : index
    %c0_3 = arith.constant 0 : index
    %5 = vector.load %arg2[%c0_2, %c0_3] : memref<128x256xbf16, #tpu.memory_space<vmem>>, vector<128x256xbf16>
    %c0_4 = arith.constant 0 : index
    %c0_5 = arith.constant 0 : index
    %6 = vector.load %arg3[%c0_4, %c0_5] : memref<256x128xbf16, #tpu.memory_space<vmem>>, vector<256x128xbf16>
    %cst = arith.constant dense<0.000000e+00> : vector<128x128xf32>
    %7 = tpu.matmul %5, %6, %cst {dimension_numbers = #tpu.dot_dimension_numbers<[1], [0], [0], [1], [0, 0, 1, 1], [], []>} : vector<128x256xbf16>, vector<256x128xbf16>, vector<128x128xf32> -> vector<128x128xf32>
    %8 = arith.addf %4, %7 : vector<128x128xf32>
    %c0_6 = arith.constant 0 : index
    %c0_7 = arith.constant 0 : index
    %9 = vector.load %arg11[%c0_6, %c0_7] : memref<128x128xf32, #tpu.memory_space<vmem>>, vector<128x128xf32>
    tpu.vector_store %arg11[%c0_6, %c0_7], %8 {strides = array<i32>} : memref<128x128xf32, #tpu.memory_space<vmem>>, vector<128x128xf32>,
    %c0_i32_8 = arith.constant 0 : i32
    %10 = arith.cmpi eq, %arg1, %c0_i32_8 : i32
    %11 = arith.extui %10 : i1 to i32
    %c0_i32_9 = arith.constant 0 : i32
    %12 = arith.cmpi ne, %11, %c0_i32_9 : i32
    scf.if %12 {
      %c0_10 = arith.constant 0 : index
      %c0_11 = arith.constant 0 : index
      %13 = vector.load %arg4[%c0_10, %c0_11] : memref<128x128xf32, #tpu.memory_space<vmem>>, vector<128x128xf32>
      %c0_12 = arith.constant 0 : index
      %c0_13 = arith.constant 0 : index
      %14 = vector.load %arg11[%c0_12, %c0_13] : memref<128x128xf32, #tpu.memory_space<vmem>>, vector<128x128xf32>
      %15 = arith.addf %14, %13 : vector<128x128xf32>
      %16 = arith.truncf %15 : vector<128x128xf32> to vector<128x128xbf16>
      %c0_14 = arith.constant 0 : index
      %c0_15 = arith.constant 0 : index
      %17 = vector.load %arg5[%c0_14, %c0_15] : memref<128x128xbf16, #tpu.memory_space<vmem>>, vector<128x128xbf16>
      %cst_16 = arith.constant dense<0.000000e+00> : vector<128x128xf32>
      %18 = tpu.matmul %16, %17, %cst_16 {dimension_numbers = #tpu.dot_dimension_numbers<[1], [0], [0], [1], [0, 0, 1, 1], [], []>} : vector<128x128xbf16>, vector<128x128xbf16>, vector<128x128xf32> -> vector<128x128xf32>
      %c0_17 = arith.constant 0 : index
      %c0_18 = arith.constant 0 : index
      %19 = vector.load %arg6[%c0_17, %c0_18] : memref<1x128xf32, #tpu.memory_space<vmem>>, vector<1x128xf32>
      %20 = vector.broadcast %19 : vector<1x128xf32> to vector<128x128xf32>
      %21 = arith.addf %18, %20 : vector<128x128xf32>
      %cst_19 = arith.constant 0.000000e+00 : f32
      %22 = vector.broadcast %cst_19 : f32 to vector<128x128xf32>
      %23 = arith.cmpf ogt, %21, %22 : vector<128x128xf32>
      %cst_20 = arith.constant 0.00999999977 : f32
      %24 = vector.broadcast %cst_20 : f32 to vector<128x128xf32>
      %25 = arith.mulf %24, %21 : vector<128x128xf32>
      %26 = arith.select %23, %21, %25 : vector<128x128xi1>, vector<128x128xf32>
      %27 = arith.truncf %26 : vector<128x128xf32> to vector<128x128xbf16>
      %c0_21 = arith.constant 0 : index
      %c0_22 = arith.constant 0 : index
      %28 = vector.load %arg7[%c0_21, %c0_22] : memref<128x4xbf16, #tpu.memory_space<vmem>>, vector<128x4xbf16>
      %cst_23 = arith.constant dense<0.000000e+00> : vector<128x4xf32>
      %29 = tpu.matmul %27, %28, %cst_23 {dimension_numbers = #tpu.dot_dimension_numbers<[1], [0], [0], [1], [0, 0, 1, 1], [], []>} : vector<128x128xbf16>, vector<128x4xbf16>, vector<128x4xf32> -> vector<128x4xf32>
      %c0_24 = arith.constant 0 : index
      %c0_25 = arith.constant 0 : index
      %30 = vector.load %arg8[%c0_24, %c0_25] : memref<1x4xf32, #tpu.memory_space<vmem>>, vector<1x4xf32>
      %31 = vector.broadcast %30 : vector<1x4xf32> to vector<128x4xf32>
      %32 = arith.addf %29, %31 : vector<128x4xf32>
      %cst_26 = arith.constant dense<0xFF800000> : vector<128xf32>
      %33 = vector.multi_reduction <maximumf>, %32, %cst_26 [1] : vector<128x4xf32> to vector<128xf32>
      %34 = vector.shape_cast %33 : vector<128xf32> to vector<128x1xf32>
      %35 = vector.broadcast %34 : vector<128x1xf32> to vector<128x4xf32>
      %36 = arith.cmpf oeq, %32, %35 : vector<128x4xf32>
      %37 = arith.extui %36 : vector<128x4xi1> to vector<128x4xi32>
      %38 = arith.sitofp %37 : vector<128x4xi32> to vector<128x4xf32>
      %39 = tpu.iota {dimensions = array<i32: 0>} : vector<128x1xi32>
      %40 = vector.broadcast %0 : i32 to vector<128x1xi32>
      %41 = arith.addi %40, %39 : vector<128x1xi32>
      %c112_i32 = arith.constant 112 : i32
      %42 = vector.broadcast %c112_i32 : i32 to vector<128x1xi32>
      %43 = arith.cmpi slt, %41, %42 : vector<128x1xi32>
      %cst_27 = arith.constant 1.000000e+00 : f32
      %44 = vector.shape_cast %43 : vector<128x1xi1> to vector<128x1xi1>
      %45 = vector.broadcast %44 : vector<128x1xi1> to vector<128x4xi1>
      %46 = vector.broadcast %cst_27 : f32 to vector<128x4xf32>
      %47 = arith.select %45, %38, %46 : vector<128x4xi1>, vector<128x4xf32>
      %c0_28 = arith.constant 0 : index
      %c0_29 = arith.constant 0 : index
      %48 = vector.load %arg9[%c0_28, %c0_29] : memref<128x4xf32, #tpu.memory_space<vmem>>, vector<128x4xf32>
      tpu.vector_store %arg9[%c0_28, %c0_29], %47 {strides = array<i32>} : memref<128x4xf32, #tpu.memory_space<vmem>>, vector<128x4xf32>,
      %49 = vector.extract_strided_slice %47 {offsets = [0, 0], sizes = [128, 1], strides = [1, 1]} : vector<128x4xf32> to vector<128x1xf32>
      %50 = vector.broadcast %49 : vector<128x1xf32> to vector<128x128xf32>
      %51 = arith.mulf %50, %13 : vector<128x128xf32>
      %52 = arith.truncf %51 : vector<128x128xf32> to vector<128x128xbf16>
      %c0_30 = arith.constant 0 : index
      %c0_31 = arith.constant 0 : index
      %53 = vector.load %arg10[%c0_30, %c0_31] : memref<128x512xbf16, #tpu.memory_space<vmem>>, vector<128x128xbf16>
      tpu.vector_store %arg10[%c0_30, %c0_31], %52 {strides = array<i32>} : memref<128x512xbf16, #tpu.memory_space<vmem>>, vector<128x128xbf16>,
      %54 = vector.extract_strided_slice %47 {offsets = [0, 1], sizes = [128, 1], strides = [1, 1]} : vector<128x4xf32> to vector<128x1xf32>
      %55 = vector.broadcast %54 : vector<128x1xf32> to vector<128x128xf32>
      %56 = arith.mulf %55, %13 : vector<128x128xf32>
      %57 = arith.truncf %56 : vector<128x128xf32> to vector<128x128xbf16>
      %c0_32 = arith.constant 0 : index
      %c128 = arith.constant 128 : index
      %58 = vector.load %arg10[%c0_32, %c128] : memref<128x512xbf16, #tpu.memory_space<vmem>>, vector<128x128xbf16>
      tpu.vector_store %arg10[%c0_32, %c128], %57 {strides = array<i32>} : memref<128x512xbf16, #tpu.memory_space<vmem>>, vector<128x128xbf16>,
      %59 = vector.extract_strided_slice %47 {offsets = [0, 2], sizes = [128, 1], strides = [1, 1]} : vector<128x4xf32> to vector<128x1xf32>
      %60 = vector.broadcast %59 : vector<128x1xf32> to vector<128x128xf32>
      %61 = arith.mulf %60, %13 : vector<128x128xf32>
      %62 = arith.truncf %61 : vector<128x128xf32> to vector<128x128xbf16>
      %c0_33 = arith.constant 0 : index
      %c256 = arith.constant 256 : index
      %63 = vector.load %arg10[%c0_33, %c256] : memref<128x512xbf16, #tpu.memory_space<vmem>>, vector<128x128xbf16>
      tpu.vector_store %arg10[%c0_33, %c256], %62 {strides = array<i32>} : memref<128x512xbf16, #tpu.memory_space<vmem>>, vector<128x128xbf16>,
      %64 = vector.extract_strided_slice %47 {offsets = [0, 3], sizes = [128, 1], strides = [1, 1]} : vector<128x4xf32> to vector<128x1xf32>
      %65 = vector.broadcast %64 : vector<128x1xf32> to vector<128x128xf32>
      %66 = arith.mulf %65, %13 : vector<128x128xf32>
      %67 = arith.truncf %66 : vector<128x128xf32> to vector<128x128xbf16>
      %c0_34 = arith.constant 0 : index
      %c384 = arith.constant 384 : index
      %68 = vector.load %arg10[%c0_34, %c384] : memref<128x512xbf16, #tpu.memory_space<vmem>>, vector<128x128xbf16>
      tpu.vector_store %arg10[%c0_34, %c384], %67 {strides = array<i32>} : memref<128x512xbf16, #tpu.memory_space<vmem>>, vector<128x128xbf16>,
    } else {
    }
    return
  }
  func.func @transform_0(%arg0: i32, %arg1: i32) -> (i32, i32) {
    %c0_i32 = arith.constant 0 : i32
    return %arg0, %arg1 : i32, i32
  }
  func.func @transform_1(%arg0: i32, %arg1: i32) -> (i32, i32) {
    %c0_i32 = arith.constant 0 : i32
    %c0_i32_0 = arith.constant 0 : i32
    return %arg1, %c0_i32 : i32, i32
  }
  func.func @transform_2(%arg0: i32, %arg1: i32) -> (i32, i32) {
    %c0_i32 = arith.constant 0 : i32
    %c0_i32_0 = arith.constant 0 : i32
    return %arg0, %c0_i32 : i32, i32
  }
  func.func @transform_3(%arg0: i32, %arg1: i32) -> (i32, i32) {
    %c0_i32 = arith.constant 0 : i32
    %c0_i32_0 = arith.constant 0 : i32
    %c0_i32_1 = arith.constant 0 : i32
    return %c0_i32, %c0_i32_0 : i32, i32
  }
  func.func @transform_4(%arg0: i32, %arg1: i32) -> (i32, i32) {
    %c0_i32 = arith.constant 0 : i32
    %c0_i32_0 = arith.constant 0 : i32
    %c0_i32_1 = arith.constant 0 : i32
    return %c0_i32, %c0_i32_0 : i32, i32
  }
  func.func @transform_5(%arg0: i32, %arg1: i32) -> (i32, i32) {
    %c0_i32 = arith.constant 0 : i32
    %c0_i32_0 = arith.constant 0 : i32
    %c0_i32_1 = arith.constant 0 : i32
    return %c0_i32, %c0_i32_0 : i32, i32
  }
  func.func @transform_6(%arg0: i32, %arg1: i32) -> (i32, i32) {
    %c0_i32 = arith.constant 0 : i32
    %c0_i32_0 = arith.constant 0 : i32
    %c0_i32_1 = arith.constant 0 : i32
    return %c0_i32, %c0_i32_0 : i32, i32
  }
  func.func @transform_7(%arg0: i32, %arg1: i32) -> (i32, i32) {
    %c0_i32 = arith.constant 0 : i32
    %c0_i32_0 = arith.constant 0 : i32
    return %arg0, %c0_i32 : i32, i32
  }
  func.func @transform_8(%arg0: i32, %arg1: i32) -> (i32, i32) {
    %c0_i32 = arith.constant 0 : i32
    %c0_i32_0 = arith.constant 0 : i32
    return %arg0, %c0_i32 : i32, i32
  }
}

</mosaic_0001>

<bundles_post_ra>
// kernel: _imp_gcn_forward.6
= control target key start
LH: loop header
LB: loop body
LE: loop exit
PB: predicated region body
PF: predicated region fallthrough
CT: control target
= control target key end

     0   :  { %s2635_s15 = smov 0   ;;  %s2637_s16 = smov 0   ;;  %s3220_s0 = inlined_call_operand.vmem [shape: bf16[256,256], index: 0, kind: input, shape index: {}]   ;;  %s3221_s1 = inlined_call_operand.vmem [shape: bf16[256,512], index: 1, kind: input, shape index: {}]   ;;  %s3222_s2 = inlined_call_operand.vmem [shape: f32[256,4], index: 2, kind: input, shape index: {}]   ;;  %s3223_s3 = inlined_call_operand.vmem [shape: bf16[256,512], index: 3, kind: output, shape index: {0}]   ;;  %s3224_s4 = inlined_call_operand.vmem [shape: f32[256,128], index: 4, kind: output, shape index: {1}]  }
   0x1   :  { %s2639_s17 = smov 0  }
   0x2 LB: > { %s27_s18 = sadd.s32 1, %s2600_s16  ;;  %p2203_p0 = scmp.ge.s32.totalorder %s2604_s17, 1  ;;  %s2604_s17 = sphi %s2639_s17, %s15_s17   ;;  %s2600_s16 = sphi %s2637_s16, %s3230_s16   ;;  %s2596_s15 = sphi %s2635_s15, %s3229_s15  }
   0x3   : > { %p29_p1 = scmp.ge.s32.totalorder %s27_s18, 2  ;;  %p209_p2 = scmp.lt.s32.totalorder %s2604_s17, 3 }
   0x5   : > { %s3232_s18 = smov (%p29_p1, %s27_s18), 0  ;;  %p210_p3 = pnand %p2203_p0, %p209_p2 }
   0x7   : > { %213 = sbr.rel (%p210_p3) target bundleno = 342 (0x156), region = 32 }
   0xc   : > { %v2462_v0 = vld [vmem:[%s3221_s1 + $0xe4] ss:$16 sps:$4 sm:$0xff]   ;;  %v2464_v1 = vld [vmem:[%s3221_s1 + $0xec] ss:$16 sps:$4 sm:$0xff]   ;;  %v2606_v2 = vmov 0   ;;  %s2204_s25 = sshll.u32 %s2596_s15, 4 }
   0xd   : > { %2455 = vset.pattern.permute.xlu1 %v2606_v2  ;;  %2454 = vset.pattern.permute.xlu0 %v2606_v2  ;;  %v2466_v3 = vld [vmem:[%s3221_s1 + $0xe0] ss:$16 sps:$4 sm:$0xff]   ;;  %v2467_v4 = vld [vmem:[%s3221_s1 + $0xe8] ss:$16 sps:$4 sm:$0xff]   ;;  %v2468_v5 = vld [vmem:[%s3221_s1 + $0xc4] ss:$16 sps:$4 sm:$0xff]  }
   0xe   : > { %907 = vmatprep.subr.bf16.mxu0 %v2462_v0  ;;  %1020 = vmatprep.subr.bf16.mxu1 %v2464_v1  ;;  %v2470_v6 = vld [vmem:[%s3221_s1 + $0xcc] ss:$16 sps:$4 sm:$0xff]   ;;  %v2472_v7 = vld [vmem:[%s3221_s1 + $0xc0] ss:$16 sps:$4 sm:$0xff]   ;;  %v2473_v8 = vld [vmem:[%s3221_s1 + $0xc8] ss:$16 sps:$4 sm:$0xff]  }
   0xf   : > { %908 = vmatpush1.bf16.msra.mxu0 %v2466_v3  ;;  %1021 = vmatpush1.bf16.msra.mxu1 %v2467_v4  ;;  %v2474_v9 = vld [vmem:[%s3221_s1 + $0xa4] ss:$16 sps:$4 sm:$0xff]   ;;  %v2476_v10 = vld [vmem:[%s3221_s1 + $0xac] ss:$16 sps:$4 sm:$0xff]   ;;  %v2478_v11 = vld [vmem:[%s3221_s1 + $0xa0] ss:$16 sps:$4 sm:$0xff]  }
  0x10   : > { %909 = vmatprep.subr.bf16.mxu0 %v2468_v5  ;;  %1022 = vmatprep.subr.bf16.mxu1 %v2470_v6  ;;  %v2479_v12 = vld [vmem:[%s3221_s1 + $0xa8] ss:$16 sps:$4 sm:$0xff]   ;;  %v2480_v13 = vld [vmem:[%s3221_s1 + $0x84] ss:$16 sps:$4 sm:$0xff]   ;;  %v2482_v14 = vld [vmem:[%s3221_s1 + $0x8c] ss:$16 sps:$4 sm:$0xff]  }
  0x11   : > { %v2484_v15 = vld [vmem:[%s3221_s1 + $0x80] ss:$16 sps:$4 sm:$0xff]   ;;  %v2485_v16 = vld [vmem:[%s3221_s1 + $0x88] ss:$16 sps:$4 sm:$0xff]   ;;  %v2486_v17 = vld [vmem:[%s3221_s1 + $0x64] ss:$16 sps:$4 sm:$0xff]  }
  0x12   : > { %p259_p4 = scmp.lt.s32.totalorder %s2204_s25, 31  ;;  %v2488_v18 = vld [vmem:[%s3221_s1 + $0x6c] ss:$16 sps:$4 sm:$0xff]   ;;  %v2490_v19 = vld [vmem:[%s3221_s1 + $0x60] ss:$16 sps:$4 sm:$0xff]  }
  0x13   : > { %910 = vmatpush1.bf16.msra.mxu0 %v2472_v7  ;;  %1023 = vmatpush1.bf16.msra.mxu1 %v2473_v8  ;;  %v2491_v20 = vld [vmem:[%s3221_s1 + $0x68] ss:$16 sps:$4 sm:$0xff]   ;;  %v2492_v21 = vld [vmem:[%s3221_s1 + $0x44] ss:$16 sps:$4 sm:$0xff]   ;;  %v2494_v22 = vld [vmem:[%s3221_s1 + $0x4c] ss:$16 sps:$4 sm:$0xff]  }
  0x14   : > { %911 = vmatprep.subr.bf16.mxu0 %v2474_v9  ;;  %1024 = vmatprep.subr.bf16.mxu1 %v2476_v10  ;;  %s3234_s25 = smov (!%p259_p4, %s2204_s25), 31  ;;  %v2496_v23 = vld [vmem:[%s3221_s1 + $0x40] ss:$16 sps:$4 sm:$0xff]   ;;  %v2497_v24 = vld [vmem:[%s3221_s1 + $0x48] ss:$16 sps:$4 sm:$0xff]  }
  0x15   : > { %v2498_v25 = vld [vmem:[%s3221_s1 + $0x24] ss:$16 sps:$4 sm:$0xff]   ;;  %s2734_s26 = sshll.u32 %s3234_s25, 3  ;;  %v2500_v26 = vld [vmem:[%s3221_s1 + $0x2c] ss:$16 sps:$4 sm:$0xff]  }
  0x16   : > { %v2502_v27 = vld [vmem:[%s3221_s1 + $0x20] ss:$16 sps:$4 sm:$0xff]   ;;  %v2503_v28 = vld [vmem:[%s3221_s1 + $0x28] ss:$16 sps:$4 sm:$0xff]   ;;  %s2749_s8 = scalar_lea.vmem %s3222_s2, %s2734_s26  ;;  %v2504_v29 = vld [vmem:[%s3221_s1 + $0x4] ss:$16 sps:$4 sm:$0xff]   ;;  %s2863_s19 = scalar_lea.vmem %s3220_s0, %s2734_s26 }
  0x17   : > { %912 = vmatpush1.bf16.msra.mxu0 %v2478_v11  ;;  %1025 = vmatpush1.bf16.msra.mxu1 %v2479_v12  ;;  %v2506_v30 = vld [vmem:[%s3221_s1 + $0xc] ss:$16 sps:$4 sm:$0xff]   ;;  %v2758_v31 = vld [vmem:[%s2749_s8 + $0x10] sm:$0xff]  ;;  %v2509_v33 = vld [vmem:[%s3221_s1 + $0x8] ss:$16 sps:$4 sm:$0xff]   ;;  %s3092_s15 = scalar_lea.vmem %s3224_s4, %s2734_s26 }
  0x18   : > { %913 = vmatprep.subr.bf16.mxu0 %v2480_v13  ;;  %1026 = vmatprep.subr.bf16.mxu1 %v2482_v14  ;;  %v2508_v32 = vld [vmem:[%s3221_s1] ss:$16 sps:$4 sm:$0xff]   ;;  %v2510_v34 = vld [vmem:[%s3221_s1 + $0x1e4] ss:$16 sps:$4 sm:$0xff]   ;;  %v2512_v35 = vld [vmem:[%s3221_s1 + $0x1ec] ss:$16 sps:$4 sm:$0xff]  }
  0x19   : > { %1308 = vperm.xlu1 %2455, %v2758_v31   ;;  %v2774_v36 = vld [vmem:[%s2749_s8 + $0x18] sm:$0xff]  ;;  %v2777_v37 = vld [vmem:[%s2749_s8] sm:$0xff]  ;;  %v2791_v41 = vld [vmem:[%s2749_s8 + $0x28] sm:$0xff] }
  0x1a   : > { %v2514_v38 = vld [vmem:[%s3221_s1 + $0x1e0] ss:$16 sps:$4 sm:$0xff]   ;;  %1298 = vperm.xlu0 %2454, %v2777_v37   ;;  %v2515_v39 = vld [vmem:[%s3221_s1 + $0x1e8] ss:$16 sps:$4 sm:$0xff]   ;;  %v2516_v40 = vld [vmem:[%s3221_s1 + $0x1c4] ss:$16 sps:$4 sm:$0xff]  }
  0x1b   : > { %914 = vmatpush1.bf16.msra.mxu0 %v2484_v15  ;;  %1027 = vmatpush1.bf16.msra.mxu1 %v2485_v16  ;;  %v2518_v42 = vld [vmem:[%s3221_s1 + $0x1cc] ss:$16 sps:$4 sm:$0xff]   ;;  %v2520_v44 = vld [vmem:[%s3221_s1 + $0x1c0] ss:$16 sps:$4 sm:$0xff]   ;;  %v2521_v45 = vld [vmem:[%s3221_s1 + $0x1c8] ss:$16 sps:$4 sm:$0xff]  }
  0x1c   : > { %915 = vmatprep.subr.bf16.mxu0 %v2486_v17  ;;  %1028 = vmatprep.subr.bf16.mxu1 %v2488_v18  ;;  %v2797_v43 = vld [vmem:[%s2749_s8 + $0x8] sm:$0xff]  ;;  %v2522_v46 = vld [vmem:[%s3221_s1 + $0x1a4] ss:$16 sps:$4 sm:$0xff]   ;;  %v2811_v47 = vld [vmem:[%s2749_s8 + $0x38] sm:$0xff]  ;;  %v2607_v16 = vmov 1  }
  0x1d   : > { %1313 = vperm.xlu1 %2455, %v2774_v36   ;;  %v2814_v48 = vld [vmem:[%s2749_s8 + $0x20] sm:$0xff]  ;;  %v2524_v49 = vld [vmem:[%s3221_s1 + $0x1ac] ss:$16 sps:$4 sm:$0xff]   ;;  %v2527_v51 = vld [vmem:[%s3221_s1 + $0x1a8] ss:$16 sps:$4 sm:$0xff]  }
  0x1e   : > { %1303 = vperm.xlu0 %2454, %v2797_v43   ;;  %v2526_v50 = vld [vmem:[%s3221_s1 + $0x1a0] ss:$16 sps:$4 sm:$0xff]   ;;  %v2528_v52 = vld [vmem:[%s3221_s1 + $0x184] ss:$16 sps:$4 sm:$0xff]   ;;  %v2831_v53 = vld [vmem:[%s2749_s8 + $0x48] sm:$0xff] }
  0x1f   : > { %916 = vmatpush1.bf16.msra.mxu0 %v2490_v19  ;;  %1029 = vmatpush1.bf16.msra.mxu1 %v2491_v20  ;;  %v2834_v54 = vld [vmem:[%s2749_s8 + $0x30] sm:$0xff]  ;;  %v2530_v55 = vld [vmem:[%s3221_s1 + $0x18c] ss:$16 sps:$4 sm:$0xff]   ;;  %v2533_v57 = vld [vmem:[%s3221_s1 + $0x188] ss:$16 sps:$4 sm:$0xff]  }
  0x20   : > { %917 = vmatprep.subr.bf16.mxu0 %v2492_v21  ;;  %1030 = vmatprep.subr.bf16.mxu1 %v2494_v22  ;;  %v2532_v56 = vld [vmem:[%s3221_s1 + $0x180] ss:$16 sps:$4 sm:$0xff]   ;;  %v2848_v58 = vld [vmem:[%s2749_s8 + $0x58] sm:$0xff]  ;;  %v2534_v60 = vld [vmem:[%s3221_s1 + $0x164] ss:$16 sps:$4 sm:$0xff]  }
  0x21   : > { %1323 = vperm.xlu1 %2455, %v2791_v41   ;;  %v2851_v59 = vld [vmem:[%s2749_s8 + $0x40] sm:$0xff]  ;;  %v2536_v61 = vld [vmem:[%s3221_s1 + $0x16c] ss:$16 sps:$4 sm:$0xff]   ;;  %v2539_v63 = vld [vmem:[%s3221_s1 + $0x168] ss:$16 sps:$4 sm:$0xff]  }
  0x22   : > { %1318 = vperm.xlu0 %2454, %v2814_v48   ;;  %v2538_v62 = vld [vmem:[%s3221_s1 + $0x160] ss:$16 sps:$4 sm:$0xff]   ;;  %v2540_v0 = vld [vmem:[%s3221_s1 + $0x144] ss:$16 sps:$4 sm:$0xff]   ;;  %v2877_v1 = vld [vmem:[%s2749_s8 + $0x68] sm:$0xff] }
  0x23   : > { %918 = vmatpush1.bf16.msra.mxu0 %v2496_v23  ;;  %1031 = vmatpush1.bf16.msra.mxu1 %v2497_v24  ;;  %v2880_v2 = vld [vmem:[%s2749_s8 + $0x50] sm:$0xff]  ;;  %v2560_v3 = vld [vmem:[%s2863_s19 + $0x4] ss:$8 sps:$4 sm:$0xff]   ;;  %v2545_v6 = vld [vmem:[%s3221_s1 + $0x148] ss:$16 sps:$4 sm:$0xff]  }
  0x24   : > { %919 = vmatprep.subr.bf16.mxu0 %v2498_v25  ;;  %1032 = vmatprep.subr.bf16.mxu1 %v2500_v26  ;;  %v2542_v4 = vld [vmem:[%s3221_s1 + $0x14c] ss:$16 sps:$4 sm:$0xff]   ;;  %v2544_v5 = vld [vmem:[%s3221_s1 + $0x140] ss:$16 sps:$4 sm:$0xff]   ;;  %v2546_v7 = vld [vmem:[%s3221_s1 + $0x124] ss:$16 sps:$4 sm:$0xff]  }
  0x25   : > { %1333 = vperm.xlu1 %2455, %v2811_v47   ;;  %939 = vmatprep.mubr.bf16.mxu0 %v2560_v3  ;;  %v2898_v8 = vld [vmem:[%s2749_s8 + $0x78] sm:$0xff]  ;;  %v2901_v9 = vld [vmem:[%s2749_s8 + $0x60] sm:$0xff]  ;;  %v2918_v14 = vld [vmem:[%s2749_s8 + $0x70] sm:$0xff] }
  0x26   : > { %1328 = vperm.xlu0 %2454, %v2834_v54   ;;  %1052 = vmatprep.mubr.bf16.mxu1 %v2560_v3  ;;  %v2548_v10 = vld [vmem:[%s3221_s1 + $0x12c] ss:$16 sps:$4 sm:$0xff]   ;;  %v2550_v11 = vld [vmem:[%s3221_s1 + $0x120] ss:$16 sps:$4 sm:$0xff]   ;;  %v2551_v12 = vld [vmem:[%s3221_s1 + $0x128] ss:$16 sps:$4 sm:$0xff]  }
  0x27   : > { %920 = vmatpush1.bf16.msra.mxu0 %v2502_v27  ;;  %1033 = vmatpush1.bf16.msra.mxu1 %v2503_v28  ;;  %v2552_v13 = vld [vmem:[%s3221_s1 + $0x104] ss:$16 sps:$4 sm:$0xff]   ;;  %v2554_v15 = vld [vmem:[%s3221_s1 + $0x10c] ss:$16 sps:$4 sm:$0xff]   ;;  %v2556_v17 = vld [vmem:[%s3221_s1 + $0x100] ss:$16 sps:$4 sm:$0xff]  }
  0x28   : > { %921 = vmatprep.subr.bf16.mxu0 %v2504_v29  ;;  %1034 = vmatprep.subr.bf16.mxu1 %v2506_v30  ;;  %v2557_v18 = vld [vmem:[%s3221_s1 + $0x108] ss:$16 sps:$4 sm:$0xff]   ;;  %v2561_v20 = vld [vmem:[%s2863_s19 + $0x14] ss:$8 sps:$4 sm:$0xff]   ;;  %v2564_v22 = vld [vmem:[%s2863_s19 + $0x24] ss:$8 sps:$4 sm:$0xff]  }
  0x29   : > { %1343 = vperm.xlu1 %2455, %v2831_v53   ;;  %v2558_v19 = vld [vmem:[%s2863_s19] ss:$8 sps:$4 sm:$0xff]   ;;  %v2563_v21 = vld [vmem:[%s2863_s19 + $0x10] ss:$8 sps:$4 sm:$0xff]   ;;  %v2567_v24 = vld [vmem:[%s2863_s19 + $0x34] ss:$8 sps:$4 sm:$0xff]  }
  0x2a   : > { %1338 = vperm.xlu0 %2454, %v2851_v59   ;;  %v2566_v23 = vld [vmem:[%s2863_s19 + $0x20] ss:$8 sps:$4 sm:$0xff]   ;;  %v2569_v25 = vld [vmem:[%s2863_s19 + $0x30] ss:$8 sps:$4 sm:$0xff]   ;;  %v2570_v26 = vld [vmem:[%s2863_s19 + $0x44] ss:$8 sps:$4 sm:$0xff]  }
  0x2b   : > { %922 = vmatpush1.bf16.msra.mxu0 %v2508_v32  ;;  %1035 = vmatpush1.bf16.msra.mxu1 %v2509_v33  ;;  %v2608_v27 = vmov 2   ;;  %v2572_v28 = vld [vmem:[%s2863_s19 + $0x40] ss:$8 sps:$4 sm:$0xff]   ;;  %v2573_v29 = vld [vmem:[%s2863_s19 + $0x54] ss:$8 sps:$4 sm:$0xff]  }
  0x2c   : > { %923 = vmatprep.subr.bf16.mxu0 %v2510_v34  ;;  %1036 = vmatprep.subr.bf16.mxu1 %v2512_v35  ;;  %v2575_v30 = vld [vmem:[%s2863_s19 + $0x50] ss:$8 sps:$4 sm:$0xff]   ;;  %v2576_v32 = vld [vmem:[%s2863_s19 + $0x64] ss:$8 sps:$4 sm:$0xff]   ;;  %v2578_v33 = vld [vmem:[%s2863_s19 + $0x60] ss:$8 sps:$4 sm:$0xff]  }
  0x2d   : > { %1353 = vperm.xlu1 %2455, %v2848_v58   ;;  %v2579_v34 = vld [vmem:[%s2863_s19 + $0x74] ss:$8 sps:$4 sm:$0xff]   ;;  %v2581_v35 = vld [vmem:[%s2863_s19 + $0x70] ss:$8 sps:$4 sm:$0xff]   ;;  %s2361_s19 = sshll.u32 %s3234_s25, 4 }
  0x2e   : > { %1348 = vperm.xlu0 %2454, %v2880_v2   ;;  %s3081_s6 = scalar_lea.vmem %s3223_s3, %s2361_s19 }
  0x2f   : > { %924 = vmatpush2.bf16.msra.mxu0 %v2514_v38  ;;  %1037 = vmatpush2.bf16.msra.mxu1 %v2515_v39  ;;  %v2609_v38 = vmov 3  }
  0x30   : > { %925 = vmatprep.subr.bf16.mxu0 %v2516_v40  ;;  %1038 = vmatprep.subr.bf16.mxu1 %v2518_v42 }
  0x31   : > { %1363 = vperm.xlu1 %2455, %v2877_v1  }
  0x32   : > { %1358 = vperm.xlu0 %2454, %v2901_v9  }
  0x33   : > { %926 = vmatpush2.bf16.msra.mxu0 %v2520_v44  ;;  %1039 = vmatpush2.bf16.msra.mxu1 %v2521_v45 }
  0x34   : > { %927 = vmatprep.subr.bf16.mxu0 %v2522_v46  ;;  %1040 = vmatprep.subr.bf16.mxu1 %v2524_v49 }
  0x35   : > { %1373 = vperm.xlu1 %2455, %v2898_v8  }
  0x36   : > { %1368 = vperm.xlu0 %2454, %v2918_v14  }
  0x37   : > { %928 = vmatpush2.bf16.msra.mxu0 %v2526_v50  ;;  %1041 = vmatpush2.bf16.msra.mxu1 %v2527_v51 }
  0x38   : > { %929 = vmatprep.subr.bf16.mxu0 %v2528_v52  ;;  %1042 = vmatprep.subr.bf16.mxu1 %v2530_v55 }
  0x39   : > { %2457 = vset.pattern.permute.xlu1 %v2607_v16 }
  0x3a   : > { %1493 = vperm.xlu1 %2457, %v2797_v43   ;;  %2456 = vset.pattern.permute.xlu0 %v2607_v16 }
  0x3b   : > { %930 = vmatpush2.bf16.msra.mxu0 %v2532_v56  ;;  %1043 = vmatpush2.bf16.msra.mxu1 %v2533_v57 }
  0x3c   : > { %931 = vmatprep.subr.bf16.mxu0 %v2534_v60  ;;  %1044 = vmatprep.subr.bf16.mxu1 %v2536_v61 }
  0x3d   : > { %1489 = vperm.xlu0 %2456, %v2777_v37  }
  0x3e   : > { %1497 = vperm.xlu1 %2457, %v2758_v31  }
  0x3f   : > { %932 = vmatpush2.bf16.msra.mxu0 %v2538_v62  ;;  %1045 = vmatpush2.bf16.msra.mxu1 %v2539_v63 }
  0x40   : > { %933 = vmatprep.subr.bf16.mxu0 %v2540_v0  ;;  %1046 = vmatprep.subr.bf16.mxu1 %v2542_v4 }
  0x41   : > { %1501 = vperm.xlu0 %2456, %v2774_v36  }
  0x42   : > { %1505 = vperm.xlu1 %2457, %v2814_v48  }
  0x43   : > { %934 = vmatpush2.bf16.msra.mxu0 %v2544_v5  ;;  %1047 = vmatpush2.bf16.msra.mxu1 %v2545_v6 }
  0x44   : > { %935 = vmatprep.subr.bf16.mxu0 %v2546_v7  ;;  %1048 = vmatprep.subr.bf16.mxu1 %v2548_v10 }
  0x45   : > { %1509 = vperm.xlu0 %2456, %v2791_v41  }
  0x46   : > { %1513 = vperm.xlu1 %2457, %v2834_v54  }
  0x47   : > { %936 = vmatpush2.bf16.msra.mxu0 %v2550_v11  ;;  %1049 = vmatpush2.bf16.msra.mxu1 %v2551_v12 }
  0x48   : > { %937 = vmatprep.subr.bf16.mxu0 %v2552_v13  ;;  %1050 = vmatprep.subr.bf16.mxu1 %v2554_v15 }
  0x49   : > { %1517 = vperm.xlu0 %2456, %v2811_v47  }
  0x4a   : > { %1521 = vperm.xlu1 %2457, %v2851_v59  }
  0x4b   : > { %938 = vmatpush2.bf16.msra.mxu0 %v2556_v17  ;;  %1051 = vmatpush2.bf16.msra.mxu1 %v2557_v18 }
  0x4d   : > { %1525 = vperm.xlu0 %2456, %v2831_v53  }
  0x4e   : > { %940 = vmatmul.mubr.bf16.vlgmr.msra.gmra.mxu0 %v2558_v19  ;;  %1053 = vmatmul.mubr.bf16.vlgmr.msra.gmra.mxu1 %v2558_v19 }
  0x4f   : > { %949 = vmatprep.mubr.bf16.mxu0 %v2561_v20  ;;  %1062 = vmatprep.mubr.bf16.mxu1 %v2561_v20 }
  0x50   : > { %1529 = vperm.xlu1 %2457, %v2880_v2  }
  0x51   : > { %1533 = vperm.xlu0 %2456, %v2848_v58  }
  0x54   : > { %1537 = vperm.xlu1 %2457, %v2901_v9  }
  0x55   : > { %1541 = vperm.xlu0 %2456, %v2877_v1  }
  0x56   : > { %950 = vmatmul.mubr.bf16.gmra.mxu0 %v2563_v21  ;;  %1063 = vmatmul.mubr.bf16.gmra.mxu1 %v2563_v21 }
  0x57   : > { %959 = vmatprep.mubr.bf16.mxu0 %v2564_v22  ;;  %1072 = vmatprep.mubr.bf16.mxu1 %v2564_v22 }
  0x58   : > { %1545 = vperm.xlu1 %2457, %v2918_v14  }
  0x59   : > { %1549 = vperm.xlu0 %2456, %v2898_v8  }
  0x5c   : > { %2458 = vset.pattern.permute.xlu1 %v2608_v27 }
  0x5d   : > { %1681 = vperm.xlu1 %2458, %v2777_v37   ;;  %2459 = vset.pattern.permute.xlu0 %v2608_v27 }
  0x5e   : > { %960 = vmatmul.mubr.bf16.gmra.mxu0 %v2566_v23  ;;  %1073 = vmatmul.mubr.bf16.gmra.mxu1 %v2566_v23 }
  0x5f   : > { %969 = vmatprep.mubr.bf16.mxu0 %v2567_v24  ;;  %1082 = vmatprep.mubr.bf16.mxu1 %v2567_v24 }
  0x60   : > { %1685 = vperm.xlu0 %2459, %v2797_v43  }
  0x61   : > { %1689 = vperm.xlu1 %2458, %v2758_v31  }
  0x64   : > { %1697 = vperm.xlu0 %2459, %v2814_v48  }
  0x65   : > { %1693 = vperm.xlu1 %2458, %v2774_v36  }
  0x66   : > { %970 = vmatmul.mubr.bf16.gmra.mxu0 %v2569_v25  ;;  %1083 = vmatmul.mubr.bf16.gmra.mxu1 %v2569_v25 }
  0x67   : > { %979 = vmatprep.mubr.bf16.mxu0 %v2570_v26  ;;  %1092 = vmatprep.mubr.bf16.mxu1 %v2570_v26 }
  0x68   : > { %1705 = vperm.xlu0 %2459, %v2834_v54  }
  0x69   : > { %1701 = vperm.xlu1 %2458, %v2791_v41  }
  0x6c   : > { %1713 = vperm.xlu0 %2459, %v2851_v59  }
  0x6d   : > { %1709 = vperm.xlu1 %2458, %v2811_v47  }
  0x6e   : > { %980 = vmatmul.mubr.bf16.gmra.mxu0 %v2572_v28  ;;  %1093 = vmatmul.mubr.bf16.gmra.mxu1 %v2572_v28 }
  0x6f   : > { %989 = vmatprep.mubr.bf16.mxu0 %v2573_v29  ;;  %1102 = vmatprep.mubr.bf16.mxu1 %v2573_v29 }
  0x70   : > { %1721 = vperm.xlu0 %2459, %v2880_v2  }
  0x71   : > { %1717 = vperm.xlu1 %2458, %v2831_v53  }
  0x74   : > { %1729 = vperm.xlu0 %2459, %v2901_v9  }
  0x75   : > { %1725 = vperm.xlu1 %2458, %v2848_v58  }
  0x76   : > { %990 = vmatmul.mubr.bf16.gmra.mxu0 %v2575_v30  ;;  %1103 = vmatmul.mubr.bf16.gmra.mxu1 %v2575_v30 }
  0x77   : > { %999 = vmatprep.mubr.bf16.mxu0 %v2576_v32  ;;  %1112 = vmatprep.mubr.bf16.mxu1 %v2576_v32 }
  0x78   : > { %1737 = vperm.xlu0 %2459, %v2918_v14  }
  0x79   : > { %1733 = vperm.xlu1 %2458, %v2877_v1  }
  0x7c   : > { %2460 = vset.pattern.permute.xlu0 %v2609_v38 }
  0x7d   : > { %1873 = vperm.xlu0 %2460, %v2777_v37   ;;  %1741 = vperm.xlu1 %2458, %v2898_v8  }
  0x7e   : > { %1000 = vmatmul.mubr.bf16.gmra.mxu0 %v2578_v33  ;;  %1113 = vmatmul.mubr.bf16.gmra.mxu1 %v2578_v33 }
  0x7f   : > { %1009 = vmatprep.mubr.bf16.mxu0 %v2579_v34  ;;  %1122 = vmatprep.mubr.bf16.mxu1 %v2579_v34 }
  0x81   : > { %1885 = vperm.xlu0 %2460, %v2774_v36   ;;  %2461 = vset.pattern.permute.xlu1 %v2609_v38 }
  0x82   : > { %1877 = vperm.xlu1 %2461, %v2797_v43  }
  0x85   : > { %1893 = vperm.xlu0 %2460, %v2791_v41  }
  0x86   : > { %1010 = vmatmul.mubr.bf16.gmra.mxu0 %v2581_v35  ;;  %1123 = vmatmul.mubr.bf16.gmra.mxu1 %v2581_v35 }
  0x87   : > { %1881 = vperm.xlu1 %2461, %v2758_v31  }
  0x89   : > { %1901 = vperm.xlu0 %2460, %v2811_v47  }
  0x8b   : > { %1889 = vperm.xlu1 %2461, %v2814_v48  }
  0x8d   : > { %1909 = vperm.xlu0 %2460, %v2831_v53  }
  0x8f   : > { %1897 = vperm.xlu1 %2461, %v2834_v54  }
  0x91   : > { %1917 = vperm.xlu0 %2460, %v2848_v58  }
  0x93   : > { %1905 = vperm.xlu1 %2461, %v2851_v59  }
  0x94   : > { %v2988_v36 = vpop.permute.xlu1 %1308 }
  0x95   : > { %1925 = vperm.xlu0 %2460, %v2877_v1   ;;  %v1299_v31 = vpop.permute.xlu0 %1298 }
  0x97   : > { %1913 = vperm.xlu1 %2461, %v2880_v2  }
  0x98   : > { %v2992_v37 = vpop.permute.xlu1 %1313 }
  0x99   : > { %1933 = vperm.xlu0 %2460, %v2898_v8   ;;  %v2998_v40 = vpop.permute.xlu0 %1303 }
  0x9b   : > { %1921 = vperm.xlu1 %2461, %v2901_v9  }
  0x9c   : > { %v2996_v39 = vpop.permute.xlu1 %1323 }
  0x9d   : > { %v3003_v42 = vpop.permute.xlu0 %1318 }
  0x9f   : > { %1929 = vperm.xlu1 %2461, %v2918_v14  }
  0xa0   : > { %v3001_v41 = vpop.permute.xlu1 %1333 }
  0xa1   : > { %v3007_v44 = vpop.permute.xlu0 %1328 }
  0xa4   : > { %v3005_v43 = vpop.permute.xlu1 %1343 }
  0xa5   : > { %v3011_v46 = vpop.permute.xlu0 %1338 }
  0xa8   : > { %v3009_v45 = vpop.permute.xlu1 %1353 }
  0xa9   : > { %v3015_v48 = vpop.permute.xlu0 %1348 }
  0xac   : > { %v3013_v47 = vpop.permute.xlu1 %1363 }
  0xad   : > { %v3017_v49 = vpop.permute.xlu0 %1358 }
  0xb0   : > { %v3019_v50 = vpop.permute.xlu1 %1373 }
  0xb1   : > { %v3021_v51 = vpop.permute.xlu0 %1368 }
  0xb5   : > { %v1494_v52 = vpop.permute.xlu1 %1493 }
  0xb8   : > { %v1490_v53 = vpop.permute.xlu0 %1489 }
  0xb9   : > { %v3023_v54 = vpop.permute.xlu1 %1497 }
  0xbc   : > { %v3025_v55 = vpop.permute.xlu0 %1501 }
  0xbd   : > { %v3027_v56 = vpop.permute.xlu1 %1505 }
  0xc0   : > { %v3029_v57 = vpop.permute.xlu0 %1509 }
  0xc1   : > { %v3031_v58 = vpop.permute.xlu1 %1513 }
  0xc4   : > { %v3033_v59 = vpop.permute.xlu0 %1517 }
  0xc5   : > { %v3035_v60 = vpop.permute.xlu1 %1521 }
  0xc8   : > { %v3037_v61 = vpop.permute.xlu0 %1525 }
  0xcb   : > { %v3039_v62 = vpop.permute.xlu1 %1529 }
  0xcc   : > { %v3041_v63 = vpop.permute.xlu0 %1533 }
  0xcf   : > { %v3043_v0 = vpop.permute.xlu1 %1537 }
  0xd0   : > { %v3045_v1 = vpop.permute.xlu0 %1541 }
  0xd3   : > { %v3047_v2 = vpop.permute.xlu1 %1545 }
  0xd4   : > { %v3049_v3 = vpop.permute.xlu0 %1549 }
  0xd5   : > { %3225 = vst [vmem:[#allocation3_spill] sm:$0xff] %v3049_v3 }
  0xd8   : > { %v1682_v4 = vpop.permute.xlu1 %1681 }
  0xdb   : > { %v1686_v5 = vpop.permute.xlu0 %1685 }
  0xdc   : > { %v1690_v6 = vpop.permute.xlu1 %1689 }
  0xdf   : > { %v3051_v7 = vpop.permute.xlu0 %1697 }
  0xe0   : > { %v3053_v8 = vpop.permute.xlu1 %1693 }
  0xe3   : > { %v3055_v9 = vpop.permute.xlu0 %1705 }
  0xe4   : > { %v3057_v10 = vpop.permute.xlu1 %1701 }
  0xe7   : > { %v3059_v11 = vpop.permute.xlu0 %1713 }
  0xe8   : > { %v3061_v12 = vpop.permute.xlu1 %1709 }
  0xeb   : > { %v3065_v14 = vpop.permute.xlu0 %1721 }
  0xec   : > { %v3063_v13 = vpop.permute.xlu1 %1717 }
  0xef   : > { %v3069_v16 = vpop.permute.xlu0 %1729 }
  0xf0   : > { %v3067_v15 = vpop.permute.xlu1 %1725 }
  0xf3   : > { %v3073_v18 = vpop.permute.xlu0 %1737 }
  0xf4   : > { %v3071_v17 = vpop.permute.xlu1 %1733 }
  0xf8   : > { %v3075_v19 = vpop.permute.xlu1 %1741  ;;  %v1874_v20 = vpop.permute.xlu0 %1873 }
  0xf9   : > { %3226 = vst [vmem:[#allocation4_spill] sm:$0xff] %v3075_v19 }
  0xfd   : > { %v1878_v32 = vpop.permute.xlu1 %1877 }
 0x102   : > { %v1882_v19 = vpop.permute.xlu1 %1881 }
 0x10e   : > { %v941_v21 = vpop.f32.mrf.mxu0  ;;  %v1054_v22 = vpop.f32.mrf.mxu1 }
 0x10f   : > { %v1376_v23 = vmul.f32 %v1299_v31, %v941_v21  ;;  %v1744_v24 = vmul.f32 %v1682_v4, %v1054_v22 }
 0x110   : > { %v943_v25 = vpop.f32.mrf.mxu0  ;;  %v1056_v26 = vpop.f32.mrf.mxu1 }
 0x111   : > { %v2362_v27 = vpack.c.bf16 %v1376_v23, %v1376_v23  ;;  %v2394_v28 = vpack.c.bf16 %v1744_v24, %v1744_v24  ;;  %v1552_v29 = vmul.f32 %v1490_v53, %v943_v25  ;;  %v1936_v30 = vmul.f32 %v1874_v20, %v1056_v26 }
 0x112   : > { %v945_v33 = vpop.f32.mrf.mxu0  ;;  %v1058_v34 = vpop.f32.mrf.mxu1 }
 0x113   : > { %1456 = vst [vmem:[%s3081_s6] sm:$0xf] %v2362_v27  ;;  %1824 = vst [vmem:[%s3081_s6 + $0x8] sm:$0xf] %v2394_v28  ;;  %v2378_v35 = vpack.c.bf16 %v1552_v29, %v1552_v29  ;;  %v1648_v38 = vadd.f32 %v1552_v29, %v1376_v23  ;;  %v2410_v31 = vpack.c.bf16 %v1936_v30, %v1936_v30 }
 0x114   : > { %v1377_v4 = vmul.f32 %v2998_v40, %v945_v33  ;;  %v1745_v21 = vmul.f32 %v1686_v5, %v1058_v34  ;;  %v947_v22 = vpop.f32.mrf.mxu0  ;;  %v1060_v3 = vpop.f32.mrf.mxu1 }
 0x115   : > { %1632 = vst [vmem:[%s3081_s6 + $0x4] sm:$0xf] %v2378_v35  ;;  %v1840_v53 = vadd.f32 %v1744_v24, %v1648_v38  ;;  %2016 = vst [vmem:[%s3081_s6 + $0xc] sm:$0xf] %v2410_v31  ;;  %v1553_v25 = vmul.f32 %v1494_v52, %v947_v22  ;;  %v1937_v26 = vmul.f32 %v1878_v32, %v1060_v3 }
 0x116   : > { %v2363_v20 = vpack.c.bf16 %v1377_v4, %v1377_v4  ;;  %v2395_v40 = vpack.c.bf16 %v1745_v21, %v1745_v21  ;;  %v951_v5 = vpop.f32.mrf.mxu0  ;;  %v1064_v23 = vpop.f32.mrf.mxu1 }
 0x117   : > { %v2032_v27 = vadd.f32 %v1936_v30, %v1840_v53  ;;  %v2379_v28 = vpack.c.bf16 %v1553_v25, %v1553_v25  ;;  %v1649_v24 = vadd.f32 %v1553_v25, %v1377_v4  ;;  %v2411_v29 = vpack.c.bf16 %v1937_v26, %v1937_v26  ;;  %v1886_v30 = vpop.permute.xlu0 %1885 }
 0x118   : > { %1457 = vst [vmem:[%s3081_s6 + $0x10] sm:$0xf] %v2363_v20  ;;  %1825 = vst [vmem:[%s3081_s6 + $0x18] sm:$0xf] %v2395_v40  ;;  %v1378_v52 = vmul.f32 %v2988_v36, %v951_v5  ;;  %v1746_v3 = vmul.f32 %v1690_v6, %v1064_v23  ;;  %v953_v32 = vpop.f32.mrf.mxu0  ;;  %v1066_v33 = vpop.f32.mrf.mxu1 }
 0x119   : > { %2048 = vst [vmem:[%s3092_s15] sm:$0xff] %v2032_v27  ;;  %1633 = vst [vmem:[%s3081_s6 + $0x14] sm:$0xf] %v2379_v28  ;;  %v1841_v34 = vadd.f32 %v1745_v21, %v1649_v24  ;;  %v1554_v35 = vmul.f32 %v3023_v54, %v953_v32  ;;  %v1938_v38 = vmul.f32 %v1882_v19, %v1066_v33  ;;  %v1890_v33 = vpop.permute.xlu1 %1889 }
 0x11a   : > { %2017 = vst [vmem:[%s3081_s6 + $0x1c] sm:$0xf] %v2411_v29  ;;  %v2364_v31 = vpack.c.bf16 %v1378_v52, %v1378_v52  ;;  %v2396_v4 = vpack.c.bf16 %v1746_v3, %v1746_v3  ;;  %v955_v22 = vpop.f32.mrf.mxu0  ;;  %v1068_v36 = vpop.f32.mrf.mxu1 }
 0x11b   : > { %v2033_v6 = vadd.f32 %v1937_v26, %v1841_v34  ;;  %v2380_v53 = vpack.c.bf16 %v1554_v35, %v1554_v35  ;;  %v1650_v20 = vadd.f32 %v1554_v35, %v1378_v52  ;;  %v2412_v25 = vpack.c.bf16 %v1938_v38, %v1938_v38 }
 0x11c   : > { %1458 = vst [vmem:[%s3081_s6 + $0x20] sm:$0xf] %v2364_v31  ;;  %1826 = vst [vmem:[%s3081_s6 + $0x28] sm:$0xf] %v2396_v4  ;;  %v1379_v21 = vmul.f32 %v2992_v37, %v955_v22  ;;  %v1747_v40 = vmul.f32 %v3053_v8, %v1068_v36  ;;  %v957_v54 = vpop.f32.mrf.mxu0  ;;  %v1070_v19 = vpop.f32.mrf.mxu1 }
 0x11d   : > { %2049 = vst [vmem:[%s3092_s15 + $0x8] sm:$0xff] %v2033_v6  ;;  %1634 = vst [vmem:[%s3081_s6 + $0x24] sm:$0xf] %v2380_v53  ;;  %v1842_v5 = vadd.f32 %v1746_v3, %v1650_v20  ;;  %v1555_v23 = vmul.f32 %v3025_v55, %v957_v54  ;;  %v1939_v26 = vmul.f32 %v1886_v30, %v1070_v19 }
 0x11e   : > { %2018 = vst [vmem:[%s3081_s6 + $0x2c] sm:$0xf] %v2412_v25  ;;  %v2365_v27 = vpack.c.bf16 %v1379_v21, %v1379_v21  ;;  %v2397_v28 = vpack.c.bf16 %v1747_v40, %v1747_v40  ;;  %v961_v24 = vpop.f32.mrf.mxu0  ;;  %v1074_v37 = vpop.f32.mrf.mxu1 }
 0x11f   : > { %v2034_v29 = vadd.f32 %v1938_v38, %v1842_v5  ;;  %v2381_v8 = vpack.c.bf16 %v1555_v23, %v1555_v23  ;;  %v1651_v52 = vadd.f32 %v1555_v23, %v1379_v21  ;;  %v2413_v32 = vpack.c.bf16 %v1939_v26, %v1939_v26 }
 0x120   : > { %1459 = vst [vmem:[%s3081_s6 + $0x30] sm:$0xf] %v2365_v27  ;;  %1827 = vst [vmem:[%s3081_s6 + $0x38] sm:$0xf] %v2397_v28  ;;  %v1380_v3 = vmul.f32 %v3003_v42, %v961_v24  ;;  %v1748_v34 = vmul.f32 %v3051_v7, %v1074_v37  ;;  %v963_v55 = vpop.f32.mrf.mxu0  ;;  %v1076_v35 = vpop.f32.mrf.mxu1 }
 0x121   : > { %2050 = vst [vmem:[%s3092_s15 + $0x10] sm:$0xff] %v2034_v29  ;;  %1635 = vst [vmem:[%s3081_s6 + $0x34] sm:$0xf] %v2381_v8  ;;  %v1843_v30 = vadd.f32 %v1747_v40, %v1651_v52  ;;  %v1556_v38 = vmul.f32 %v3027_v56, %v963_v55  ;;  %v1940_v31 = vmul.f32 %v1890_v33, %v1076_v35  ;;  %v1894_v7 = vpop.permute.xlu0 %1893 }
 0x122   : > { %2019 = vst [vmem:[%s3081_s6 + $0x3c] sm:$0xf] %v2413_v32  ;;  %v2366_v4 = vpack.c.bf16 %v1380_v3, %v1380_v3  ;;  %v2398_v22 = vpack.c.bf16 %v1748_v34, %v1748_v34  ;;  %v965_v36 = vpop.f32.mrf.mxu0  ;;  %v1078_v42 = vpop.f32.mrf.mxu1 }
 0x123   : > { %v2035_v6 = vadd.f32 %v1939_v26, %v1843_v30  ;;  %v2382_v53 = vpack.c.bf16 %v1556_v38, %v1556_v38  ;;  %v1652_v20 = vadd.f32 %v1556_v38, %v1380_v3  ;;  %v2414_v25 = vpack.c.bf16 %v1940_v31, %v1940_v31 }
 0x124   : > { %1460 = vst [vmem:[%s3081_s6 + $0x40] sm:$0xf] %v2366_v4  ;;  %1828 = vst [vmem:[%s3081_s6 + $0x48] sm:$0xf] %v2398_v22  ;;  %v1381_v21 = vmul.f32 %v2996_v39, %v965_v36  ;;  %v1749_v40 = vmul.f32 %v3057_v10, %v1078_v42  ;;  %v967_v56 = vpop.f32.mrf.mxu0  ;;  %v1080_v54 = vpop.f32.mrf.mxu1 }
 0x125   : > { %2051 = vst [vmem:[%s3092_s15 + $0x18] sm:$0xff] %v2035_v6  ;;  %1636 = vst [vmem:[%s3081_s6 + $0x44] sm:$0xf] %v2382_v53  ;;  %v1844_v19 = vadd.f32 %v1748_v34, %v1652_v20  ;;  %v1557_v5 = vmul.f32 %v3029_v57, %v967_v56  ;;  %v1941_v23 = vmul.f32 %v1894_v7, %v1080_v54  ;;  %v1898_v10 = vpop.permute.xlu1 %1897 }
 0x126   : > { %2020 = vst [vmem:[%s3081_s6 + $0x4c] sm:$0xf] %v2414_v25  ;;  %v2367_v26 = vpack.c.bf16 %v1381_v21, %v1381_v21  ;;  %v2399_v27 = vpack.c.bf16 %v1749_v40, %v1749_v40  ;;  %v971_v28 = vpop.f32.mrf.mxu0  ;;  %v1084_v39 = vpop.f32.mrf.mxu1 }
 0x127   : > { %v2036_v24 = vadd.f32 %v1940_v31, %v1844_v19  ;;  %v2383_v37 = vpack.c.bf16 %v1557_v5, %v1557_v5  ;;  %v1653_v29 = vadd.f32 %v1557_v5, %v1381_v21  ;;  %v2415_v8 = vpack.c.bf16 %v1941_v23, %v1941_v23  ;;  %v1902_v31 = vpop.permute.xlu0 %1901 }
 0x128   : > { %1461 = vst [vmem:[%s3081_s6 + $0x50] sm:$0xf] %v2367_v26  ;;  %1829 = vst [vmem:[%s3081_s6 + $0x58] sm:$0xf] %v2399_v27  ;;  %v1382_v52 = vmul.f32 %v3007_v44, %v971_v28  ;;  %v1750_v32 = vmul.f32 %v3055_v9, %v1084_v39  ;;  %v973_v57 = vpop.f32.mrf.mxu0  ;;  %v1086_v33 = vpop.f32.mrf.mxu1 }
 0x129   : > { %2052 = vst [vmem:[%s3092_s15 + $0x20] sm:$0xff] %v2036_v24  ;;  %1637 = vst [vmem:[%s3081_s6 + $0x54] sm:$0xf] %v2383_v37  ;;  %v1845_v3 = vadd.f32 %v1749_v40, %v1653_v29  ;;  %v1558_v34 = vmul.f32 %v3031_v58, %v973_v57  ;;  %v1942_v55 = vmul.f32 %v1898_v10, %v1086_v33  ;;  %v1906_v54 = vpop.permute.xlu1 %1905 }
 0x12a   : > { %2021 = vst [vmem:[%s3081_s6 + $0x5c] sm:$0xf] %v2415_v8  ;;  %v2368_v35 = vpack.c.bf16 %v1382_v52, %v1382_v52  ;;  %v2400_v30 = vpack.c.bf16 %v1750_v32, %v1750_v32  ;;  %v975_v38 = vpop.f32.mrf.mxu0  ;;  %v1088_v44 = vpop.f32.mrf.mxu1 }
 0x12b   : > { %v2037_v9 = vadd.f32 %v1941_v23, %v1845_v3  ;;  %v2384_v4 = vpack.c.bf16 %v1558_v34, %v1558_v34  ;;  %v1654_v22 = vadd.f32 %v1558_v34, %v1382_v52  ;;  %v2416_v36 = vpack.c.bf16 %v1942_v55, %v1942_v55  ;;  %v1910_v52 = vpop.permute.xlu0 %1909 }
 0x12c   : > { %1462 = vst [vmem:[%s3081_s6 + $0x60] sm:$0xf] %v2368_v35  ;;  %1830 = vst [vmem:[%s3081_s6 + $0x68] sm:$0xf] %v2400_v30  ;;  %v1383_v42 = vmul.f32 %v3001_v41, %v975_v38  ;;  %v1751_v6 = vmul.f32 %v3061_v12, %v1088_v44  ;;  %v977_v58 = vpop.f32.mrf.mxu0  ;;  %v1090_v7 = vpop.f32.mrf.mxu1 }
 0x12d   : > { %2053 = vst [vmem:[%s3092_s15 + $0x28] sm:$0xff] %v2037_v9  ;;  %1638 = vst [vmem:[%s3081_s6 + $0x64] sm:$0xf] %v2384_v4  ;;  %v1846_v53 = vadd.f32 %v1750_v32, %v1654_v22  ;;  %v1559_v20 = vmul.f32 %v3033_v59, %v977_v58  ;;  %v1943_v25 = vmul.f32 %v1902_v31, %v1090_v7  ;;  %v1914_v4 = vpop.permute.xlu1 %1913 }
 0x12e   : > { %2022 = vst [vmem:[%s3081_s6 + $0x6c] sm:$0xf] %v2416_v36  ;;  %v2369_v21 = vpack.c.bf16 %v1383_v42, %v1383_v42  ;;  %v2401_v40 = vpack.c.bf16 %v1751_v6, %v1751_v6  ;;  %v981_v56 = vpop.f32.mrf.mxu0  ;;  %v1094_v41 = vpop.f32.mrf.mxu1 }
 0x12f   : > { %v2038_v12 = vadd.f32 %v1942_v55, %v1846_v53  ;;  %v2385_v19 = vpack.c.bf16 %v1559_v20, %v1559_v20  ;;  %v1655_v5 = vadd.f32 %v1559_v20, %v1383_v42  ;;  %v2417_v23 = vpack.c.bf16 %v1943_v25, %v1943_v25 }
 0x130   : > { %1463 = vst [vmem:[%s3081_s6 + $0x70] sm:$0xf] %v2369_v21  ;;  %1831 = vst [vmem:[%s3081_s6 + $0x78] sm:$0xf] %v2401_v40  ;;  %v1384_v26 = vmul.f32 %v3011_v46, %v981_v56  ;;  %v1752_v27 = vmul.f32 %v3059_v11, %v1094_v41  ;;  %v983_v59 = vpop.f32.mrf.mxu0  ;;  %v1096_v28 = vpop.f32.mrf.mxu1 }
 0x131   : > { %2054 = vst [vmem:[%s3092_s15 + $0x30] sm:$0xff] %v2038_v12  ;;  %1639 = vst [vmem:[%s3081_s6 + $0x74] sm:$0xf] %v2385_v19  ;;  %v1847_v39 = vadd.f32 %v1751_v6, %v1655_v5  ;;  %v1560_v24 = vmul.f32 %v3035_v60, %v983_v59  ;;  %v1944_v10 = vmul.f32 %v1906_v54, %v1096_v28  ;;  %v1918_v41 = vpop.permute.xlu0 %1917 }
 0x132   : > { %2023 = vst [vmem:[%s3081_s6 + $0x7c] sm:$0xf] %v2417_v23  ;;  %v2370_v37 = vpack.c.bf16 %v1384_v26, %v1384_v26  ;;  %v2402_v29 = vpack.c.bf16 %v1752_v27, %v1752_v27  ;;  %v985_v8 = vpop.f32.mrf.mxu0  ;;  %v1098_v46 = vpop.f32.mrf.mxu1 }
 0x133   : > { %v2039_v11 = vadd.f32 %v1943_v25, %v1847_v39  ;;  %v2386_v32 = vpack.c.bf16 %v1560_v24, %v1560_v24  ;;  %v1656_v57 = vadd.f32 %v1560_v24, %v1384_v26  ;;  %v2418_v33 = vpack.c.bf16 %v1944_v10, %v1944_v10 }
 0x134   : > { %1464 = vst [vmem:[%s3081_s6 + $0x80] sm:$0xf] %v2370_v37  ;;  %1832 = vst [vmem:[%s3081_s6 + $0x88] sm:$0xf] %v2402_v29  ;;  %v1385_v3 = vmul.f32 %v3005_v43, %v985_v8  ;;  %v1753_v34 = vmul.f32 %v3063_v13, %v1098_v46  ;;  %v987_v60 = vpop.f32.mrf.mxu0  ;;  %v1100_v55 = vpop.f32.mrf.mxu1 }
 0x135   : > { %2055 = vst [vmem:[%s3092_s15 + $0x38] sm:$0xff] %v2039_v11  ;;  %1640 = vst [vmem:[%s3081_s6 + $0x84] sm:$0xf] %v2386_v32  ;;  %v1848_v35 = vadd.f32 %v1752_v27, %v1656_v57  ;;  %v1561_v30 = vmul.f32 %v3037_v61, %v987_v60  ;;  %v1945_v38 = vmul.f32 %v1910_v52, %v1100_v55  ;;  %v1922_v37 = vpop.permute.xlu1 %1921 }
 0x136   : > { %2024 = vst [vmem:[%s3081_s6 + $0x8c] sm:$0xf] %v2418_v33  ;;  %v2371_v44 = vpack.c.bf16 %v1385_v3, %v1385_v3  ;;  %v2403_v31 = vpack.c.bf16 %v1753_v34, %v1753_v34  ;;  %v991_v9 = vpop.f32.mrf.mxu0  ;;  %v1104_v43 = vpop.f32.mrf.mxu1 }
 0x137   : > { %v2040_v13 = vadd.f32 %v1944_v10, %v1848_v35  ;;  %v2387_v22 = vpack.c.bf16 %v1561_v30, %v1561_v30  ;;  %v1657_v36 = vadd.f32 %v1561_v30, %v1385_v3  ;;  %v2419_v42 = vpack.c.bf16 %v1945_v38, %v1945_v38  ;;  %v1926_v35 = vpop.permute.xlu0 %1925 }
 0x138   : > { %1465 = vst [vmem:[%s3081_s6 + $0x90] sm:$0xf] %v2371_v44  ;;  %1833 = vst [vmem:[%s3081_s6 + $0x98] sm:$0xf] %v2403_v31  ;;  %v1386_v6 = vmul.f32 %v3015_v48, %v991_v9  ;;  %v1754_v58 = vmul.f32 %v3065_v14, %v1104_v43  ;;  %v993_v61 = vpop.f32.mrf.mxu0  ;;  %v1106_v7 = vpop.f32.mrf.mxu1 }
 0x139   : > { %2056 = vst [vmem:[%s3092_s15 + $0x40] sm:$0xff] %v2040_v13  ;;  %1641 = vst [vmem:[%s3081_s6 + $0x94] sm:$0xf] %v2387_v22  ;;  %v1849_v53 = vadd.f32 %v1753_v34, %v1657_v36  ;;  %v1562_v20 = vmul.f32 %v3039_v62, %v993_v61  ;;  %v1946_v25 = vmul.f32 %v1914_v4, %v1106_v7 }
 0x13a   : > { %2025 = vst [vmem:[%s3081_s6 + $0x9c] sm:$0xf] %v2419_v42  ;;  %v2372_v21 = vpack.c.bf16 %v1386_v6, %v1386_v6  ;;  %v2404_v40 = vpack.c.bf16 %v1754_v58, %v1754_v58  ;;  %v995_v56 = vpop.f32.mrf.mxu0  ;;  %v1108_v48 = vpop.f32.mrf.mxu1 }
 0x13b   : > { %v2041_v14 = vadd.f32 %v1945_v38, %v1849_v53  ;;  %v2388_v54 = vpack.c.bf16 %v1562_v20, %v1562_v20  ;;  %v1658_v12 = vadd.f32 %v1562_v20, %v1386_v6  ;;  %v2420_v19 = vpack.c.bf16 %v1946_v25, %v1946_v25 }
 0x13c   : > { %1466 = vst [vmem:[%s3081_s6 + $0xa0] sm:$0xf] %v2372_v21  ;;  %1834 = vst [vmem:[%s3081_s6 + $0xa8] sm:$0xf] %v2404_v40  ;;  %v1387_v5 = vmul.f32 %v3009_v45, %v995_v56  ;;  %v1755_v23 = vmul.f32 %v3067_v15, %v1108_v48  ;;  %v997_v62 = vpop.f32.mrf.mxu0  ;;  %v1110_v26 = vpop.f32.mrf.mxu1 }
 0x13d   : > { %2057 = vst [vmem:[%s3092_s15 + $0x48] sm:$0xff] %v2041_v14  ;;  %1642 = vst [vmem:[%s3081_s6 + $0xa4] sm:$0xf] %v2388_v54  ;;  %v1850_v27 = vadd.f32 %v1754_v58, %v1658_v12  ;;  %v1563_v59 = vmul.f32 %v3041_v63, %v997_v62  ;;  %v1947_v28 = vmul.f32 %v1918_v41, %v1110_v26  ;;  %v1930_v58 = vpop.permute.xlu1 %1929  ;;  %v1934_v12 = vpop.permute.xlu0 %1933  ;;  %v3227_v26 = vld [vmem:[#allocation4_spill] sm:$0xff] }
 0x13e   : > { %2026 = vst [vmem:[%s3081_s6 + $0xac] sm:$0xf] %v2420_v19  ;;  %v2373_v39 = vpack.c.bf16 %v1387_v5, %v1387_v5  ;;  %v2405_v24 = vpack.c.bf16 %v1755_v23, %v1755_v23  ;;  %v1001_v10 = vpop.f32.mrf.mxu0  ;;  %v1114_v45 = vpop.f32.mrf.mxu1 }
 0x13f   : > { %v2042_v15 = vadd.f32 %v1946_v25, %v1850_v27  ;;  %v2389_v29 = vpack.c.bf16 %v1563_v59, %v1563_v59  ;;  %v1659_v8 = vadd.f32 %v1563_v59, %v1387_v5  ;;  %v2421_v46 = vpack.c.bf16 %v1947_v28, %v1947_v28 }
 0x140   : > { %1467 = vst [vmem:[%s3081_s6 + $0xb0] sm:$0xf] %v2373_v39  ;;  %1835 = vst [vmem:[%s3081_s6 + $0xb8] sm:$0xf] %v2405_v24  ;;  %v1388_v52 = vmul.f32 %v3017_v49, %v1001_v10  ;;  %v1756_v11 = vmul.f32 %v3069_v16, %v1114_v45  ;;  %v1003_v63 = vpop.f32.mrf.mxu0  ;;  %v1116_v32 = vpop.f32.mrf.mxu1  ;;  %v3228_v39 = vld [vmem:[#allocation3_spill] sm:$0xff] }
 0x141   : > { %2058 = vst [vmem:[%s3092_s15 + $0x50] sm:$0xff] %v2042_v15  ;;  %1643 = vst [vmem:[%s3081_s6 + $0xb4] sm:$0xf] %v2389_v29  ;;  %v1851_v57 = vadd.f32 %v1755_v23, %v1659_v8  ;;  %v1564_v33 = vmul.f32 %v3043_v0, %v1003_v63  ;;  %v1948_v3 = vmul.f32 %v1922_v37, %v1116_v32 }
 0x142   : > { %2027 = vst [vmem:[%s3081_s6 + $0xbc] sm:$0xf] %v2421_v46  ;;  %v2374_v34 = vpack.c.bf16 %v1388_v52, %v1388_v52  ;;  %v2406_v60 = vpack.c.bf16 %v1756_v11, %v1756_v11  ;;  %v1005_v55 = vpop.f32.mrf.mxu0  ;;  %v1118_v49 = vpop.f32.mrf.mxu1 }
 0x143   : > { %v2043_v16 = vadd.f32 %v1947_v28, %v1851_v57  ;;  %v2390_v30 = vpack.c.bf16 %v1564_v33, %v1564_v33  ;;  %v1660_v38 = vadd.f32 %v1564_v33, %v1388_v52  ;;  %v2422_v44 = vpack.c.bf16 %v1948_v3, %v1948_v3 }
 0x144   : > { %1468 = vst [vmem:[%s3081_s6 + $0xc0] sm:$0xf] %v2374_v34  ;;  %1836 = vst [vmem:[%s3081_s6 + $0xc8] sm:$0xf] %v2406_v60  ;;  %v1389_v31 = vmul.f32 %v3013_v47, %v1005_v55  ;;  %v1757_v9 = vmul.f32 %v3071_v17, %v1118_v49  ;;  %v1007_v0 = vpop.f32.mrf.mxu0  ;;  %v1120_v43 = vpop.f32.mrf.mxu1 }
 0x145   : > { %2059 = vst [vmem:[%s3092_s15 + $0x58] sm:$0xff] %v2043_v16  ;;  %1644 = vst [vmem:[%s3081_s6 + $0xc4] sm:$0xf] %v2390_v30  ;;  %v1852_v4 = vadd.f32 %v1756_v11, %v1660_v38  ;;  %v1565_v13 = vmul.f32 %v3045_v1, %v1007_v0  ;;  %v1949_v22 = vmul.f32 %v1926_v35, %v1120_v43 }
 0x146   : > { %2028 = vst [vmem:[%s3081_s6 + $0xcc] sm:$0xf] %v2422_v44  ;;  %v2375_v36 = vpack.c.bf16 %v1389_v31, %v1389_v31  ;;  %v2407_v42 = vpack.c.bf16 %v1757_v9, %v1757_v9  ;;  %v1011_v6 = vpop.f32.mrf.mxu0  ;;  %v1124_v47 = vpop.f32.mrf.mxu1 }
 0x147   : > { %v2044_v17 = vadd.f32 %v1948_v3, %v1852_v4  ;;  %v2391_v61 = vpack.c.bf16 %v1565_v13, %v1565_v13  ;;  %v1661_v7 = vadd.f32 %v1565_v13, %v1389_v31  ;;  %v2423_v53 = vpack.c.bf16 %v1949_v22, %v1949_v22 }
 0x148   : > { %1469 = vst [vmem:[%s3081_s6 + $0xd0] sm:$0xf] %v2375_v36  ;;  %1837 = vst [vmem:[%s3081_s6 + $0xd8] sm:$0xf] %v2407_v42  ;;  %v1390_v20 = vmul.f32 %v3021_v51, %v1011_v6  ;;  %v1758_v25 = vmul.f32 %v3073_v18, %v1124_v47  ;;  %v1013_v1 = vpop.f32.mrf.mxu0  ;;  %v1126_v21 = vpop.f32.mrf.mxu1 }
 0x149   : > { %2060 = vst [vmem:[%s3092_s15 + $0x60] sm:$0xff] %v2044_v17  ;;  %1645 = vst [vmem:[%s3081_s6 + $0xd4] sm:$0xf] %v2391_v61  ;;  %v1853_v40 = vadd.f32 %v1757_v9, %v1661_v7  ;;  %v1566_v56 = vmul.f32 %v3047_v2, %v1013_v1  ;;  %v1950_v48 = vmul.f32 %v1930_v58, %v1126_v21 }
 0x14a   : > { %2029 = vst [vmem:[%s3081_s6 + $0xdc] sm:$0xf] %v2423_v53  ;;  %v2376_v41 = vpack.c.bf16 %v1390_v20, %v1390_v20  ;;  %v2408_v14 = vpack.c.bf16 %v1758_v25, %v1758_v25  ;;  %v1015_v54 = vpop.f32.mrf.mxu0  ;;  %v1128_v51 = vpop.f32.mrf.mxu1 }
 0x14b   : > { %v2045_v18 = vadd.f32 %v1949_v22, %v1853_v40  ;;  %v2392_v19 = vpack.c.bf16 %v1566_v56, %v1566_v56  ;;  %v1662_v5 = vadd.f32 %v1566_v56, %v1390_v20  ;;  %v2424_v23 = vpack.c.bf16 %v1950_v48, %v1950_v48 }
 0x14c   : > { %1470 = vst [vmem:[%s3081_s6 + $0xe0] sm:$0xf] %v2376_v41  ;;  %1838 = vst [vmem:[%s3081_s6 + $0xe8] sm:$0xf] %v2408_v14  ;;  %v1391_v62 = vmul.f32 %v3019_v50, %v1015_v54  ;;  %v1759_v2 = vmul.f32 %v3227_v26, %v1128_v51  ;;  %v1017_v27 = vpop.f32.mrf.mxu0  ;;  %v1130_v59 = vpop.f32.mrf.mxu1 }
 0x14d   : > { %2061 = vst [vmem:[%s3092_s15 + $0x68] sm:$0xff] %v2045_v18  ;;  %1646 = vst [vmem:[%s3081_s6 + $0xe4] sm:$0xf] %v2392_v19  ;;  %v1854_v28 = vadd.f32 %v1758_v25, %v1662_v5  ;;  %v1567_v24 = vmul.f32 %v3228_v39, %v1017_v27  ;;  %v1951_v10 = vmul.f32 %v1934_v12, %v1130_v59 }
 0x14e   : > { %2030 = vst [vmem:[%s3081_s6 + $0xec] sm:$0xf] %v2424_v23  ;;  %v2377_v45 = vpack.c.bf16 %v1391_v62, %v1391_v62  ;;  %v2409_v37 = vpack.c.bf16 %v1759_v2, %v1759_v2 }
 0x14f   : > { %v2046_v50 = vadd.f32 %v1950_v48, %v1854_v28  ;;  %v2393_v15 = vpack.c.bf16 %v1567_v24, %v1567_v24  ;;  %v1663_v29 = vadd.f32 %v1567_v24, %v1391_v62  ;;  %v2425_v8 = vpack.c.bf16 %v1951_v10, %v1951_v10 }
 0x150   : > { %1471 = vst [vmem:[%s3081_s6 + $0xf0] sm:$0xf] %v2377_v45  ;;  %1839 = vst [vmem:[%s3081_s6 + $0xf8] sm:$0xf] %v2409_v37 }
 0x151   : > { %2062 = vst [vmem:[%s3092_s15 + $0x70] sm:$0xff] %v2046_v50  ;;  %1647 = vst [vmem:[%s3081_s6 + $0xf4] sm:$0xf] %v2393_v15  ;;  %v1855_v46 = vadd.f32 %v1759_v2, %v1663_v29 }
 0x152   : > { %2031 = vst [vmem:[%s3081_s6 + $0xfc] sm:$0xf] %v2425_v8 }
 0x153   : > { %v2047_v52 = vadd.f32 %v1951_v10, %v1855_v46 }
 0x155   : > { %2063 = vst [vmem:[%s3092_s15 + $0x78] sm:$0xff] %v2047_v52 }
 0x156 PF: > { %s15_s17 = sadd.s32 1, %s2604_s17   ;;  %s3229_s15 = smov %s2600_s16 }
 0x157   : > { %p12_p5 = scmp.ge.s32.totalorder %s15_s17, 4   ;;  %s3230_s16 = smov %s3232_s18 }
 0x159   :  { %14 = sbr.rel (!%p12_p5) target bundleno = 2 (0x2), region = 88 }

// kernel: _imp_gcn_forward.5
= control target key start
LH: loop header
LB: loop body
LE: loop exit
PB: predicated region body
PF: predicated region fallthrough
CT: control target
= control target key end

     0   :  { %s2983_s27 = smov 0   ;;  %s2985_s28 = smov 0   ;;  %s3551_s0 = inlined_call_operand.vmem [shape: bf16[256,256], index: 0, kind: input, shape index: {}]   ;;  %s3552_s1 = inlined_call_operand.vmem [shape: bf16[256,128], index: 1, kind: input, shape index: {}]   ;;  %s3553_s2 = inlined_call_operand.vmem [shape: f32[256,128], index: 2, kind: input, shape index: {}]   ;;  %s3554_s3 = inlined_call_operand.vmem [shape: bf16[128,128], index: 3, kind: input, shape index: {}]   ;;  %s3555_s4 = inlined_call_operand.vmem [shape: f32[1,128], index: 4, kind: input, shape index: {}]   ;;  %s3556_s5 = inlined_call_operand.vmem [shape: bf16[128,4], index: 5, kind: input, shape index: {}]   ;;  %s3557_s6 = inlined_call_operand.vmem [shape: f32[1,4], index: 6, kind: input, shape index: {}]   ;;  %s3558_s7 = inlined_call_operand.vmem [shape: f32[256,4], index: 7, kind: output, shape index: {0}]   ;;  %s3559_s8 = inlined_call_operand.vmem [shape: bf16[256,512], index: 8, kind: output, shape index: {1}]  }
   0x1   :  { %s2987_s29 = smov 0  }
   0x2 LB: > { %s31_s30 = sadd.s32 1, %s2927_s28  ;;  %p2248_p0 = scmp.ge.s32.totalorder %s2931_s29, 1  ;;  %s2931_s29 = sphi %s2987_s29, %s19_s29   ;;  %s2927_s28 = sphi %s2985_s28, %s3561_s28   ;;  %s2923_s27 = sphi %s2983_s27, %s3560_s27  }
   0x3   : > { %p33_p1 = scmp.ge.s32.totalorder %s31_s30, 2  ;;  %p308_p2 = scmp.lt.s32.totalorder %s2931_s29, 3 }
   0x5   : > { %s3563_s30 = smov (%p33_p1, %s31_s30), 0  ;;  %p309_p3 = pnand %p2248_p0, %p308_p2 }
   0x6   : > { %s2249_s11 = sshll.u32 (!%p309_p3), %s2923_s27, 4  ;;  %s2259_s22 = sshll.u32 (!%p309_p3), %s2923_s27, 7 }
   0x7   : > { %312 = sbr.rel (%p309_p3) target bundleno = 1039 (0x40f), region = 48  ;;  %p365_p4 = scmp.lt.s32.totalorder (!%p309_p3), %s2249_s11, 31 }
   0xc   : > { %v2837_v0 = vld [vmem:[%s3552_s1 + $0x78] sm:$0xff]   ;;  %v2839_v2 = vld [vmem:[%s3552_s1 + $0x70] sm:$0xff]   ;;  %v2841_v4 = vld [vmem:[%s3552_s1 + $0x68] sm:$0xff]   ;;  %s3565_s11 = smov (!%p365_p4, %s2249_s11), 31 }
   0xd   : > { %v2838_v1 = vld [vmem:[%s3552_s1 + $0x38] sm:$0xff]   ;;  %2458 = vmatprep.subr.bf16.mxu0 %v2837_v0  ;;  %v2840_v3 = vld [vmem:[%s3552_s1 + $0x30] sm:$0xff]   ;;  %v2842_v5 = vld [vmem:[%s3552_s1 + $0x28] sm:$0xff]   ;;  %s3031_s26 = sshll.u32 %s3565_s11, 3 }
   0xe   : > { %2459 = vmatpush3.bf16.msra.mxu0 %v2838_v1  ;;  %v2843_v6 = vld [vmem:[%s3552_s1 + $0x60] sm:$0xff]   ;;  %v2845_v8 = vld [vmem:[%s3552_s1 + $0x58] sm:$0xff]   ;;  %s3040_s14 = scalar_lea.vmem %s3551_s0, %s3031_s26  ;;  %v2847_v10 = vld [vmem:[%s3552_s1 + $0x50] sm:$0xff]   ;;  %s3110_s18 = scalar_lea.vmem %s3553_s2, %s3031_s26 }
   0xf   : > { %2460 = vmatprep.subr.bf16.mxu0 %v2839_v2  ;;  %v2844_v7 = vld [vmem:[%s3552_s1 + $0x20] sm:$0xff]   ;;  %v2846_v9 = vld [vmem:[%s3552_s1 + $0x18] sm:$0xff]   ;;  %v2848_v12 = vld [vmem:[%s3552_s1 + $0x10] sm:$0xff]   ;;  %s3279_s27 = scalar_lea.vmem %s3558_s7, %s3031_s26  ;;  %s2393_s26 = sshll.u32 %s3565_s11, 4 }
  0x10   : > { %v2855_v11 = vld [vmem:[%s3040_s14 + $0x4] ss:$8 sps:$4 sm:$0xff]   ;;  %v2877_v17 = vld [vmem:[%s3554_s3 + $0x38] sm:$0xff]   ;;  %v2853_v18 = vld [vmem:[%s3040_s14] ss:$8 sps:$4 sm:$0xff]   ;;  %s3412_s9 = scalar_lea.vmem %s3559_s8, %s2393_s26 }
  0x11   : > { %694 = vmatprep.mubr.bf16.mxu0 %v2855_v11  ;;  %v2849_v13 = vld [vmem:[%s3552_s1 + $0x48] sm:$0xff]   ;;  %v2851_v15 = vld [vmem:[%s3552_s1 + $0x40] sm:$0xff]   ;;  %v2878_v19 = vld [vmem:[%s3554_s3 + $0x30] sm:$0xff]   ;;  %2554 = vmatprep.subr.bf16.mxu1 %v2877_v17 }
  0x12   : > { %2461 = vmatpush3.bf16.msra.mxu0 %v2840_v3  ;;  %v2850_v14 = vld [vmem:[%s3552_s1 + $0x8] sm:$0xff]   ;;  %v2852_v16 = vld [vmem:[%s3552_s1] sm:$0xff]   ;;  %v2856_v20 = vld [vmem:[%s3040_s14 + $0x14] ss:$8 sps:$4 sm:$0xff]   ;;  %2555 = vmatpush3.bf16.msra.mxu1 %v2877_v17 }
  0x13   : > { %2462 = vmatprep.subr.bf16.mxu0 %v2841_v4  ;;  %v2879_v21 = vld [vmem:[%s3554_s3 + $0x28] sm:$0xff]   ;;  %2556 = vmatprep.subr.bf16.mxu1 %v2878_v19  ;;  %v2858_v22 = vld [vmem:[%s3040_s14 + $0x10] ss:$8 sps:$4 sm:$0xff]   ;;  %v2862_v25 = vld [vmem:[%s3040_s14 + $0x34] ss:$8 sps:$4 sm:$0xff]  }
  0x14   : > { %v2859_v23 = vld [vmem:[%s3040_s14 + $0x24] ss:$8 sps:$4 sm:$0xff]   ;;  %v2861_v24 = vld [vmem:[%s3040_s14 + $0x20] ss:$8 sps:$4 sm:$0xff]   ;;  %v2864_v26 = vld [vmem:[%s3040_s14 + $0x30] ss:$8 sps:$4 sm:$0xff]  }
  0x15   : > { %v2865_v27 = vld [vmem:[%s3040_s14 + $0x44] ss:$8 sps:$4 sm:$0xff]   ;;  %v2867_v28 = vld [vmem:[%s3040_s14 + $0x40] ss:$8 sps:$4 sm:$0xff]   ;;  %v2868_v29 = vld [vmem:[%s3040_s14 + $0x54] ss:$8 sps:$4 sm:$0xff]  }
  0x16   : > { %2463 = vmatpush3.bf16.msra.mxu0 %v2842_v5  ;;  %2557 = vmatpush3.bf16.msra.mxu1 %v2878_v19  ;;  %v2870_v30 = vld [vmem:[%s3040_s14 + $0x50] ss:$8 sps:$4 sm:$0xff]   ;;  %v2871_v31 = vld [vmem:[%s3040_s14 + $0x64] ss:$8 sps:$4 sm:$0xff]   ;;  %v2873_v32 = vld [vmem:[%s3040_s14 + $0x60] ss:$8 sps:$4 sm:$0xff]  }
  0x17   : > { %2464 = vmatprep.subr.bf16.mxu0 %v2843_v6  ;;  %2558 = vmatprep.subr.bf16.mxu1 %v2879_v21  ;;  %v2874_v33 = vld [vmem:[%s3040_s14 + $0x74] ss:$8 sps:$4 sm:$0xff]   ;;  %v2876_v34 = vld [vmem:[%s3040_s14 + $0x70] ss:$8 sps:$4 sm:$0xff]   ;;  %v2880_v35 = vld [vmem:[%s3554_s3 + $0x20] sm:$0xff]  }
  0x18   : > { %v2881_v36 = vld [vmem:[%s3554_s3 + $0x18] sm:$0xff]   ;;  %v2882_v37 = vld [vmem:[%s3554_s3 + $0x10] sm:$0xff]   ;;  %v2883_v38 = vld [vmem:[%s3554_s3 + $0x8] sm:$0xff]  }
  0x19   : > { %v2884_v39 = vld [vmem:[%s3554_s3] sm:$0xff]   ;;  %v2885_v40 = vld [vmem:[%s3556_s5 + $0x38] sm:$0xff]   ;;  %v795_v47 = vld [vmem:[%s3110_s18 + $0x8] sm:$0xff] }
  0x1a   : > { %2465 = vmatpush3.bf16.msra.mxu0 %v2844_v7  ;;  %2559 = vmatpush3.bf16.msra.mxu1 %v2879_v21  ;;  %v794_v46 = vld [vmem:[%s3110_s18] sm:$0xff]  ;;  %v3115_v56 = vld [vmem:[%s3110_s18 + $0x10] sm:$0xff]  ;;  %v3118_v58 = vld [vmem:[%s3110_s18 + $0x18] sm:$0xff] }
  0x1b   : > { %2466 = vmatprep.subr.bf16.mxu0 %v2845_v8  ;;  %2560 = vmatprep.subr.bf16.mxu1 %v2880_v35  ;;  %v2886_v1 = vld [vmem:[%s3556_s5 + $0x30] sm:$0xff]   ;;  %v798_v4 = vld [vmem:[%s3110_s18 + $0x20] sm:$0xff]  ;;  %v799_v6 = vld [vmem:[%s3110_s18 + $0x28] sm:$0xff] }
  0x1c   : > { %v2887_v8 = vld [vmem:[%s3556_s5 + $0x28] sm:$0xff]   ;;  %v800_v17 = vld [vmem:[%s3110_s18 + $0x30] sm:$0xff]  ;;  %v801_v19 = vld [vmem:[%s3110_s18 + $0x38] sm:$0xff] }
  0x1d   : > { %v2889_v21 = vld [vmem:[%s3556_s5 + $0x18] sm:$0xff]  }
  0x1e   : > { %2467 = vmatpush3.bf16.msra.mxu0 %v2846_v9  ;;  %2561 = vmatpush3.bf16.msra.mxu1 %v2880_v35 }
  0x1f   : > { %2468 = vmatprep.subr.bf16.mxu0 %v2847_v10  ;;  %2562 = vmatprep.subr.bf16.mxu1 %v2881_v36 }
  0x22   : > { %2469 = vmatpush3.bf16.msra.mxu0 %v2848_v12  ;;  %2563 = vmatpush3.bf16.msra.mxu1 %v2881_v36 }
  0x23   : > { %2470 = vmatprep.subr.bf16.mxu0 %v2849_v13  ;;  %2564 = vmatprep.subr.bf16.mxu1 %v2882_v37 }
  0x26   : > { %2471 = vmatpush3.bf16.msra.mxu0 %v2850_v14  ;;  %2565 = vmatpush3.bf16.msra.mxu1 %v2882_v37  ;;  %v2888_v14 = vld [vmem:[%s3556_s5 + $0x20] sm:$0xff]  }
  0x27   : > { %2472 = vmatprep.subr.bf16.mxu0 %v2851_v15  ;;  %2566 = vmatprep.subr.bf16.mxu1 %v2883_v38 }
  0x2a   : > { %2473 = vmatpush3.bf16.msra.mxu0 %v2852_v16  ;;  %2567 = vmatpush3.bf16.msra.mxu1 %v2883_v38 }
  0x2b   : > { %2568 = vmatprep.subr.bf16.mxu1 %v2884_v39 }
  0x2d   : > { %695 = vmatmul.mubr.bf16.vlgmr.msra.gmra.mxu0 %v2853_v18 }
  0x2e   : > { %702 = vmatprep.mubr.bf16.mxu0 %v2856_v20  ;;  %2569 = vmatpush3.bf16.msra.mxu1 %v2884_v39  ;;  %v804_v39 = vld [vmem:[%s3110_s18 + $0x50] sm:$0xff] }
  0x2f   : > { %2586 = vmatprep.subr.bf16.mxu1 %v2885_v40 }
  0x35   : > { %703 = vmatmul.mubr.bf16.gmra.mxu0 %v2858_v22 }
  0x36   : > { %710 = vmatprep.mubr.bf16.mxu0 %v2859_v23 }
  0x3d   : > { %711 = vmatmul.mubr.bf16.gmra.mxu0 %v2861_v24 }
  0x3e   : > { %718 = vmatprep.mubr.bf16.mxu0 %v2862_v25 }
  0x45   : > { %719 = vmatmul.mubr.bf16.gmra.mxu0 %v2864_v26 }
  0x46   : > { %726 = vmatprep.mubr.bf16.mxu0 %v2865_v27 }
  0x4d   : > { %727 = vmatmul.mubr.bf16.gmra.mxu0 %v2867_v28  ;;  %v802_v28 = vld [vmem:[%s3110_s18 + $0x40] sm:$0xff] }
  0x4e   : > { %734 = vmatprep.mubr.bf16.mxu0 %v2868_v29 }
  0x55   : > { %735 = vmatmul.mubr.bf16.gmra.mxu0 %v2870_v30 }
  0x56   : > { %742 = vmatprep.mubr.bf16.mxu0 %v2871_v31  ;;  %v803_v31 = vld [vmem:[%s3110_s18 + $0x48] sm:$0xff] }
  0x5d   : > { %743 = vmatmul.mubr.bf16.gmra.mxu0 %v2873_v32 }
  0x5e   : > { %750 = vmatprep.mubr.bf16.mxu0 %v2874_v33 }
  0x65   : > { %751 = vmatmul.mubr.bf16.gmra.mxu0 %v2876_v34 }
  0xed   : > { %v2474_v41 = vpop.f32.mrf.mxu0 }
  0xef   : > { %v2475_v42 = vpop.f32.mrf.mxu0 }
  0xf0   : > { %v2476_v44 = vadd.f32 %v2475_v42, %v2474_v41  ;;  %v805_v42 = vld [vmem:[%s3110_s18 + $0x58] sm:$0xff] }
  0xf1   : > { %v2477_v43 = vpop.f32.mrf.mxu0 }
  0xf2   : > { %v826_v50 = vadd.f32 %v2476_v44, %v794_v46 }
  0xf3   : > { %v2478_v45 = vpop.f32.mrf.mxu0 }
  0xf4   : > { %v2479_v48 = vadd.f32 %v2478_v45, %v2477_v43 }
  0xf5   : > { %v2480_v49 = vpop.f32.mrf.mxu0 }
  0xf6   : > { %v827_v51 = vadd.f32 %v2479_v48, %v795_v47 }
  0xf7   : > { %v2481_v52 = vpop.f32.mrf.mxu0 }
  0xf8   : > { %v842_v53 = vpack.c.bf16 %v827_v51, %v826_v50  ;;  %v2482_v55 = vadd.f32 %v2481_v52, %v2480_v49  ;;  %v806_v50 = vld [vmem:[%s3110_s18 + $0x60] sm:$0xff] }
  0xf9   : > { %v2483_v54 = vpop.f32.mrf.mxu0 }
  0xfa   : > { %2570 = vmatprep.mubr.bf16.mxu1 %v842_v53  ;;  %v828_v61 = vadd.f32 %v2482_v55, %v3115_v56  ;;  %v807_v53 = vld [vmem:[%s3110_s18 + $0x68] sm:$0xff] }
  0xfb   : > { %v2484_v57 = vpop.f32.mrf.mxu0 }
  0xfc   : > { %v2485_v59 = vadd.f32 %v2484_v57, %v2483_v54 }
  0xfd   : > { %v2486_v60 = vpop.f32.mrf.mxu0 }
  0xfe   : > { %v829_v62 = vadd.f32 %v2485_v59, %v3118_v58 }
  0xff   : > { %v2487_v63 = vpop.f32.mrf.mxu0 }
 0x100   : > { %v843_v0 = vpack.c.bf16 %v829_v62, %v828_v61  ;;  %v2488_v3 = vadd.f32 %v2487_v63, %v2486_v60  ;;  %v808_v63 = vld [vmem:[%s3110_s18 + $0x70] sm:$0xff] }
 0x101   : > { %v2489_v2 = vpop.f32.mrf.mxu0 }
 0x102   : > { %2571 = vmatmul.mubr.bf16.vlgmr.msra.gmra.mxu1 %v843_v0  ;;  %v830_v10 = vadd.f32 %v2488_v3, %v798_v4 }
 0x103   : > { %v2490_v5 = vpop.f32.mrf.mxu0  ;;  %2587 = vmatpush3.bf16.msra.mxu1 %v2885_v40 }
 0x104   : > { %v2491_v7 = vadd.f32 %v2490_v5, %v2489_v2  ;;  %2588 = vmatprep.subr.bf16.mxu1 %v2886_v1  ;;  %v809_v2 = vld [vmem:[%s3110_s18 + $0x78] sm:$0xff] }
 0x105   : > { %v2492_v9 = vpop.f32.mrf.mxu0 }
 0x106   : > { %v831_v11 = vadd.f32 %v2491_v7, %v799_v6  ;;  %v2890_v7 = vld [vmem:[%s3556_s5 + $0x10] sm:$0xff]  }
 0x107   : > { %v2493_v12 = vpop.f32.mrf.mxu0  ;;  %2589 = vmatpush3.bf16.msra.mxu1 %v2886_v1 }
 0x108   : > { %v844_v13 = vpack.c.bf16 %v831_v11, %v830_v10  ;;  %2590 = vmatprep.subr.bf16.mxu1 %v2887_v8  ;;  %v2494_v16 = vadd.f32 %v2493_v12, %v2492_v9  ;;  %v2892_v9 = vld [vmem:[%s3556_s5] sm:$0xff]  }
 0x109   : > { %v2495_v15 = vpop.f32.mrf.mxu0  ;;  %v3158_v11 = vld [vmem:[%s3555_s4] ss:$0 sm:$0xff] }
 0x10a   : > { %2574 = vmatprep.mubr.bf16.mxu1 %v844_v13  ;;  %v832_v23 = vadd.f32 %v2494_v16, %v800_v17 }
 0x10b   : > { %v2496_v18 = vpop.f32.mrf.mxu0  ;;  %2591 = vmatpush3.bf16.msra.mxu1 %v2887_v8  ;;  %v2891_v8 = vld [vmem:[%s3556_s5 + $0x8] sm:$0xff]  }
 0x10c   : > { %v2497_v20 = vadd.f32 %v2496_v18, %v2495_v15  ;;  %2592 = vmatprep.subr.bf16.mxu1 %v2888_v14 }
 0x10d   : > { %v2498_v22 = vpop.f32.mrf.mxu0 }
 0x10e   : > { %v833_v24 = vadd.f32 %v2497_v20, %v801_v19 }
 0x10f   : > { %v2499_v25 = vpop.f32.mrf.mxu0  ;;  %2593 = vmatpush3.bf16.msra.mxu1 %v2888_v14 }
 0x110   : > { %v2500_v26 = vadd.f32 %v2499_v25, %v2498_v22  ;;  %v845_v27 = vpack.c.bf16 %v833_v24, %v832_v23  ;;  %2594 = vmatprep.subr.bf16.mxu1 %v2889_v21 }
 0x111   : > { %v2501_v29 = vpop.f32.mrf.mxu0 }
 0x112   : > { %2575 = vmatmul.mubr.bf16.gmra.mxu1 %v845_v27  ;;  %v834_v32 = vadd.f32 %v2500_v26, %v802_v28 }
 0x113   : > { %v2502_v30 = vpop.f32.mrf.mxu0  ;;  %2595 = vmatpush3.bf16.msra.mxu1 %v2889_v21 }
 0x114   : > { %v2503_v33 = vadd.f32 %v2502_v30, %v2501_v29  ;;  %2596 = vmatprep.subr.bf16.mxu1 %v2890_v7 }
 0x115   : > { %v2504_v34 = vpop.f32.mrf.mxu0 }
 0x116   : > { %v835_v35 = vadd.f32 %v2503_v33, %v803_v31 }
 0x117   : > { %v2505_v36 = vpop.f32.mrf.mxu0  ;;  %2597 = vmatpush3.bf16.msra.mxu1 %v2890_v7 }
 0x118   : > { %v2506_v37 = vadd.f32 %v2505_v36, %v2504_v34  ;;  %v846_v38 = vpack.c.bf16 %v835_v35, %v834_v32  ;;  %2598 = vmatprep.subr.bf16.mxu1 %v2891_v8 }
 0x119   : > { %v2507_v40 = vpop.f32.mrf.mxu0 }
 0x11a   : > { %2578 = vmatprep.mubr.bf16.mxu1 %v846_v38  ;;  %v836_v43 = vadd.f32 %v2506_v37, %v804_v39 }
 0x11b   : > { %v2508_v41 = vpop.f32.mrf.mxu0  ;;  %2599 = vmatpush3.bf16.msra.mxu1 %v2891_v8 }
 0x11c   : > { %v2509_v44 = vadd.f32 %v2508_v41, %v2507_v40  ;;  %2600 = vmatprep.subr.bf16.mxu1 %v2892_v9 }
 0x11d   : > { %v2510_v45 = vpop.f32.mrf.mxu0 }
 0x11e   : > { %v837_v46 = vadd.f32 %v2509_v44, %v805_v42 }
 0x11f   : > { %v2511_v47 = vpop.f32.mrf.mxu0  ;;  %2601 = vmatpush3.bf16.msra.mxu1 %v2892_v9 }
 0x120   : > { %v2512_v48 = vadd.f32 %v2511_v47, %v2510_v45  ;;  %v847_v49 = vpack.c.bf16 %v837_v46, %v836_v43 }
 0x121   : > { %v2513_v51 = vpop.f32.mrf.mxu0 }
 0x122   : > { %2579 = vmatmul.mubr.bf16.gmra.mxu1 %v847_v49  ;;  %v838_v54 = vadd.f32 %v2512_v48, %v806_v50 }
 0x123   : > { %v2514_v52 = vpop.f32.mrf.mxu0 }
 0x124   : > { %v2515_v55 = vadd.f32 %v2514_v52, %v2513_v51 }
 0x125   : > { %v2516_v57 = vpop.f32.mrf.mxu0 }
 0x126   : > { %v839_v59 = vadd.f32 %v2515_v55, %v807_v53 }
 0x127   : > { %v2517_v60 = vpop.f32.mrf.mxu0 }
 0x128   : > { %v2518_v61 = vadd.f32 %v2517_v60, %v2516_v57  ;;  %v848_v62 = vpack.c.bf16 %v839_v59, %v838_v54 }
 0x129   : > { %v2519_v0 = vpop.f32.mrf.mxu0 }
 0x12a   : > { %2582 = vmatprep.mubr.bf16.mxu1 %v848_v62  ;;  %v840_v3 = vadd.f32 %v2518_v61, %v808_v63 }
 0x12b   : > { %v2520_v1 = vpop.f32.mrf.mxu0 }
 0x12c   : > { %v2521_v4 = vadd.f32 %v2520_v1, %v2519_v0 }
 0x12e   : > { %v841_v5 = vadd.f32 %v2521_v4, %v809_v2 }
 0x130   : > { %v849_v6 = vpack.c.bf16 %v841_v5, %v840_v3 }
 0x132   : > { %2583 = vmatmul.mubr.bf16.gmra.mxu1 %v849_v6 }
 0x1c2   : > { %v2572_v10 = vpop.f32.mrf.mxu1 }
 0x1c3   : > { %v964_v14 = vadd.f32 %v2572_v10, %v3158_v11 }
 0x1c4   : > { %v955_v12 = vpop.f32.mrf.mxu1 }
 0x1c5   : > { %v956_v13 = vadd.f32 %v3158_v11, %v955_v12  ;;  %v1036_v21 = vmul.f32 0.01, %v964_v14  ;;  %vm1020_vm2 = vcmp.gt.f32.partialorder %v964_v14, 0.0 }
 0x1c6   : > { %v2573_v15 = vpop.f32.mrf.mxu1 }
 0x1c7   : > { %v967_v16 = vadd.f32 %v2573_v15, %v3158_v11  ;;  %v1034_v18 = vmul.f32 0.01, %v956_v13  ;;  %vm1018_vm1 = vcmp.gt.f32.partialorder %v956_v13, 0.0  ;;  %v1052_v26 = vsel %vm1020_vm2, %v964_v14, %v1036_v21 }
 0x1c8   : > { %v958_v17 = vpop.f32.mrf.mxu1 }
 0x1c9   : > { %vm1021_vm0 = vcmp.gt.f32.partialorder %v967_v16, 0.0  ;;  %v1037_v19 = vmul.f32 0.01, %v967_v16  ;;  %v959_v20 = vadd.f32 %v3158_v11, %v958_v17  ;;  %v1050_v24 = vsel %vm1018_vm1, %v956_v13, %v1034_v18 }
 0x1cb   : > { %vm1019_vm3 = vcmp.gt.f32.partialorder %v959_v20, 0.0  ;;  %v1035_v22 = vmul.f32 0.01, %v959_v20  ;;  %v1053_v23 = vsel %vm1021_vm0, %v967_v16, %v1037_v19  ;;  %vm1242_vm0 = vcmask 31744  }
 0x1cc   : > { %v1067_v28 = vpack.c.bf16 %v1053_v23, %v1052_v26 }
 0x1cd   : > { %v1051_v25 = vsel %vm1019_vm3, %v959_v20, %v1035_v22  ;;  %v3179_v22 = vld [vmem:[%s3557_s6] ss:$0 sm:$0xff] }
 0x1ce   : > { %v1066_v27 = vpack.c.bf16 %v1051_v25, %v1050_v24 }
 0x1d0   : > { %2602 = vmatprep.mubr.bf16.mxu1 %v1066_v27 }
 0x1d1   : > { %2603 = vmatmul.mubr.bf16.vlgmr.msra.gmra.mxu1 %v1067_v28 }
 0x1d2   : > { %v2576_v29 = vpop.f32.mrf.mxu1 }
 0x1d3   : > { %v980_v32 = vadd.f32 %v2576_v29, %v3158_v11 }
 0x1d4   : > { %v971_v30 = vpop.f32.mrf.mxu1 }
 0x1d5   : > { %v972_v31 = vadd.f32 %v3158_v11, %v971_v30  ;;  %v1040_v39 = vmul.f32 0.01, %v980_v32  ;;  %vm1024_vm6 = vcmp.gt.f32.partialorder %v980_v32, 0.0 }
 0x1d6   : > { %v2577_v33 = vpop.f32.mrf.mxu1 }
 0x1d7   : > { %v983_v34 = vadd.f32 %v2577_v33, %v3158_v11  ;;  %v1038_v36 = vmul.f32 0.01, %v972_v31  ;;  %vm1022_vm5 = vcmp.gt.f32.partialorder %v972_v31, 0.0  ;;  %v1056_v45 = vsel %vm1024_vm6, %v980_v32, %v1040_v39 }
 0x1d8   : > { %v974_v35 = vpop.f32.mrf.mxu1 }
 0x1d9   : > { %vm1025_vm4 = vcmp.gt.f32.partialorder %v983_v34, 0.0  ;;  %v1041_v37 = vmul.f32 0.01, %v983_v34  ;;  %v975_v38 = vadd.f32 %v3158_v11, %v974_v35  ;;  %v1054_v42 = vsel %vm1022_vm5, %v972_v31, %v1038_v36 }
 0x1db   : > { %vm1023_vm7 = vcmp.gt.f32.partialorder %v975_v38, 0.0  ;;  %v1039_v40 = vmul.f32 0.01, %v975_v38  ;;  %v1057_v41 = vsel %vm1025_vm4, %v983_v34, %v1041_v37 }
 0x1dc   : > { %v1069_v46 = vpack.c.bf16 %v1057_v41, %v1056_v45 }
 0x1dd   : > { %v1055_v43 = vsel %vm1023_vm7, %v975_v38, %v1039_v40 }
 0x1de   : > { %v1068_v44 = vpack.c.bf16 %v1055_v43, %v1054_v42  ;;  %v2933_v42 = vmov 1  }
 0x1df   : > { %2653 = vset.pattern.permute.xlu0 %v2933_v42 }
 0x1e0   : > { %2606 = vmatprep.mubr.bf16.mxu1 %v1068_v44 }
 0x1e1   : > { %2607 = vmatmul.mubr.bf16.gmra.mxu1 %v1069_v46  ;;  %v2934_v46 = vmov 0  }
 0x1e2   : > { %v2580_v47 = vpop.f32.mrf.mxu1  ;;  %2647 = vset.pattern.permute.xlu1 %v2934_v46 }
 0x1e3   : > { %v996_v48 = vadd.f32 %v2580_v47, %v3158_v11 }
 0x1e4   : > { %v987_v49 = vpop.f32.mrf.mxu1 }
 0x1e5   : > { %v988_v50 = vadd.f32 %v3158_v11, %v987_v49  ;;  %v1044_v51 = vmul.f32 0.01, %v996_v48  ;;  %vm1028_vm8 = vcmp.gt.f32.partialorder %v996_v48, 0.0 }
 0x1e6   : > { %v2581_v52 = vpop.f32.mrf.mxu1 }
 0x1e7   : > { %v1042_v53 = vmul.f32 0.01, %v988_v50  ;;  %v999_v54 = vadd.f32 %v2581_v52, %v3158_v11  ;;  %vm1026_vm9 = vcmp.gt.f32.partialorder %v988_v50, 0.0  ;;  %v1060_v60 = vsel %vm1028_vm8, %v996_v48, %v1044_v51 }
 0x1e8   : > { %v990_v55 = vpop.f32.mrf.mxu1 }
 0x1e9   : > { %vm1029_vm10 = vcmp.gt.f32.partialorder %v999_v54, 0.0  ;;  %v1045_v57 = vmul.f32 0.01, %v999_v54  ;;  %v991_v59 = vadd.f32 %v3158_v11, %v990_v55  ;;  %v1058_v62 = vsel %vm1026_vm9, %v988_v50, %v1042_v53 }
 0x1eb   : > { %vm1027_vm11 = vcmp.gt.f32.partialorder %v991_v59, 0.0  ;;  %v1043_v61 = vmul.f32 0.01, %v991_v59  ;;  %v1061_v63 = vsel %vm1029_vm10, %v999_v54, %v1045_v57 }
 0x1ec   : > { %v1071_v1 = vpack.c.bf16 %v1061_v63, %v1060_v60 }
 0x1ed   : > { %v1059_v0 = vsel %vm1027_vm11, %v991_v59, %v1043_v61 }
 0x1ee   : > { %v1070_v2 = vpack.c.bf16 %v1059_v0, %v1058_v62 }
 0x1f0   : > { %2610 = vmatprep.mubr.bf16.mxu1 %v1070_v2 }
 0x1f1   : > { %2611 = vmatmul.mubr.bf16.gmra.mxu1 %v1071_v1 }
 0x1f2   : > { %v2584_v3 = vpop.f32.mrf.mxu1 }
 0x1f3   : > { %v1012_v4 = vadd.f32 %v2584_v3, %v3158_v11 }
 0x1f4   : > { %v1003_v5 = vpop.f32.mrf.mxu1 }
 0x1f5   : > { %v1004_v6 = vadd.f32 %v3158_v11, %v1003_v5  ;;  %v1048_v7 = vmul.f32 0.01, %v1012_v4  ;;  %vm1032_vm12 = vcmp.gt.f32.partialorder %v1012_v4, 0.0 }
 0x1f6   : > { %v2585_v8 = vpop.f32.mrf.mxu1 }
 0x1f7   : > { %v1046_v9 = vmul.f32 0.01, %v1004_v6  ;;  %v1015_v10 = vadd.f32 %v2585_v8, %v3158_v11  ;;  %vm1030_vm13 = vcmp.gt.f32.partialorder %v1004_v6, 0.0  ;;  %v1064_v15 = vsel %vm1032_vm12, %v1012_v4, %v1048_v7 }
 0x1f8   : > { %v1006_v12 = vpop.f32.mrf.mxu1 }
 0x1f9   : > { %vm1033_vm14 = vcmp.gt.f32.partialorder %v1015_v10, 0.0  ;;  %v1049_v13 = vmul.f32 0.01, %v1015_v10  ;;  %v1007_v14 = vadd.f32 %v3158_v11, %v1006_v12  ;;  %v1062_v17 = vsel %vm1030_vm13, %v1004_v6, %v1046_v9 }
 0x1fb   : > { %vm1031_vm15 = vcmp.gt.f32.partialorder %v1007_v14, 0.0  ;;  %v1047_v16 = vmul.f32 0.01, %v1007_v14  ;;  %v1065_v18 = vsel %vm1033_vm14, %v1015_v10, %v1049_v13  ;;  %v1339_v10 = vlaneseq }
 0x1fc   : > { %v1073_v20 = vpack.c.bf16 %v1065_v18, %v1064_v15 }
 0x1fd   : > { %v1063_v19 = vsel %vm1031_vm15, %v1007_v14, %v1047_v16  ;;  %v3263_v12 = vshrl.u32 %v1339_v10, 7  ;;  %v3267_v14 = vstv %s2259_s22 }
 0x1fe   : > { %v1072_v21 = vpack.c.bf16 %v1063_v19, %v1062_v17 }
 0x1ff   : > { %v1342_v13 = vadd.s32 16, %v3263_v12  ;;  %v1343_v16 = vadd.s32 24, %v3263_v12  ;;  %v1357_v17 = vadd.s32 %v3267_v14, %v3263_v12  ;;  %v1341_v18 = vadd.s32 8, %v3263_v12 }
 0x200   : > { %2614 = vmatprep.mubr.bf16.mxu1 %v1072_v21  ;;  %v2935_v21 = vmov 0.0   ;;  %v1348_v10 = vadd.s32 64, %v3263_v12 }
 0x201   : > { %2615 = vmatmul.mubr.bf16.gmra.mxu1 %v1073_v20  ;;  %v1359_v15 = vadd.s32 %v3267_v14, %v1342_v13  ;;  %v1360_v20 = vadd.s32 %v3267_v14, %v1343_v16  ;;  %vm1373_vm3 = vcmp.lt.s32.totalorder %v1357_v17, 112  ;;  %v1349_v16 = vadd.s32 72, %v3263_v12 }
 0x203   : > { %vm1375_vm1 = vcmp.lt.s32.totalorder %v1359_v15, 112  ;;  %vm1376_vm5 = vcmp.lt.s32.totalorder %v1360_v20, 112  ;;  %v1365_v15 = vadd.s32 %v3267_v14, %v1348_v10  ;;  %v2894_v10 = vld [vmem:[%s3110_s18 + $0x10] sm:$0xff] }
 0x291   : > { %v2604_v23 = vpop.f32.mrf.mxu1 }
 0x292   : > { %v3182_v24 = vadd.f32 %v2604_v23, %v3179_v22 }
 0x293   : > { %v1179_v11 = vpop.f32.mrf.mxu1 }
 0x294   : > { %v3185_v25 = vadd.f32 %v3179_v22, %v1179_v11  ;;  %v1249_v26 = vsel %vm1242_vm0, %v3182_v24, -inf  ;;  %v1358_v11 = vadd.s32 %v3267_v14, %v1341_v18 }
 0x295   : > { %1250 = vmax.xlane.f32.xlu1 %v1249_v26  ;;  %v2605_v27 = vpop.f32.mrf.mxu1 }
 0x296   : > { %v3190_v28 = vadd.f32 %v2605_v27, %v3179_v22  ;;  %v1243_v29 = vsel %vm1242_vm0, %v3185_v25, -inf  ;;  %vm1374_vm7 = vcmp.lt.s32.totalorder %v1358_v11, 112 }
 0x297   : > { %v1182_v30 = vpop.f32.mrf.mxu1  ;;  %1244 = vmax.xlane.f32.xlu0 %v1243_v29 }
 0x298   : > { %v3195_v31 = vadd.f32 %v3179_v22, %v1182_v30  ;;  %v1252_v32 = vsel %vm1242_vm0, %v3190_v28, -inf }
 0x299   : > { %1253 = vmax.xlane.f32.xlu1 %v1252_v32 }
 0x29a   : > { %v1246_v33 = vsel %vm1242_vm0, %v3195_v31, -inf }
 0x29b   : > { %1247 = vmax.xlane.f32.xlu0 %v1246_v33 }
 0x2a1   : > { %v2608_v34 = vpop.f32.mrf.mxu1 }
 0x2a2   : > { %v3202_v35 = vadd.f32 %v2608_v34, %v3179_v22 }
 0x2a3   : > { %v1195_v36 = vpop.f32.mrf.mxu1 }
 0x2a4   : > { %v3205_v37 = vadd.f32 %v3179_v22, %v1195_v36  ;;  %v1261_v38 = vsel %vm1242_vm0, %v3202_v35, -inf  ;;  %v1346_v36 = vadd.s32 48, %v3263_v12 }
 0x2a5   : > { %v2609_v39 = vpop.f32.mrf.mxu1  ;;  %1262 = vmax.xlane.f32.xlu0 %v1261_v38 }
 0x2a6   : > { %v3210_v40 = vadd.f32 %v2609_v39, %v3179_v22  ;;  %v1255_v45 = vsel %vm1242_vm0, %v3205_v37, -inf  ;;  %v1347_v39 = vadd.s32 56, %v3263_v12 }
 0x2a7   : > { %v1198_v41 = vpop.f32.mrf.mxu1 }
 0x2a8   : > { %v3214_v43 = vadd.f32 %v3179_v22, %v1198_v41  ;;  %v1264_v44 = vsel %vm1242_vm0, %v3210_v40, -inf  ;;  %v1344_v41 = vadd.s32 32, %v3263_v12 }
 0x2a9   : > { %1265 = vmax.xlane.f32.xlu1 %v1264_v44  ;;  %1256 = vmax.xlane.f32.xlu0 %v1255_v45  ;;  %v2936_v44 = vmov 2  }
 0x2aa   : > { %v1258_v47 = vsel %vm1242_vm0, %v3214_v43, -inf }
 0x2ad   : > { %1259 = vmax.xlane.f32.xlu1 %v1258_v47  ;;  %v1364_v47 = vadd.s32 %v3267_v14, %v1347_v39 }
 0x2af   : > { %vm1380_vm11 = vcmp.lt.s32.totalorder %v1364_v47, 112 }
 0x2b1   : > { %v2612_v48 = vpop.f32.mrf.mxu1 }
 0x2b2   : > { %v3224_v49 = vadd.f32 %v2612_v48, %v3179_v22  ;;  %v1361_v48 = vadd.s32 %v3267_v14, %v1344_v41 }
 0x2b3   : > { %v1211_v50 = vpop.f32.mrf.mxu1 }
 0x2b4   : > { %v3227_v51 = vadd.f32 %v3179_v22, %v1211_v50  ;;  %v1273_v52 = vsel %vm1242_vm0, %v3224_v49, -inf  ;;  %v1345_v50 = vadd.s32 40, %v3263_v12  ;;  %vm1377_vm12 = vcmp.lt.s32.totalorder %v1361_v48, 112 }
 0x2b5   : > { %v2613_v53 = vpop.f32.mrf.mxu1  ;;  %1274 = vmax.xlane.f32.xlu0 %v1273_v52 }
 0x2b6   : > { %v3232_v54 = vadd.f32 %v2613_v53, %v3179_v22  ;;  %v1267_v55 = vsel %vm1242_vm0, %v3227_v51, -inf }
 0x2b7   : > { %v1214_v57 = vpop.f32.mrf.mxu1 }
 0x2b8   : > { %v3237_v59 = vadd.f32 %v3179_v22, %v1214_v57  ;;  %v1276_v60 = vsel %vm1242_vm0, %v3232_v54, -inf }
 0x2b9   : > { %1277 = vmax.xlane.f32.xlu1 %v1276_v60  ;;  %1268 = vmax.xlane.f32.xlu0 %v1267_v55 }
 0x2ba   : > { %v1270_v61 = vsel %vm1242_vm0, %v3237_v59, -inf }
 0x2bd   : > { %1271 = vmax.xlane.f32.xlu1 %v1270_v61 }
 0x2c1   : > { %v2616_v62 = vpop.f32.mrf.mxu1 }
 0x2c2   : > { %v3244_v63 = vadd.f32 %v2616_v62, %v3179_v22 }
 0x2c3   : > { %v1227_v0 = vpop.f32.mrf.mxu1 }
 0x2c4   : > { %v3247_v1 = vadd.f32 %v3179_v22, %v1227_v0  ;;  %v1285_v2 = vsel %vm1242_vm0, %v3244_v63, -inf }
 0x2c5   : > { %v2617_v3 = vpop.f32.mrf.mxu1  ;;  %1286 = vmax.xlane.f32.xlu0 %v1285_v2 }
 0x2c6   : > { %v3252_v4 = vadd.f32 %v2617_v3, %v3179_v22  ;;  %v1279_v5 = vsel %vm1242_vm0, %v3247_v1, -inf }
 0x2c7   : > { %v1230_v6 = vpop.f32.mrf.mxu1 }
 0x2c8   : > { %v3257_v7 = vadd.f32 %v3179_v22, %v1230_v6  ;;  %v1288_v8 = vsel %vm1242_vm0, %v3252_v4, -inf }
 0x2c9   : > { %1289 = vmax.xlane.f32.xlu1 %v1288_v8  ;;  %1280 = vmax.xlane.f32.xlu0 %v1279_v5 }
 0x2ca   : > { %v1282_v9 = vsel %vm1242_vm0, %v3257_v7, -inf }
 0x2cd   : > { %1283 = vmax.xlane.f32.xlu1 %v1282_v9  ;;  %v1351_v9 = vadd.s32 88, %v3263_v12 }
 0x2cf   : > { %v1368_v13 = vadd.s32 %v3267_v14, %v1351_v9 }
 0x31e   : > { %v1251_v19 = vpop.xlane.xlu1 %1250 }
 0x31f   : > { %vm1293_vm2 = vcmp.eq.f32.partialorder %v3182_v24, %v1251_v19 }
 0x320   : > { %v2312_v22 = vsel %vm1293_vm2, 1.0, %v2935_v21  ;;  %v1245_v23 = vpop.xlane.xlu0 %1244 }
 0x321   : > { %v1423_v26 = vsel %vm1375_vm1, %v2312_v22, 1.0  ;;  %vm1291_vm4 = vcmp.eq.f32.partialorder %v3185_v25, %v1245_v23  ;;  %v1366_v22 = vadd.s32 %v3267_v14, %v1349_v16 }
 0x322   : > { %1439 = vst.msk [vmem:[%s3279_s27 + $0x10] sm:$0xff] %vm1242_vm0, %v1423_v26  ;;  %v2310_v27 = vsel %vm1291_vm4, 1.0, %v2935_v21  ;;  %v1254_v29 = vpop.xlane.xlu1 %1253  ;;  %vm1384_vm4 = vcmp.lt.s32.totalorder %v1368_v13, 112 }
 0x323   : > { %v1421_v30 = vsel %vm1373_vm3, %v2310_v27, 1.0  ;;  %vm1294_vm6 = vcmp.eq.f32.partialorder %v3190_v28, %v1254_v29  ;;  %v1363_v28 = vadd.s32 %v3267_v14, %v1346_v36  ;;  %v1354_v27 = vadd.s32 112, %v3263_v12 }
 0x324   : > { %1437 = vst.msk [vmem:[%s3279_s27] sm:$0xff] %vm1242_vm0, %v1421_v30  ;;  %v2313_v24 = vsel %vm1294_vm6, 1.0, %v2935_v21  ;;  %v1248_v32 = vpop.xlane.xlu0 %1247 }
 0x325   : > { %v1424_v33 = vsel %vm1376_vm5, %v2313_v24, 1.0  ;;  %vm1292_vm8 = vcmp.eq.f32.partialorder %v3195_v31, %v1248_v32  ;;  %v2937_v31 = vmov 3   ;;  %vm1379_vm9 = vcmp.lt.s32.totalorder %v1363_v28, 112 }
 0x326   : > { %1440 = vst.msk [vmem:[%s3279_s27 + $0x18] sm:$0xff] %vm1242_vm0, %v1424_v33  ;;  %v2311_v25 = vsel %vm1292_vm8, 1.0, %v2935_v21  ;;  %v2648_v34 = vpack.i.bf16 %v1424_v33, %v1423_v26  ;;  %vm1381_vm5 = vcmp.lt.s32.totalorder %v1365_v15, 112  ;;  %vm1382_vm8 = vcmp.lt.s32.totalorder %v1366_v22, 112 }
 0x327   : > { %v1422_v38 = vsel %vm1374_vm7, %v2311_v25, 1.0  ;;  %v1371_v32 = vadd.s32 %v3267_v14, %v1354_v27  ;;  %v1355_v25 = vadd.s32 120, %v3263_v12  ;;  %v1353_v28 = vadd.s32 104, %v3263_v12  ;;  %v2895_v27 = vld [vmem:[%s3110_s18 + $0x8] sm:$0xff] }
 0x328   : > { %1438 = vst.msk [vmem:[%s3279_s27 + $0x8] sm:$0xff] %vm1242_vm0, %v1422_v38  ;;  %2649 = vperm.xlu1 %2647, %v2648_v34   ;;  %2655 = vperm.xlu0 %2653, %v2648_v34   ;;  %v2678_v53 = vpack.i.bf16 %v1422_v38, %v1421_v30 }
 0x329   : > { %v1372_v36 = vadd.s32 %v3267_v14, %v1355_v25 }
 0x32c   : > { %2659 = vset.pattern.permute.xlu1 %v2936_v44  ;;  %2665 = vset.pattern.permute.xlu0 %v2937_v31 }
 0x32d   : > { %2661 = vperm.xlu1 %2659, %v2648_v34   ;;  %2667 = vperm.xlu0 %2665, %v2648_v34   ;;  %v1352_v34 = vadd.s32 96, %v3263_v12 }
 0x32e   : > { %v1263_v45 = vpop.xlane.xlu0 %1262 }
 0x32f   : > { %vm1297_vm10 = vcmp.eq.f32.partialorder %v3202_v35, %v1263_v45  ;;  %v1362_v35 = vadd.s32 %v3267_v14, %v1345_v50  ;;  %v1369_v38 = vadd.s32 %v3267_v14, %v1352_v34 }
 0x330   : > { %v2316_v52 = vsel %vm1297_vm10, 1.0, %v2935_v21  ;;  %vm1387_vm10 = vcmp.lt.s32.totalorder %v1371_v32, 112 }
 0x331   : > { %v1427_v55 = vsel %vm1379_vm9, %v2316_v52, 1.0  ;;  %2677 = vset.pattern.permute.xlu1 %v2933_v42  ;;  %2671 = vset.pattern.permute.xlu0 %v2934_v46  ;;  %vm1378_vm15 = vcmp.lt.s32.totalorder %v1362_v35, 112 }
 0x332   : > { %1443 = vst.msk [vmem:[%s3279_s27 + $0x30] sm:$0xff] %vm1242_vm0, %v1427_v55  ;;  %v1266_v57 = vpop.xlane.xlu1 %1265  ;;  %2679 = vperm.xlu1 %2677, %v2678_v53   ;;  %2673 = vperm.xlu0 %2671, %v2678_v53   ;;  %v1257_v60 = vpop.xlane.xlu0 %1256 }
 0x333   : > { %vm1298_vm13 = vcmp.eq.f32.partialorder %v3210_v40, %v1266_v57  ;;  %vm1295_vm14 = vcmp.eq.f32.partialorder %v3205_v37, %v1257_v60  ;;  %v1350_v40 = vadd.s32 80, %v3263_v12  ;;  %v1370_v12 = vadd.s32 %v3267_v14, %v1353_v28 }
 0x334   : > { %v2317_v61 = vsel %vm1298_vm13, 1.0, %v2935_v21  ;;  %v2314_v62 = vsel %vm1295_vm14, 1.0, %v2935_v21  ;;  %vm1385_vm13 = vcmp.lt.s32.totalorder %v1369_v38, 112 }
 0x335   : > { %v1428_v0 = vsel %vm1380_vm11, %v2317_v61, 1.0  ;;  %v1425_v2 = vsel %vm1377_vm12, %v2314_v62, 1.0  ;;  %v1367_v8 = vadd.s32 %v3267_v14, %v1350_v40  ;;  %vm1388_vm12 = vcmp.lt.s32.totalorder %v1372_v36, 112 }
 0x336   : > { %1444 = vst.msk [vmem:[%s3279_s27 + $0x38] sm:$0xff] %vm1242_vm0, %v1428_v0  ;;  %1441 = vst.msk [vmem:[%s3279_s27 + $0x20] sm:$0xff] %vm1242_vm0, %v1425_v2  ;;  %v1260_v3 = vpop.xlane.xlu1 %1259  ;;  %2689 = vset.pattern.permute.xlu1 %v2937_v31  ;;  %2683 = vset.pattern.permute.xlu0 %v2936_v44  ;;  %v2707_v6 = vpack.i.bf16 %v1428_v0, %v1427_v55 }
 0x337   : > { %vm1296_vm1 = vcmp.eq.f32.partialorder %v3214_v43, %v1260_v3  ;;  %2691 = vperm.xlu1 %2689, %v2678_v53   ;;  %2685 = vperm.xlu0 %2683, %v2678_v53   ;;  %vm1383_vm2 = vcmp.lt.s32.totalorder %v1367_v8, 112  ;;  %v2893_v8 = vld [vmem:[%s3110_s18 + $0x18] sm:$0xff] }
 0x338   : > { %v2315_v37 = vsel %vm1296_vm1, 1.0, %v2935_v21  ;;  %vm1386_vm1 = vcmp.lt.s32.totalorder %v1370_v12, 112 }
 0x339   : > { %v1426_v5 = vsel %vm1378_vm15, %v2315_v37, 1.0 }
 0x33a   : > { %1442 = vst.msk [vmem:[%s3279_s27 + $0x28] sm:$0xff] %vm1242_vm0, %v1426_v5  ;;  %v2719_v24 = vpack.i.bf16 %v1426_v5, %v1425_v2 }
 0x33b   : > { %2695 = vset.pattern.permute.xlu1 %v2934_v46  ;;  %2708 = vperm.xlu0 %2683, %v2707_v6  }
 0x33c   : > { %2697 = vperm.xlu1 %2695, %v2707_v6  }
 0x33e   : > { %v1275_v43 = vpop.xlane.xlu0 %1274 }
 0x33f   : > { %vm1301_vm3 = vcmp.eq.f32.partialorder %v3224_v49, %v1275_v43 }
 0x340   : > { %v2320_v17 = vsel %vm1301_vm3, 1.0, %v2935_v21  ;;  %2701 = vset.pattern.permute.xlu1 %v2933_v42 }
 0x341   : > { %v1431_v18 = vsel %vm1383_vm2, %v2320_v17, 1.0  ;;  %2703 = vperm.xlu1 %2701, %v2707_v6  }
 0x342   : > { %1447 = vst.msk [vmem:[%s3279_s27 + $0x50] sm:$0xff] %vm1242_vm0, %v1431_v18  ;;  %v1278_v19 = vpop.xlane.xlu1 %1277  ;;  %v1269_v20 = vpop.xlane.xlu0 %1268 }
 0x343   : > { %vm1302_vm6 = vcmp.eq.f32.partialorder %v3232_v54, %v1278_v19  ;;  %vm1299_vm7 = vcmp.eq.f32.partialorder %v3227_v51, %v1269_v20 }
 0x344   : > { %v2321_v49 = vsel %vm1302_vm6, 1.0, %v2935_v21  ;;  %v2318_v23 = vsel %vm1299_vm7, 1.0, %v2935_v21 }
 0x345   : > { %v1432_v11 = vsel %vm1384_vm4, %v2321_v49, 1.0  ;;  %v1429_v26 = vsel %vm1381_vm5, %v2318_v23, 1.0  ;;  %2712 = vset.pattern.permute.xlu1 %v2937_v31 }
 0x346   : > { %1448 = vst.msk [vmem:[%s3279_s27 + $0x58] sm:$0xff] %vm1242_vm0, %v1432_v11  ;;  %1445 = vst.msk [vmem:[%s3279_s27 + $0x40] sm:$0xff] %vm1242_vm0, %v1429_v26  ;;  %v1272_v29 = vpop.xlane.xlu1 %1271  ;;  %2714 = vperm.xlu1 %2712, %v2707_v6   ;;  %v3352_v54 = vpack.i.bf16 %v1432_v11, %v1431_v18 }
 0x347   : > { %vm1300_vm9 = vcmp.eq.f32.partialorder %v3237_v59, %v1272_v29 }
 0x348   : > { %v2319_v51 = vsel %vm1300_vm9, 1.0, %v2935_v21  ;;  %2755 = vperm.xlu0 %2683, %v3352_v54  }
 0x349   : > { %v1430_v30 = vsel %vm1382_vm8, %v2319_v51, 1.0 }
 0x34a   : > { %1446 = vst.msk [vmem:[%s3279_s27 + $0x48] sm:$0xff] %vm1242_vm0, %v1430_v30  ;;  %2718 = vset.pattern.permute.xlu1 %v2934_v46  ;;  %v2772_v33 = vpack.i.bf16 %v1430_v30, %v1429_v26 }
 0x34b   : > { %2720 = vperm.xlu1 %2718, %v2719_v24  }
 0x34c   : > { %2771 = vset.pattern.permute.xlu0 %v2933_v42 }
 0x34d   : > { %2773 = vperm.xlu0 %2771, %v2772_v33  }
 0x34e   : > { %v1287_v59 = vpop.xlane.xlu0 %1286 }
 0x34f   : > { %vm1305_vm11 = vcmp.eq.f32.partialorder %v3244_v63, %v1287_v59  ;;  %2724 = vset.pattern.permute.xlu1 %v2933_v42 }
 0x350   : > { %v2324_v39 = vsel %vm1305_vm11, 1.0, %v2935_v21  ;;  %2726 = vperm.xlu1 %2724, %v2719_v24  }
 0x351   : > { %v1435_v41 = vsel %vm1387_vm10, %v2324_v39, 1.0  ;;  %2783 = vset.pattern.permute.xlu0 %v2937_v31 }
 0x352   : > { %1451 = vst.msk [vmem:[%s3279_s27 + $0x70] sm:$0xff] %vm1242_vm0, %v1435_v41  ;;  %v1290_v45 = vpop.xlane.xlu1 %1289  ;;  %2785 = vperm.xlu0 %2783, %v2772_v33   ;;  %v1281_v47 = vpop.xlane.xlu0 %1280 }
 0x353   : > { %vm1306_vm14 = vcmp.eq.f32.partialorder %v3252_v4, %v1290_v45  ;;  %vm1303_vm15 = vcmp.eq.f32.partialorder %v3247_v1, %v1281_v47 }
 0x354   : > { %v2325_v63 = vsel %vm1306_vm14, 1.0, %v2935_v21  ;;  %v2322_v48 = vsel %vm1303_vm15, 1.0, %v2935_v21  ;;  %2730 = vset.pattern.permute.xlu1 %v2936_v44 }
 0x355   : > { %v1436_v50 = vsel %vm1388_vm12, %v2325_v63, 1.0  ;;  %v1433_v52 = vsel %vm1385_vm13, %v2322_v48, 1.0  ;;  %2732 = vperm.xlu1 %2730, %v2719_v24  }
 0x356   : > { %1452 = vst.msk [vmem:[%s3279_s27 + $0x78] sm:$0xff] %vm1242_vm0, %v1436_v50  ;;  %1449 = vst.msk [vmem:[%s3279_s27 + $0x60] sm:$0xff] %vm1242_vm0, %v1433_v52  ;;  %v1284_v14 = vpop.xlane.xlu1 %1283  ;;  %2801 = vset.pattern.permute.xlu0 %v2936_v44  ;;  %v2802_v4 = vpack.i.bf16 %v1436_v50, %v1435_v41 }
 0x357   : > { %vm1304_vm2 = vcmp.eq.f32.partialorder %v3257_v7, %v1284_v14 }
 0x358   : > { %v2323_v1 = vsel %vm1304_vm2, 1.0, %v2935_v21  ;;  %2803 = vperm.xlu0 %2801, %v2802_v4  }
 0x359   : > { %v1434_v53 = vsel %vm1386_vm1, %v2323_v1, 1.0  ;;  %2736 = vset.pattern.permute.xlu1 %v2937_v31 }
 0x35a   : > { %1450 = vst.msk [vmem:[%s3279_s27 + $0x68] sm:$0xff] %vm1242_vm0, %v1434_v53  ;;  %2738 = vperm.xlu1 %2736, %v2719_v24   ;;  %v2814_v55 = vpack.i.bf16 %v1434_v53, %v1433_v52 }
 0x35c   : > { %2813 = vset.pattern.permute.xlu0 %v2933_v42 }
 0x35d   : > { %2815 = vperm.xlu0 %2813, %v2814_v55  }
 0x35e   : > { %2742 = vset.pattern.permute.xlu1 %v2934_v46 }
 0x35f   : > { %2744 = vperm.xlu1 %2742, %v3352_v54  }
 0x361   : > { %2825 = vset.pattern.permute.xlu0 %v2937_v31 }
 0x362   : > { %2827 = vperm.xlu0 %2825, %v2814_v55  }
 0x363   : > { %2748 = vset.pattern.permute.xlu1 %v2933_v42 }
 0x364   : > { %2750 = vperm.xlu1 %2748, %v3352_v54  }
 0x368   : > { %2759 = vset.pattern.permute.xlu1 %v2937_v31 }
 0x369   : > { %2761 = vperm.xlu1 %2759, %v3352_v54   ;;  %v2896_v54 = vld [vmem:[%s3110_s18] sm:$0xff] }
 0x36d   : > { %2765 = vset.pattern.permute.xlu1 %v2934_v46 }
 0x36e   : > { %2767 = vperm.xlu1 %2765, %v2772_v33  }
 0x372   : > { %2777 = vset.pattern.permute.xlu1 %v2936_v44 }
 0x373   : > { %2779 = vperm.xlu1 %2777, %v2772_v33  }
 0x377   : > { %2789 = vset.pattern.permute.xlu1 %v2934_v46 }
 0x378   : > { %2791 = vperm.xlu1 %2789, %v2802_v4  }
 0x37c   : > { %2795 = vset.pattern.permute.xlu1 %v2933_v42 }
 0x37d   : > { %2797 = vperm.xlu1 %2795, %v2802_v4  }
 0x381   : > { %2807 = vset.pattern.permute.xlu1 %v2934_v46 }
 0x382   : > { %2809 = vperm.xlu1 %2807, %v2814_v55  }
 0x386   : > { %2819 = vset.pattern.permute.xlu1 %v2936_v44 }
 0x387   : > { %2821 = vperm.xlu1 %2819, %v2814_v55  }
 0x38b   : > { %2831 = vset.pattern.permute.xlu1 %v2937_v31 }
 0x38c   : > { %2833 = vperm.xlu1 %2831, %v2802_v4  }
 0x3a3   : > { %v2650_v7 = vpop.permute.xlu1 %2649  ;;  %v2656_v21 = vpop.permute.xlu0 %2655 }
 0x3a4   : > { %v2652_v57 = vunpack.i.h.bf16 %v2650_v7  ;;  %v2651_v60 = vunpack.i.l.bf16 %v2650_v7  ;;  %v2658_v35 = vunpack.i.h.bf16 %v2656_v21  ;;  %v2657_v61 = vunpack.i.l.bf16 %v2656_v21 }
 0x3a6   : > { %v1536_v62 = vmul.f32 %v2652_v57, %v3118_v58  ;;  %v1535_v42 = vmul.f32 %v2651_v60, %v3115_v56  ;;  %v1696_v46 = vmul.f32 %v2658_v35, %v3118_v58  ;;  %v1695_v0 = vmul.f32 %v2657_v61, %v3115_v56  ;;  %v2897_v57 = vld [vmem:[%s3110_s18 + $0x38] sm:$0xff]  ;;  %v2898_v35 = vld [vmem:[%s3110_s18 + $0x30] sm:$0xff] }
 0x3a8   : > { %v2397_v44 = vpack.c.bf16 %v1536_v62, %v1536_v62  ;;  %v2396_v31 = vpack.c.bf16 %v1535_v42, %v1535_v42  ;;  %v2413_v2 = vpack.c.bf16 %v1696_v46, %v1696_v46  ;;  %v2412_v3 = vpack.c.bf16 %v1695_v0, %v1695_v0  ;;  %v2662_v40 = vpop.permute.xlu1 %2661  ;;  %v2668_v37 = vpop.permute.xlu0 %2667 }
 0x3a9   : > { %v2664_v58 = vunpack.i.h.bf16 %v2662_v40  ;;  %v2663_v5 = vunpack.i.l.bf16 %v2662_v40  ;;  %v2670_v56 = vunpack.i.h.bf16 %v2668_v37  ;;  %v2669_v6 = vunpack.i.l.bf16 %v2668_v37 }
 0x3aa   : > { %1616 = vst [vmem:[%s3412_s9 + $0x30] sm:$0xf] %v2397_v44  ;;  %1615 = vst [vmem:[%s3412_s9 + $0x20] sm:$0xf] %v2396_v31 }
 0x3ab   : > { %1776 = vst [vmem:[%s3412_s9 + $0x34] sm:$0xf] %v2413_v2  ;;  %1775 = vst [vmem:[%s3412_s9 + $0x24] sm:$0xf] %v2412_v3  ;;  %v1856_v9 = vmul.f32 %v2893_v8, %v2664_v58  ;;  %v1855_v43 = vmul.f32 %v2894_v10, %v2663_v5  ;;  %v2016_v13 = vmul.f32 %v2893_v8, %v2670_v56 }
 0x3ac   : > { %v2015_v15 = vmul.f32 %v2894_v10, %v2669_v6 }
 0x3ad   : > { %v2429_v16 = vpack.c.bf16 %v1856_v9, %v1856_v9  ;;  %v2428_v17 = vpack.c.bf16 %v1855_v43, %v1855_v43  ;;  %v2445_v18 = vpack.c.bf16 %v2016_v13, %v2016_v13  ;;  %v2680_v20 = vpop.permute.xlu1 %2679  ;;  %v2674_v22 = vpop.permute.xlu0 %2673 }
 0x3ae   : > { %v2444_v19 = vpack.c.bf16 %v2015_v15, %v2015_v15  ;;  %v2682_v49 = vunpack.i.h.bf16 %v2680_v20  ;;  %v2681_v23 = vunpack.i.l.bf16 %v2680_v20  ;;  %v2676_v11 = vunpack.i.h.bf16 %v2674_v22 }
 0x3af   : > { %v2675_v26 = vunpack.i.l.bf16 %v2674_v22  ;;  %1936 = vst [vmem:[%s3412_s9 + $0x38] sm:$0xf] %v2429_v16  ;;  %1935 = vst [vmem:[%s3412_s9 + $0x28] sm:$0xf] %v2428_v17  ;;  %v3447_v22 = vld [vmem:[%s3110_s18 + $0x50] sm:$0xff] }
 0x3b0   : > { %2096 = vst [vmem:[%s3412_s9 + $0x3c] sm:$0xf] %v2445_v18  ;;  %2095 = vst [vmem:[%s3412_s9 + $0x2c] sm:$0xf] %v2444_v19  ;;  %v1694_v29 = vmul.f32 %v2895_v27, %v2682_v49  ;;  %v1693_v51 = vmul.f32 %v2896_v54, %v2681_v23  ;;  %v1534_v30 = vmul.f32 %v2895_v27, %v2676_v11  ;;  %v3443_v19 = vld [vmem:[%s3110_s18 + $0x58] sm:$0xff] }
 0x3b1   : > { %v1533_v24 = vmul.f32 %v2896_v54, %v2675_v26 }
 0x3b2   : > { %v2411_v32 = vpack.c.bf16 %v1694_v29, %v1694_v29  ;;  %v2410_v33 = vpack.c.bf16 %v1693_v51, %v1693_v51  ;;  %v2395_v25 = vpack.c.bf16 %v1534_v30, %v1534_v30  ;;  %v2692_v59 = vpop.permute.xlu1 %2691  ;;  %v2686_v36 = vpop.permute.xlu0 %2685  ;;  %v2901_v51 = vld [vmem:[%s3110_s18 + $0x28] sm:$0xff] }
 0x3b3   : > { %v2394_v34 = vpack.c.bf16 %v1533_v24, %v1533_v24  ;;  %v2694_v38 = vunpack.i.h.bf16 %v2692_v59  ;;  %v2693_v28 = vunpack.i.l.bf16 %v2692_v59  ;;  %v2688_v39 = vunpack.i.h.bf16 %v2686_v36  ;;  %v2902_v24 = vld [vmem:[%s3110_s18 + $0x20] sm:$0xff] }
 0x3b4   : > { %v2687_v41 = vunpack.i.l.bf16 %v2686_v36  ;;  %1774 = vst [vmem:[%s3412_s9 + $0x14] sm:$0xf] %v2411_v32  ;;  %1773 = vst [vmem:[%s3412_s9 + $0x4] sm:$0xf] %v2410_v33  ;;  %v3457_v36 = vld [vmem:[%s3110_s18 + $0x48] sm:$0xff] }
 0x3b5   : > { %1614 = vst [vmem:[%s3412_s9 + $0x10] sm:$0xf] %v2395_v25  ;;  %1613 = vst [vmem:[%s3412_s9] sm:$0xf] %v2394_v34  ;;  %v2014_v45 = vmul.f32 %v2895_v27, %v2694_v38  ;;  %v2013_v47 = vmul.f32 %v2896_v54, %v2693_v28  ;;  %v1854_v12 = vmul.f32 %v2895_v27, %v2688_v39  ;;  %v3461_v28 = vld [vmem:[%s3110_s18 + $0x40] sm:$0xff] }
 0x3b6   : > { %v1853_v63 = vmul.f32 %v2896_v54, %v2687_v41  ;;  %v2709_v48 = vpop.permute.xlu0 %2708 }
 0x3b7   : > { %v2443_v50 = vpack.c.bf16 %v2014_v45, %v2014_v45  ;;  %v2442_v52 = vpack.c.bf16 %v2013_v47, %v2013_v47  ;;  %v2427_v14 = vpack.c.bf16 %v1854_v12, %v1854_v12  ;;  %v2698_v1 = vpop.permute.xlu1 %2697  ;;  %v2711_v53 = vunpack.i.h.bf16 %v2709_v48 }
 0x3b8   : > { %v2426_v4 = vpack.c.bf16 %v1853_v63, %v1853_v63  ;;  %v2710_v55 = vunpack.i.l.bf16 %v2709_v48  ;;  %v2700_v7 = vunpack.i.h.bf16 %v2698_v1  ;;  %v2699_v21 = vunpack.i.l.bf16 %v2698_v1 }
 0x3b9   : > { %2094 = vst [vmem:[%s3412_s9 + $0x1c] sm:$0xf] %v2443_v50  ;;  %2093 = vst [vmem:[%s3412_s9 + $0xc] sm:$0xf] %v2442_v52  ;;  %v1860_v60 = vmul.f32 %v2897_v57, %v2711_v53 }
 0x3ba   : > { %1934 = vst [vmem:[%s3412_s9 + $0x18] sm:$0xf] %v2427_v14  ;;  %1933 = vst [vmem:[%s3412_s9 + $0x8] sm:$0xf] %v2426_v4  ;;  %v1859_v61 = vmul.f32 %v2898_v35, %v2710_v55  ;;  %v1540_v62 = vmul.f32 %v2897_v57, %v2700_v7  ;;  %v1539_v42 = vmul.f32 %v2898_v35, %v2699_v21 }
 0x3bb   : > { %v2433_v46 = vpack.c.bf16 %v1860_v60, %v1860_v60 }
 0x3bc   : > { %v2432_v0 = vpack.c.bf16 %v1859_v61, %v1859_v61  ;;  %v2401_v44 = vpack.c.bf16 %v1540_v62, %v1540_v62  ;;  %v2400_v31 = vpack.c.bf16 %v1539_v42, %v1539_v42  ;;  %v2704_v2 = vpop.permute.xlu1 %2703 }
 0x3bd   : > { %v2706_v3 = vunpack.i.h.bf16 %v2704_v2  ;;  %v2705_v40 = vunpack.i.l.bf16 %v2704_v2  ;;  %1940 = vst [vmem:[%s3412_s9 + $0x78] sm:$0xf] %v2433_v46 }
 0x3be   : > { %1939 = vst [vmem:[%s3412_s9 + $0x68] sm:$0xf] %v2432_v0  ;;  %1620 = vst [vmem:[%s3412_s9 + $0x70] sm:$0xf] %v2401_v44 }
 0x3bf   : > { %1619 = vst [vmem:[%s3412_s9 + $0x60] sm:$0xf] %v2400_v31  ;;  %v1700_v37 = vmul.f32 %v2897_v57, %v2706_v3  ;;  %v1699_v58 = vmul.f32 %v2898_v35, %v2705_v40  ;;  %v3475_v40 = vld [vmem:[%s3110_s18 + $0x78] sm:$0xff] }
 0x3c1   : > { %v2417_v5 = vpack.c.bf16 %v1700_v37, %v1700_v37  ;;  %v2416_v56 = vpack.c.bf16 %v1699_v58, %v1699_v58  ;;  %v2715_v6 = vpop.permute.xlu1 %2714  ;;  %v3479_v58 = vld [vmem:[%s3110_s18 + $0x70] sm:$0xff] }
 0x3c2   : > { %v2717_v8 = vunpack.i.h.bf16 %v2715_v6  ;;  %v2716_v9 = vunpack.i.l.bf16 %v2715_v6 }
 0x3c3   : > { %1780 = vst [vmem:[%s3412_s9 + $0x74] sm:$0xf] %v2417_v5  ;;  %1779 = vst [vmem:[%s3412_s9 + $0x64] sm:$0xf] %v2416_v56  ;;  %v2756_v10 = vpop.permute.xlu0 %2755 }
 0x3c4   : > { %v2020_v43 = vmul.f32 %v2897_v57, %v2717_v8  ;;  %v2019_v13 = vmul.f32 %v2898_v35, %v2716_v9  ;;  %v2758_v15 = vunpack.i.h.bf16 %v2756_v10  ;;  %v2757_v16 = vunpack.i.l.bf16 %v2756_v10 }
 0x3c6   : > { %v2449_v17 = vpack.c.bf16 %v2020_v43, %v2020_v43  ;;  %v2448_v18 = vpack.c.bf16 %v2019_v13, %v2019_v13  ;;  %v1864_v20 = vmul.f32 %v3443_v19, %v2758_v15  ;;  %v1863_v49 = vmul.f32 %v3447_v22, %v2757_v16  ;;  %v2721_v23 = vpop.permute.xlu1 %2720 }
 0x3c7   : > { %v2723_v11 = vunpack.i.h.bf16 %v2721_v23  ;;  %v2722_v26 = vunpack.i.l.bf16 %v2721_v23 }
 0x3c8   : > { %2100 = vst [vmem:[%s3412_s9 + $0x7c] sm:$0xf] %v2449_v17  ;;  %2099 = vst [vmem:[%s3412_s9 + $0x6c] sm:$0xf] %v2448_v18  ;;  %v2437_v27 = vpack.c.bf16 %v1864_v20, %v1864_v20  ;;  %v2436_v29 = vpack.c.bf16 %v1863_v49, %v1863_v49  ;;  %v2774_v54 = vpop.permute.xlu0 %2773  ;;  %v3487_v49 = vld [vmem:[%s3110_s18 + $0x68] sm:$0xff] }
 0x3c9   : > { %v1538_v30 = vmul.f32 %v2901_v51, %v2723_v11  ;;  %v1537_v32 = vmul.f32 %v2902_v24, %v2722_v26  ;;  %v2776_v33 = vunpack.i.h.bf16 %v2774_v54  ;;  %v2775_v25 = vunpack.i.l.bf16 %v2774_v54  ;;  %v3491_v11 = vld [vmem:[%s3110_s18 + $0x60] sm:$0xff] }
 0x3ca   : > { %1944 = vst [vmem:[%s3412_s9 + $0xb8] sm:$0xf] %v2437_v27  ;;  %1943 = vst [vmem:[%s3412_s9 + $0xa8] sm:$0xf] %v2436_v29 }
 0x3cb   : > { %v2399_v34 = vpack.c.bf16 %v1538_v30, %v1538_v30  ;;  %v2398_v59 = vpack.c.bf16 %v1537_v32, %v1537_v32  ;;  %v1702_v38 = vmul.f32 %v3457_v36, %v2776_v33  ;;  %v1701_v39 = vmul.f32 %v3461_v28, %v2775_v25  ;;  %v2727_v41 = vpop.permute.xlu1 %2726 }
 0x3cc   : > { %v2729_v45 = vunpack.i.h.bf16 %v2727_v41  ;;  %v2728_v47 = vunpack.i.l.bf16 %v2727_v41 }
 0x3cd   : > { %1618 = vst [vmem:[%s3412_s9 + $0x50] sm:$0xf] %v2399_v34  ;;  %1617 = vst [vmem:[%s3412_s9 + $0x40] sm:$0xf] %v2398_v59  ;;  %v2419_v12 = vpack.c.bf16 %v1702_v38, %v1702_v38  ;;  %v2418_v63 = vpack.c.bf16 %v1701_v39, %v1701_v39  ;;  %v2786_v48 = vpop.permute.xlu0 %2785 }
 0x3ce   : > { %v1698_v50 = vmul.f32 %v2901_v51, %v2729_v45  ;;  %v1697_v52 = vmul.f32 %v2902_v24, %v2728_v47  ;;  %v2788_v14 = vunpack.i.h.bf16 %v2786_v48  ;;  %v2787_v4 = vunpack.i.l.bf16 %v2786_v48 }
 0x3cf   : > { %1782 = vst [vmem:[%s3412_s9 + $0x94] sm:$0xf] %v2419_v12  ;;  %1781 = vst [vmem:[%s3412_s9 + $0x84] sm:$0xf] %v2418_v63 }
 0x3d0   : > { %v2415_v1 = vpack.c.bf16 %v1698_v50, %v1698_v50  ;;  %v2414_v53 = vpack.c.bf16 %v1697_v52, %v1697_v52  ;;  %v2022_v55 = vmul.f32 %v3457_v36, %v2788_v14  ;;  %v2021_v7 = vmul.f32 %v3461_v28, %v2787_v4  ;;  %v2733_v21 = vpop.permute.xlu1 %2732 }
 0x3d1   : > { %v2735_v57 = vunpack.i.h.bf16 %v2733_v21  ;;  %v2734_v60 = vunpack.i.l.bf16 %v2733_v21 }
 0x3d2   : > { %1778 = vst [vmem:[%s3412_s9 + $0x54] sm:$0xf] %v2415_v1  ;;  %1777 = vst [vmem:[%s3412_s9 + $0x44] sm:$0xf] %v2414_v53  ;;  %v2451_v35 = vpack.c.bf16 %v2022_v55, %v2022_v55  ;;  %v2450_v61 = vpack.c.bf16 %v2021_v7, %v2021_v7 }
 0x3d3   : > { %v1858_v62 = vmul.f32 %v2901_v51, %v2735_v57  ;;  %v1857_v42 = vmul.f32 %v2902_v24, %v2734_v60  ;;  %v2804_v46 = vpop.permute.xlu0 %2803 }
 0x3d4   : > { %2102 = vst [vmem:[%s3412_s9 + $0x9c] sm:$0xf] %v2451_v35  ;;  %2101 = vst [vmem:[%s3412_s9 + $0x8c] sm:$0xf] %v2450_v61  ;;  %v2806_v0 = vunpack.i.h.bf16 %v2804_v46  ;;  %v2805_v44 = vunpack.i.l.bf16 %v2804_v46 }
 0x3d5   : > { %v2431_v31 = vpack.c.bf16 %v1858_v62, %v1858_v62  ;;  %v2430_v2 = vpack.c.bf16 %v1857_v42, %v1857_v42  ;;  %v2739_v3 = vpop.permute.xlu1 %2738 }
 0x3d6   : > { %v1868_v37 = vmul.f32 %v3475_v40, %v2806_v0  ;;  %v1867_v5 = vmul.f32 %v3479_v58, %v2805_v44  ;;  %v2741_v56 = vunpack.i.h.bf16 %v2739_v3  ;;  %v2740_v6 = vunpack.i.l.bf16 %v2739_v3 }
 0x3d7   : > { %1938 = vst [vmem:[%s3412_s9 + $0x58] sm:$0xf] %v2431_v31  ;;  %1937 = vst [vmem:[%s3412_s9 + $0x48] sm:$0xf] %v2430_v2 }
 0x3d8   : > { %v2441_v8 = vpack.c.bf16 %v1868_v37, %v1868_v37  ;;  %v2440_v9 = vpack.c.bf16 %v1867_v5, %v1867_v5  ;;  %v2018_v10 = vmul.f32 %v2901_v51, %v2741_v56  ;;  %v2017_v43 = vmul.f32 %v2902_v24, %v2740_v6  ;;  %v2816_v13 = vpop.permute.xlu0 %2815 }
 0x3d9   : > { %v2818_v15 = vunpack.i.h.bf16 %v2816_v13  ;;  %v2817_v16 = vunpack.i.l.bf16 %v2816_v13 }
 0x3da   : > { %1948 = vst [vmem:[%s3412_s9 + $0xf8] sm:$0xf] %v2441_v8  ;;  %1947 = vst [vmem:[%s3412_s9 + $0xe8] sm:$0xf] %v2440_v9  ;;  %v2447_v17 = vpack.c.bf16 %v2018_v10, %v2018_v10  ;;  %v2446_v18 = vpack.c.bf16 %v2017_v43, %v2017_v43  ;;  %v2745_v20 = vpop.permute.xlu1 %2744 }
 0x3db   : > { %v1706_v23 = vmul.f32 %v3487_v49, %v2818_v15  ;;  %v1705_v26 = vmul.f32 %v3491_v11, %v2817_v16  ;;  %v2747_v27 = vunpack.i.h.bf16 %v2745_v20  ;;  %v2746_v29 = vunpack.i.l.bf16 %v2745_v20 }
 0x3dc   : > { %2098 = vst [vmem:[%s3412_s9 + $0x5c] sm:$0xf] %v2447_v17  ;;  %2097 = vst [vmem:[%s3412_s9 + $0x4c] sm:$0xf] %v2446_v18 }
 0x3dd   : > { %v2423_v54 = vpack.c.bf16 %v1706_v23, %v1706_v23  ;;  %v2422_v51 = vpack.c.bf16 %v1705_v26, %v1705_v26  ;;  %v1544_v30 = vmul.f32 %v3443_v19, %v2747_v27  ;;  %v1543_v24 = vmul.f32 %v3447_v22, %v2746_v29  ;;  %v2828_v32 = vpop.permute.xlu0 %2827 }
 0x3de   : > { %v2830_v33 = vunpack.i.h.bf16 %v2828_v32  ;;  %v2829_v25 = vunpack.i.l.bf16 %v2828_v32 }
 0x3df   : > { %1786 = vst [vmem:[%s3412_s9 + $0xd4] sm:$0xf] %v2423_v54  ;;  %1785 = vst [vmem:[%s3412_s9 + $0xc4] sm:$0xf] %v2422_v51  ;;  %v2405_v34 = vpack.c.bf16 %v1544_v30, %v1544_v30  ;;  %v2404_v59 = vpack.c.bf16 %v1543_v24, %v1543_v24  ;;  %v2751_v38 = vpop.permute.xlu1 %2750 }
 0x3e0   : > { %v2026_v39 = vmul.f32 %v3487_v49, %v2830_v33  ;;  %v2025_v41 = vmul.f32 %v3491_v11, %v2829_v25  ;;  %v2753_v45 = vunpack.i.h.bf16 %v2751_v38  ;;  %v2752_v47 = vunpack.i.l.bf16 %v2751_v38 }
 0x3e1   : > { %1624 = vst [vmem:[%s3412_s9 + $0xb0] sm:$0xf] %v2405_v34  ;;  %1623 = vst [vmem:[%s3412_s9 + $0xa0] sm:$0xf] %v2404_v59 }
 0x3e2   : > { %v2455_v12 = vpack.c.bf16 %v2026_v39, %v2026_v39  ;;  %v2454_v63 = vpack.c.bf16 %v2025_v41, %v2025_v41  ;;  %v1704_v48 = vmul.f32 %v3443_v19, %v2753_v45  ;;  %v1703_v50 = vmul.f32 %v3447_v22, %v2752_v47 }
 0x3e4   : > { %2106 = vst [vmem:[%s3412_s9 + $0xdc] sm:$0xf] %v2455_v12  ;;  %2105 = vst [vmem:[%s3412_s9 + $0xcc] sm:$0xf] %v2454_v63  ;;  %v2421_v52 = vpack.c.bf16 %v1704_v48, %v1704_v48  ;;  %v2420_v14 = vpack.c.bf16 %v1703_v50, %v1703_v50  ;;  %v2762_v4 = vpop.permute.xlu1 %2761 }
 0x3e5   : > { %v2764_v1 = vunpack.i.h.bf16 %v2762_v4  ;;  %v2763_v53 = vunpack.i.l.bf16 %v2762_v4 }
 0x3e6   : > { %1784 = vst [vmem:[%s3412_s9 + $0xb4] sm:$0xf] %v2421_v52  ;;  %1783 = vst [vmem:[%s3412_s9 + $0xa4] sm:$0xf] %v2420_v14 }
 0x3e7   : > { %v2024_v55 = vmul.f32 %v3443_v19, %v2764_v1  ;;  %v2023_v7 = vmul.f32 %v3447_v22, %v2763_v53 }
 0x3e9   : > { %v2453_v21 = vpack.c.bf16 %v2024_v55, %v2024_v55  ;;  %v2452_v57 = vpack.c.bf16 %v2023_v7, %v2023_v7  ;;  %v2768_v60 = vpop.permute.xlu1 %2767 }
 0x3ea   : > { %v2770_v35 = vunpack.i.h.bf16 %v2768_v60  ;;  %v2769_v61 = vunpack.i.l.bf16 %v2768_v60 }
 0x3eb   : > { %2104 = vst [vmem:[%s3412_s9 + $0xbc] sm:$0xf] %v2453_v21  ;;  %2103 = vst [vmem:[%s3412_s9 + $0xac] sm:$0xf] %v2452_v57 }
 0x3ec   : > { %v1542_v62 = vmul.f32 %v3457_v36, %v2770_v35  ;;  %v1541_v42 = vmul.f32 %v3461_v28, %v2769_v61 }
 0x3ee   : > { %v2403_v46 = vpack.c.bf16 %v1542_v62, %v1542_v62  ;;  %v2402_v0 = vpack.c.bf16 %v1541_v42, %v1541_v42  ;;  %v2780_v19 = vpop.permute.xlu1 %2779 }
 0x3ef   : > { %v2782_v44 = vunpack.i.h.bf16 %v2780_v19  ;;  %v2781_v31 = vunpack.i.l.bf16 %v2780_v19 }
 0x3f0   : > { %1622 = vst [vmem:[%s3412_s9 + $0x90] sm:$0xf] %v2403_v46  ;;  %1621 = vst [vmem:[%s3412_s9 + $0x80] sm:$0xf] %v2402_v0 }
 0x3f1   : > { %v1862_v22 = vmul.f32 %v3457_v36, %v2782_v44  ;;  %v1861_v2 = vmul.f32 %v3461_v28, %v2781_v31 }
 0x3f3   : > { %v2435_v3 = vpack.c.bf16 %v1862_v22, %v1862_v22  ;;  %v2434_v37 = vpack.c.bf16 %v1861_v2, %v1861_v2  ;;  %v2792_v5 = vpop.permute.xlu1 %2791 }
 0x3f4   : > { %v2794_v56 = vunpack.i.h.bf16 %v2792_v5  ;;  %v2793_v6 = vunpack.i.l.bf16 %v2792_v5 }
 0x3f5   : > { %1942 = vst [vmem:[%s3412_s9 + $0x98] sm:$0xf] %v2435_v3  ;;  %1941 = vst [vmem:[%s3412_s9 + $0x88] sm:$0xf] %v2434_v37 }
 0x3f6   : > { %v1548_v8 = vmul.f32 %v3475_v40, %v2794_v56  ;;  %v1547_v9 = vmul.f32 %v3479_v58, %v2793_v6 }
 0x3f8   : > { %v2409_v10 = vpack.c.bf16 %v1548_v8, %v1548_v8  ;;  %v2408_v43 = vpack.c.bf16 %v1547_v9, %v1547_v9  ;;  %v2798_v36 = vpop.permute.xlu1 %2797 }
 0x3f9   : > { %v2800_v13 = vunpack.i.h.bf16 %v2798_v36  ;;  %v2799_v15 = vunpack.i.l.bf16 %v2798_v36 }
 0x3fa   : > { %1628 = vst [vmem:[%s3412_s9 + $0xf0] sm:$0xf] %v2409_v10  ;;  %1627 = vst [vmem:[%s3412_s9 + $0xe0] sm:$0xf] %v2408_v43 }
 0x3fb   : > { %v1708_v28 = vmul.f32 %v3475_v40, %v2800_v13  ;;  %v1707_v16 = vmul.f32 %v3479_v58, %v2799_v15 }
 0x3fd   : > { %v2425_v17 = vpack.c.bf16 %v1708_v28, %v1708_v28  ;;  %v2424_v18 = vpack.c.bf16 %v1707_v16, %v1707_v16  ;;  %v2810_v20 = vpop.permute.xlu1 %2809 }
 0x3fe   : > { %v2812_v23 = vunpack.i.h.bf16 %v2810_v20  ;;  %v2811_v26 = vunpack.i.l.bf16 %v2810_v20 }
 0x3ff   : > { %1788 = vst [vmem:[%s3412_s9 + $0xf4] sm:$0xf] %v2425_v17  ;;  %1787 = vst [vmem:[%s3412_s9 + $0xe4] sm:$0xf] %v2424_v18 }
 0x400   : > { %v1546_v27 = vmul.f32 %v3487_v49, %v2812_v23  ;;  %v1545_v29 = vmul.f32 %v3491_v11, %v2811_v26 }
 0x402   : > { %v2407_v54 = vpack.c.bf16 %v1546_v27, %v1546_v27  ;;  %v2406_v51 = vpack.c.bf16 %v1545_v29, %v1545_v29  ;;  %v2822_v30 = vpop.permute.xlu1 %2821 }
 0x403   : > { %v2824_v24 = vunpack.i.h.bf16 %v2822_v30  ;;  %v2823_v32 = vunpack.i.l.bf16 %v2822_v30 }
 0x404   : > { %1626 = vst [vmem:[%s3412_s9 + $0xd0] sm:$0xf] %v2407_v54  ;;  %1625 = vst [vmem:[%s3412_s9 + $0xc0] sm:$0xf] %v2406_v51 }
 0x405   : > { %v1866_v33 = vmul.f32 %v3487_v49, %v2824_v24  ;;  %v1865_v25 = vmul.f32 %v3491_v11, %v2823_v32 }
 0x407   : > { %v2439_v34 = vpack.c.bf16 %v1866_v33, %v1866_v33  ;;  %v2438_v59 = vpack.c.bf16 %v1865_v25, %v1865_v25  ;;  %v2834_v38 = vpop.permute.xlu1 %2833 }
 0x408   : > { %v2836_v39 = vunpack.i.h.bf16 %v2834_v38  ;;  %v2835_v41 = vunpack.i.l.bf16 %v2834_v38 }
 0x409   : > { %1946 = vst [vmem:[%s3412_s9 + $0xd8] sm:$0xf] %v2439_v34  ;;  %1945 = vst [vmem:[%s3412_s9 + $0xc8] sm:$0xf] %v2438_v59 }
 0x40a   : > { %v2028_v45 = vmul.f32 %v3475_v40, %v2836_v39  ;;  %v2027_v47 = vmul.f32 %v3479_v58, %v2835_v41 }
 0x40c   : > { %v2457_v12 = vpack.c.bf16 %v2028_v45, %v2028_v45  ;;  %v2456_v63 = vpack.c.bf16 %v2027_v47, %v2027_v47 }
 0x40e   : > { %2108 = vst [vmem:[%s3412_s9 + $0xfc] sm:$0xf] %v2457_v12  ;;  %2107 = vst [vmem:[%s3412_s9 + $0xec] sm:$0xf] %v2456_v63 }
 0x40f PF: > { %s19_s29 = sadd.s32 1, %s2931_s29   ;;  %s3560_s27 = smov %s2927_s28 }
 0x410   : > { %p16_p5 = scmp.ge.s32.totalorder %s19_s29, 4   ;;  %s3561_s28 = smov %s3563_s30 }
 0x412   :  { %18 = sbr.rel (!%p16_p5) target bundleno = 2 (0x2), region = 104 }

// kernel: _imp_gcn_forward.9
= control target key start
LH: loop header
LB: loop body
LE: loop exit
PB: predicated region body
PF: predicated region fallthrough
CT: control target
= control target key end

     0   :  { %10 = vsyncpa [#allocation4], 0  ;;  %s3408_s0 = inlined_call_operand.vmem [shape: bf16[256,256], index: 0, kind: input, shape index: {}]   ;;  %s3409_s1 = inlined_call_operand.vmem [shape: bf16[256,512], index: 1, kind: input, shape index: {}]   ;;  %s3410_s2 = inlined_call_operand.vmem [shape: f32[256,4], index: 2, kind: input, shape index: {}]   ;;  %s3411_s3 = inlined_call_operand.hbm [shape: bf16[256,512], index: 3, kind: output, shape index: {0}]   ;;  %s3412_s4 = inlined_call_operand.vmem [shape: f32[256,128], index: 4, kind: output, shape index: {1}]  }
   0x1   :  { %12 = vsyncpa [#allocation4 + $0x1], 0  ;;  %s2742_s15 = smov 0   ;;  %s2744_s16 = smov 0  }
   0x2   :  { %s2746_s17 = smov 0   ;;  %s2748_s18 = smov 0  }
   0x3   :  { %s2750_s19 = smov 0   ;;  %s2752_s20 = smov 0  }
   0x4 LB: > { %s2212_s21 = sadd.s32 4294967295, %s2708_s20   ;;  %s2213_s22 = sadd.s32 4294967294, %s2708_s20   ;;  %s2708_s20 = sphi %s2752_s20, %s18_s20   ;;  %s2704_s19 = sphi %s2750_s19, %s3421_s19   ;;  %s2700_s18 = sphi %s2748_s18, %s3420_s18   ;;  %s2696_s17 = sphi %s2746_s17, %s3419_s17   ;;  %s2692_s16 = sphi %s2744_s16, %s3418_s16   ;;  %s2688_s15 = sphi %s2742_s15, %s3417_s15  }
   0x5   : > { %s30_s23 = sadd.s32 1, %s2704_s19  ;;  %s117_s24 = sadd.s32 1, %s2696_s17 }
   0x6   : > { %p32_p0 = scmp.ge.s32.totalorder %s30_s23, 2  ;;  %p127_p1 = scmp.ne.s32.totalorder %s2696_s17, %s2692_s16 }
   0x7   : > { %p128_p2 = scmp.eq.s32.totalorder %s2212_s21, 1  ;;  %p133_p3 = scmp.ne.s32.totalorder %s2692_s16, %s2688_s15 }
   0x8   : > { %s3423_s23 = smov (%p32_p0, %s30_s23), 0  ;;  %p134_p5 = scmp.eq.s32.totalorder %s2213_s22, 1 }
   0x9   : > { %p2782_p4 = por %p128_p2, %p127_p1  ;;  %s114_s26 = ssub.s32 %s2704_s19, %s3423_s23 }
   0xa   : > { %p2217_p6 = scmp.ge.s32.totalorder %s2708_s20, 1  ;;  %p115_p7 = scmp.eq.s32.totalorder %s114_s26, 0 }
   0xb   : > { %p2789_p8 = por %p134_p5, %p133_p3  ;;  %p212_p9 = scmp.lt.s32.totalorder %s2708_s20, 3 }
   0xc   : > { %s2795_s28 = scalar_select %p115_p7, %s2696_s17, %s117_s24  }
   0xd   : > { %p213_p10 = pnand %p2217_p6, %p212_p9 }
   0xf   : > { %216 = sbr.rel (%p213_p10) target bundleno = 361 (0x169), region = 32 }
  0x14   : > { %v2512_v0 = vld [vmem:[%s3409_s1 + $0xe4] ss:$16 sps:$4 sm:$0xff]   ;;  %v2514_v1 = vld [vmem:[%s3409_s1 + $0xec] ss:$16 sps:$4 sm:$0xff]   ;;  %v2710_v2 = vmov 0   ;;  %s2219_s5 = sshll.u32 %s2700_s18, 4 }
  0x15   : > { %2505 = vset.pattern.permute.xlu1 %v2710_v2  ;;  %2504 = vset.pattern.permute.xlu0 %v2710_v2  ;;  %v2516_v3 = vld [vmem:[%s3409_s1 + $0xe0] ss:$16 sps:$4 sm:$0xff]   ;;  %v2517_v4 = vld [vmem:[%s3409_s1 + $0xe8] ss:$16 sps:$4 sm:$0xff]   ;;  %v2518_v5 = vld [vmem:[%s3409_s1 + $0xc4] ss:$16 sps:$4 sm:$0xff]  }
  0x16   : > { %903 = vmatprep.subr.bf16.mxu0 %v2512_v0  ;;  %1016 = vmatprep.subr.bf16.mxu1 %v2514_v1  ;;  %v2520_v6 = vld [vmem:[%s3409_s1 + $0xcc] ss:$16 sps:$4 sm:$0xff]   ;;  %v2522_v7 = vld [vmem:[%s3409_s1 + $0xc0] ss:$16 sps:$4 sm:$0xff]   ;;  %v2523_v8 = vld [vmem:[%s3409_s1 + $0xc8] ss:$16 sps:$4 sm:$0xff]  }
  0x17   : > { %904 = vmatpush1.bf16.msra.mxu0 %v2516_v3  ;;  %1017 = vmatpush1.bf16.msra.mxu1 %v2517_v4  ;;  %v2524_v9 = vld [vmem:[%s3409_s1 + $0xa4] ss:$16 sps:$4 sm:$0xff]   ;;  %v2526_v10 = vld [vmem:[%s3409_s1 + $0xac] ss:$16 sps:$4 sm:$0xff]   ;;  %v2528_v11 = vld [vmem:[%s3409_s1 + $0xa0] ss:$16 sps:$4 sm:$0xff]  }
  0x18   : > { %905 = vmatprep.subr.bf16.mxu0 %v2518_v5  ;;  %1018 = vmatprep.subr.bf16.mxu1 %v2520_v6  ;;  %v2529_v12 = vld [vmem:[%s3409_s1 + $0xa8] ss:$16 sps:$4 sm:$0xff]   ;;  %v2530_v13 = vld [vmem:[%s3409_s1 + $0x84] ss:$16 sps:$4 sm:$0xff]   ;;  %v2532_v14 = vld [vmem:[%s3409_s1 + $0x8c] ss:$16 sps:$4 sm:$0xff]  }
  0x19   : > { %p261_p11 = scmp.lt.s32.totalorder %s2219_s5, 31  ;;  %v2534_v15 = vld [vmem:[%s3409_s1 + $0x80] ss:$16 sps:$4 sm:$0xff]   ;;  %v2535_v16 = vld [vmem:[%s3409_s1 + $0x88] ss:$16 sps:$4 sm:$0xff]   ;;  %s2714_s30 = smov [#allocation3]  }
  0x1a   : > { %v2536_v17 = vld [vmem:[%s3409_s1 + $0x64] ss:$16 sps:$4 sm:$0xff]   ;;  %v2538_v18 = vld [vmem:[%s3409_s1 + $0x6c] ss:$16 sps:$4 sm:$0xff]   ;;  %v2540_v19 = vld [vmem:[%s3409_s1 + $0x60] ss:$16 sps:$4 sm:$0xff]  }
  0x1b   : > { %906 = vmatpush1.bf16.msra.mxu0 %v2522_v7  ;;  %1019 = vmatpush1.bf16.msra.mxu1 %v2523_v8  ;;  %s3425_s5 = smov (!%p261_p11, %s2219_s5), 31  ;;  %v2541_v20 = vld [vmem:[%s3409_s1 + $0x68] ss:$16 sps:$4 sm:$0xff]   ;;  %v2542_v21 = vld [vmem:[%s3409_s1 + $0x44] ss:$16 sps:$4 sm:$0xff]   ;;  %s2636_s6 = sshll.u32 %s2714_s30, 4  ;;  %s2637_s6 = int_to_ptr.vmem [resolvable:$false] %s2636_s6 }
  0x1c   : > { %907 = vmatprep.subr.bf16.mxu0 %v2524_v9  ;;  %1020 = vmatprep.subr.bf16.mxu1 %v2526_v10  ;;  %v2544_v22 = vld [vmem:[%s3409_s1 + $0x4c] ss:$16 sps:$4 sm:$0xff]   ;;  %s2864_s24 = sshll.u32 %s3425_s5, 3  ;;  %v2546_v23 = vld [vmem:[%s3409_s1 + $0x40] ss:$16 sps:$4 sm:$0xff]  }
  0x1d   : > { %v2547_v24 = vld [vmem:[%s3409_s1 + $0x48] ss:$16 sps:$4 sm:$0xff]   ;;  %v2548_v25 = vld [vmem:[%s3409_s1 + $0x24] ss:$16 sps:$4 sm:$0xff]   ;;  %v2550_v26 = vld [vmem:[%s3409_s1 + $0x2c] ss:$16 sps:$4 sm:$0xff]   ;;  %s2882_s12 = scalar_lea.vmem %s3410_s2, %s2864_s24  ;;  %s3002_s7 = scalar_lea.vmem %s3408_s0, %s2864_s24 }
  0x1e   : > { %v2552_v27 = vld [vmem:[%s3409_s1 + $0x20] ss:$16 sps:$4 sm:$0xff]   ;;  %v2553_v28 = vld [vmem:[%s3409_s1 + $0x28] ss:$16 sps:$4 sm:$0xff]   ;;  %v2554_v29 = vld [vmem:[%s3409_s1 + $0x4] ss:$16 sps:$4 sm:$0xff]   ;;  %s3233_s13 = scalar_lea.vmem %s3412_s4, %s2864_s24 }
  0x1f   : > { %908 = vmatpush1.bf16.msra.mxu0 %v2528_v11  ;;  %1021 = vmatpush1.bf16.msra.mxu1 %v2529_v12  ;;  %v2894_v30 = vld [vmem:[%s2882_s12 + $0x10] sm:$0xff]  ;;  %v2556_v31 = vld [vmem:[%s3409_s1 + $0xc] ss:$16 sps:$4 sm:$0xff]   ;;  %v2559_v34 = vld [vmem:[%s3409_s1 + $0x8] ss:$16 sps:$4 sm:$0xff]   ;;  %s2442_s24 = sshll.u32 %s2700_s18, 12 }
  0x20   : > { %909 = vmatprep.subr.bf16.mxu0 %v2530_v13  ;;  %1022 = vmatprep.subr.bf16.mxu1 %v2532_v14  ;;  %v2558_v32 = vld [vmem:[%s3409_s1] ss:$16 sps:$4 sm:$0xff]   ;;  %v2904_v33 = vld [vmem:[%s2882_s12 + $0x18] sm:$0xff]  ;;  %v2560_v35 = vld [vmem:[%s3409_s1 + $0x1e4] ss:$16 sps:$4 sm:$0xff]   ;;  %s3351_s22 = scalar_lea.hbm %s3411_s3, %s2442_s24 }
  0x21   : > { %1304 = vperm.xlu1 %2505, %v2894_v30   ;;  %v2562_v36 = vld [vmem:[%s3409_s1 + $0x1ec] ss:$16 sps:$4 sm:$0xff]   ;;  %v2917_v37 = vld [vmem:[%s2882_s12] sm:$0xff]  ;;  %v2565_v40 = vld [vmem:[%s3409_s1 + $0x1e8] ss:$16 sps:$4 sm:$0xff]  }
  0x22   : > { %1294 = vperm.xlu0 %2504, %v2917_v37   ;;  %v2921_v38 = vld [vmem:[%s2882_s12 + $0x28] sm:$0xff]  ;;  %v2564_v39 = vld [vmem:[%s3409_s1 + $0x1e0] ss:$16 sps:$4 sm:$0xff]   ;;  %v2566_v41 = vld [vmem:[%s3409_s1 + $0x1c4] ss:$16 sps:$4 sm:$0xff]  }
  0x23   : > { %910 = vmatpush1.bf16.msra.mxu0 %v2534_v15  ;;  %1023 = vmatpush1.bf16.msra.mxu1 %v2535_v16  ;;  %v2568_v42 = vld [vmem:[%s3409_s1 + $0x1cc] ss:$16 sps:$4 sm:$0xff]   ;;  %v2570_v44 = vld [vmem:[%s3409_s1 + $0x1c0] ss:$16 sps:$4 sm:$0xff]   ;;  %v2571_v46 = vld [vmem:[%s3409_s1 + $0x1c8] ss:$16 sps:$4 sm:$0xff]  }
  0x24   : > { %911 = vmatprep.subr.bf16.mxu0 %v2536_v17  ;;  %1024 = vmatprep.subr.bf16.mxu1 %v2538_v18  ;;  %v2936_v43 = vld [vmem:[%s2882_s12 + $0x8] sm:$0xff]  ;;  %v2944_v45 = vld [vmem:[%s2882_s12 + $0x38] sm:$0xff]  ;;  %v2572_v47 = vld [vmem:[%s3409_s1 + $0x1a4] ss:$16 sps:$4 sm:$0xff]   ;;  %v2711_v16 = vmov 1  }
  0x25   : > { %1309 = vperm.xlu1 %2505, %v2904_v33   ;;  %v2953_v48 = vld [vmem:[%s2882_s12 + $0x20] sm:$0xff]  ;;  %v2574_v49 = vld [vmem:[%s3409_s1 + $0x1ac] ss:$16 sps:$4 sm:$0xff]   ;;  %v2577_v51 = vld [vmem:[%s3409_s1 + $0x1a8] ss:$16 sps:$4 sm:$0xff]  }
  0x26   : > { %1299 = vperm.xlu0 %2504, %v2936_v43   ;;  %v2576_v50 = vld [vmem:[%s3409_s1 + $0x1a0] ss:$16 sps:$4 sm:$0xff]   ;;  %v2967_v52 = vld [vmem:[%s2882_s12 + $0x48] sm:$0xff]  ;;  %v2578_v53 = vld [vmem:[%s3409_s1 + $0x184] ss:$16 sps:$4 sm:$0xff]  }
  0x27   : > { %912 = vmatpush1.bf16.msra.mxu0 %v2540_v19  ;;  %1025 = vmatpush1.bf16.msra.mxu1 %v2541_v20  ;;  %v2973_v54 = vld [vmem:[%s2882_s12 + $0x30] sm:$0xff]  ;;  %v2580_v55 = vld [vmem:[%s3409_s1 + $0x18c] ss:$16 sps:$4 sm:$0xff]   ;;  %v2583_v57 = vld [vmem:[%s3409_s1 + $0x188] ss:$16 sps:$4 sm:$0xff]  }
  0x28   : > { %913 = vmatprep.subr.bf16.mxu0 %v2542_v21  ;;  %1026 = vmatprep.subr.bf16.mxu1 %v2544_v22  ;;  %v2582_v56 = vld [vmem:[%s3409_s1 + $0x180] ss:$16 sps:$4 sm:$0xff]   ;;  %v2584_v58 = vld [vmem:[%s3409_s1 + $0x164] ss:$16 sps:$4 sm:$0xff]   ;;  %v2990_v59 = vld [vmem:[%s2882_s12 + $0x58] sm:$0xff] }
  0x29   : > { %1319 = vperm.xlu1 %2505, %v2921_v38   ;;  %v2993_v60 = vld [vmem:[%s2882_s12 + $0x40] sm:$0xff]  ;;  %v2586_v61 = vld [vmem:[%s3409_s1 + $0x16c] ss:$16 sps:$4 sm:$0xff]   ;;  %v2589_v63 = vld [vmem:[%s3409_s1 + $0x168] ss:$16 sps:$4 sm:$0xff]  }
  0x2a   : > { %1314 = vperm.xlu0 %2504, %v2953_v48   ;;  %v2588_v62 = vld [vmem:[%s3409_s1 + $0x160] ss:$16 sps:$4 sm:$0xff]   ;;  %v3013_v0 = vld [vmem:[%s2882_s12 + $0x68] sm:$0xff]  ;;  %v2590_v1 = vld [vmem:[%s3409_s1 + $0x144] ss:$16 sps:$4 sm:$0xff]  }
  0x2b   : > { %914 = vmatpush1.bf16.msra.mxu0 %v2546_v23  ;;  %1027 = vmatpush1.bf16.msra.mxu1 %v2547_v24  ;;  %v3019_v2 = vld [vmem:[%s2882_s12 + $0x50] sm:$0xff]  ;;  %v2610_v3 = vld [vmem:[%s3002_s7 + $0x4] ss:$8 sps:$4 sm:$0xff]   ;;  %v2595_v6 = vld [vmem:[%s3409_s1 + $0x148] ss:$16 sps:$4 sm:$0xff]  }
  0x2c   : > { %915 = vmatprep.subr.bf16.mxu0 %v2548_v25  ;;  %1028 = vmatprep.subr.bf16.mxu1 %v2550_v26  ;;  %v2592_v4 = vld [vmem:[%s3409_s1 + $0x14c] ss:$16 sps:$4 sm:$0xff]   ;;  %v2594_v5 = vld [vmem:[%s3409_s1 + $0x140] ss:$16 sps:$4 sm:$0xff]   ;;  %v2596_v7 = vld [vmem:[%s3409_s1 + $0x124] ss:$16 sps:$4 sm:$0xff]  }
  0x2d   : > { %1329 = vperm.xlu1 %2505, %v2944_v45   ;;  %935 = vmatprep.mubr.bf16.mxu0 %v2610_v3  ;;  %v3037_v8 = vld [vmem:[%s2882_s12 + $0x78] sm:$0xff]  ;;  %v3040_v9 = vld [vmem:[%s2882_s12 + $0x60] sm:$0xff]  ;;  %v3057_v14 = vld [vmem:[%s2882_s12 + $0x70] sm:$0xff]  ;;  %s2638_s12 = scalar_lea.vmem %s2637_s6, 8192 }
  0x2e   : > { %1324 = vperm.xlu0 %2504, %v2973_v54   ;;  %1048 = vmatprep.mubr.bf16.mxu1 %v2610_v3  ;;  %v2598_v10 = vld [vmem:[%s3409_s1 + $0x12c] ss:$16 sps:$4 sm:$0xff]   ;;  %v2600_v11 = vld [vmem:[%s3409_s1 + $0x120] ss:$16 sps:$4 sm:$0xff]   ;;  %v2601_v12 = vld [vmem:[%s3409_s1 + $0x128] ss:$16 sps:$4 sm:$0xff]  }
  0x2f   : > { %916 = vmatpush1.bf16.msra.mxu0 %v2552_v27  ;;  %1029 = vmatpush1.bf16.msra.mxu1 %v2553_v28  ;;  %v2602_v13 = vld [vmem:[%s3409_s1 + $0x104] ss:$16 sps:$4 sm:$0xff]   ;;  %v2604_v15 = vld [vmem:[%s3409_s1 + $0x10c] ss:$16 sps:$4 sm:$0xff]   ;;  %v2606_v17 = vld [vmem:[%s3409_s1 + $0x100] ss:$16 sps:$4 sm:$0xff]  }
  0x30   : > { %917 = vmatprep.subr.bf16.mxu0 %v2554_v29  ;;  %1030 = vmatprep.subr.bf16.mxu1 %v2556_v31  ;;  %v2607_v18 = vld [vmem:[%s3409_s1 + $0x108] ss:$16 sps:$4 sm:$0xff]   ;;  %v2611_v20 = vld [vmem:[%s3002_s7 + $0x14] ss:$8 sps:$4 sm:$0xff]   ;;  %v2614_v22 = vld [vmem:[%s3002_s7 + $0x24] ss:$8 sps:$4 sm:$0xff]  }
  0x31   : > { %1339 = vperm.xlu1 %2505, %v2967_v52   ;;  %v2608_v19 = vld [vmem:[%s3002_s7] ss:$8 sps:$4 sm:$0xff]   ;;  %v2613_v21 = vld [vmem:[%s3002_s7 + $0x10] ss:$8 sps:$4 sm:$0xff]   ;;  %v2617_v24 = vld [vmem:[%s3002_s7 + $0x34] ss:$8 sps:$4 sm:$0xff]  }
  0x32   : > { %1334 = vperm.xlu0 %2504, %v2993_v60   ;;  %v2616_v23 = vld [vmem:[%s3002_s7 + $0x20] ss:$8 sps:$4 sm:$0xff]   ;;  %v2619_v25 = vld [vmem:[%s3002_s7 + $0x30] ss:$8 sps:$4 sm:$0xff]   ;;  %v2620_v26 = vld [vmem:[%s3002_s7 + $0x44] ss:$8 sps:$4 sm:$0xff]  }
  0x33   : > { %918 = vmatpush1.bf16.msra.mxu0 %v2558_v32  ;;  %1031 = vmatpush1.bf16.msra.mxu1 %v2559_v34  ;;  %v2712_v27 = vmov 2   ;;  %v2622_v28 = vld [vmem:[%s3002_s7 + $0x40] ss:$8 sps:$4 sm:$0xff]   ;;  %v2623_v29 = vld [vmem:[%s3002_s7 + $0x54] ss:$8 sps:$4 sm:$0xff]  }
  0x34   : > { %919 = vmatprep.subr.bf16.mxu0 %v2560_v35  ;;  %1032 = vmatprep.subr.bf16.mxu1 %v2562_v36  ;;  %v2625_v31 = vld [vmem:[%s3002_s7 + $0x50] ss:$8 sps:$4 sm:$0xff]   ;;  %v2626_v32 = vld [vmem:[%s3002_s7 + $0x64] ss:$8 sps:$4 sm:$0xff]   ;;  %v2628_v34 = vld [vmem:[%s3002_s7 + $0x60] ss:$8 sps:$4 sm:$0xff]  }
  0x35   : > { %1349 = vperm.xlu1 %2505, %v2990_v59   ;;  %v2629_v35 = vld [vmem:[%s3002_s7 + $0x74] ss:$8 sps:$4 sm:$0xff]   ;;  %v2631_v36 = vld [vmem:[%s3002_s7 + $0x70] ss:$8 sps:$4 sm:$0xff]   ;;  %s249_s7 = sand.u32 1, %s2692_s16  }
  0x36   : > { %1344 = vperm.xlu0 %2504, %v3019_v2   ;;  %s2218_s9 = sshll.u32 %s249_s7, 8  ;;  %s3362_s26 = scalar_lea.sflag [#allocation4], %s249_s7 }
  0x37   : > { %920 = vmatpush2.bf16.msra.mxu0 %v2564_v39  ;;  %1033 = vmatpush2.bf16.msra.mxu1 %v2565_v40  ;;  %v2713_v39 = vmov 3   ;;  %s3221_s5 = scalar_lea.vmem [#allocation3], %s2218_s9 }
  0x38   : > { %921 = vmatprep.subr.bf16.mxu0 %v2566_v41  ;;  %1034 = vmatprep.subr.bf16.mxu1 %v2568_v42  ;;  %s2080_s14 = sshll.u32 %s3221_s5, 4  ;;  %s3353_s14 = int_to_ptr.vmem [resolvable:$true] %s2080_s14 }
  0x39   : > { %1359 = vperm.xlu1 %2505, %v3013_v0   ;;  %s2632_s29 = scalar_lea.vmem %s3353_s14, 4096  ;;  %p2639_p1 = scmp.lt.s32.totalorder %s3353_s14, %s2637_s6 }
  0x3a   : > { %1354 = vperm.xlu0 %2504, %v3040_v9   ;;  %p2633_p12 = scmp.ne.s32.totalorder %s3353_s14, %s2632_s29  ;;  %p2640_p2 = scmp.lt.s32.totalorder %s2638_s12, %s2632_s29 }
  0x3b   : > { %922 = vmatpush2.bf16.msra.mxu0 %v2570_v44  ;;  %1035 = vmatpush2.bf16.msra.mxu1 %v2571_v46 }
  0x3c   : > { %923 = vmatprep.subr.bf16.mxu0 %v2572_v47  ;;  %1036 = vmatprep.subr.bf16.mxu1 %v2574_v49  ;;  %p2634_p13 = pnand %p2633_p12, %p2782_p4  ;;  %p2641_p3 = por %p2640_p2, %p2639_p1 }
  0x3d   : > { %1369 = vperm.xlu1 %2505, %v3037_v8  }
  0x3e   : > { %1364 = vperm.xlu0 %2504, %v3057_v14   ;;  %p2635_p0 = pneg %p2634_p13 }
  0x3f   : > { %924 = vmatpush2.bf16.msra.mxu0 %v2576_v50  ;;  %1037 = vmatpush2.bf16.msra.mxu1 %v2577_v51 }
  0x40   : > { %925 = vmatprep.subr.bf16.mxu0 %v2578_v53  ;;  %1038 = vmatprep.subr.bf16.mxu1 %v2580_v55  ;;  %p2642_p5 = pnand %p2641_p3, %p2635_p0 }
  0x41   : > { %2507 = vset.pattern.permute.xlu1 %v2711_v16 }
  0x42   : > { %1489 = vperm.xlu1 %2507, %v2936_v43   ;;  %2506 = vset.pattern.permute.xlu0 %v2711_v16 }
  0x43   : > { %926 = vmatpush2.bf16.msra.mxu0 %v2582_v56  ;;  %1039 = vmatpush2.bf16.msra.mxu1 %v2583_v57 }
  0x44   : > { %927 = vmatprep.subr.bf16.mxu0 %v2584_v58  ;;  %1040 = vmatprep.subr.bf16.mxu1 %v2586_v61 }
  0x45   : > { %1485 = vperm.xlu0 %2506, %v2917_v37  }
  0x46   : > { %1493 = vperm.xlu1 %2507, %v2894_v30  }
  0x47   : > { %928 = vmatpush2.bf16.msra.mxu0 %v2588_v62  ;;  %1041 = vmatpush2.bf16.msra.mxu1 %v2589_v63 }
  0x48   : > { %929 = vmatprep.subr.bf16.mxu0 %v2590_v1  ;;  %1042 = vmatprep.subr.bf16.mxu1 %v2592_v4 }
  0x49   : > { %1497 = vperm.xlu0 %2506, %v2904_v33  }
  0x4a   : > { %1501 = vperm.xlu1 %2507, %v2953_v48  }
  0x4b   : > { %930 = vmatpush2.bf16.msra.mxu0 %v2594_v5  ;;  %1043 = vmatpush2.bf16.msra.mxu1 %v2595_v6 }
  0x4c   : > { %931 = vmatprep.subr.bf16.mxu0 %v2596_v7  ;;  %1044 = vmatprep.subr.bf16.mxu1 %v2598_v10 }
  0x4d   : > { %1505 = vperm.xlu0 %2506, %v2921_v38  }
  0x4e   : > { %1509 = vperm.xlu1 %2507, %v2973_v54  }
  0x4f   : > { %932 = vmatpush2.bf16.msra.mxu0 %v2600_v11  ;;  %1045 = vmatpush2.bf16.msra.mxu1 %v2601_v12 }
  0x50   : > { %933 = vmatprep.subr.bf16.mxu0 %v2602_v13  ;;  %1046 = vmatprep.subr.bf16.mxu1 %v2604_v15 }
  0x51   : > { %1513 = vperm.xlu0 %2506, %v2944_v45  }
  0x52   : > { %1517 = vperm.xlu1 %2507, %v2993_v60  }
  0x53   : > { %934 = vmatpush2.bf16.msra.mxu0 %v2606_v17  ;;  %1047 = vmatpush2.bf16.msra.mxu1 %v2607_v18 }
  0x55   : > { %1521 = vperm.xlu0 %2506, %v2967_v52  }
  0x56   : > { %936 = vmatmul.mubr.bf16.vlgmr.msra.gmra.mxu0 %v2608_v19  ;;  %1049 = vmatmul.mubr.bf16.vlgmr.msra.gmra.mxu1 %v2608_v19 }
  0x57   : > { %945 = vmatprep.mubr.bf16.mxu0 %v2611_v20  ;;  %1058 = vmatprep.mubr.bf16.mxu1 %v2611_v20 }
  0x58   : > { %1525 = vperm.xlu1 %2507, %v3019_v2  }
  0x59   : > { %1529 = vperm.xlu0 %2506, %v2990_v59  }
  0x5c   : > { %1533 = vperm.xlu1 %2507, %v3040_v9  }
  0x5d   : > { %1537 = vperm.xlu0 %2506, %v3013_v0  }
  0x5e   : > { %946 = vmatmul.mubr.bf16.gmra.mxu0 %v2613_v21  ;;  %1059 = vmatmul.mubr.bf16.gmra.mxu1 %v2613_v21 }
  0x5f   : > { %955 = vmatprep.mubr.bf16.mxu0 %v2614_v22  ;;  %1068 = vmatprep.mubr.bf16.mxu1 %v2614_v22 }
  0x60   : > { %1541 = vperm.xlu1 %2507, %v3057_v14  }
  0x61   : > { %1545 = vperm.xlu0 %2506, %v3037_v8  }
  0x64   : > { %2508 = vset.pattern.permute.xlu1 %v2712_v27 }
  0x65   : > { %1677 = vperm.xlu1 %2508, %v2917_v37   ;;  %2509 = vset.pattern.permute.xlu0 %v2712_v27 }
  0x66   : > { %956 = vmatmul.mubr.bf16.gmra.mxu0 %v2616_v23  ;;  %1069 = vmatmul.mubr.bf16.gmra.mxu1 %v2616_v23 }
  0x67   : > { %965 = vmatprep.mubr.bf16.mxu0 %v2617_v24  ;;  %1078 = vmatprep.mubr.bf16.mxu1 %v2617_v24 }
  0x68   : > { %1681 = vperm.xlu0 %2509, %v2936_v43  }
  0x69   : > { %1685 = vperm.xlu1 %2508, %v2894_v30  }
  0x6c   : > { %1693 = vperm.xlu0 %2509, %v2953_v48  }
  0x6d   : > { %1689 = vperm.xlu1 %2508, %v2904_v33  }
  0x6e   : > { %966 = vmatmul.mubr.bf16.gmra.mxu0 %v2619_v25  ;;  %1079 = vmatmul.mubr.bf16.gmra.mxu1 %v2619_v25 }
  0x6f   : > { %975 = vmatprep.mubr.bf16.mxu0 %v2620_v26  ;;  %1088 = vmatprep.mubr.bf16.mxu1 %v2620_v26 }
  0x70   : > { %1701 = vperm.xlu0 %2509, %v2973_v54  }
  0x71   : > { %1697 = vperm.xlu1 %2508, %v2921_v38  }
  0x74   : > { %1709 = vperm.xlu0 %2509, %v2993_v60  }
  0x75   : > { %1705 = vperm.xlu1 %2508, %v2944_v45  }
  0x76   : > { %976 = vmatmul.mubr.bf16.gmra.mxu0 %v2622_v28  ;;  %1089 = vmatmul.mubr.bf16.gmra.mxu1 %v2622_v28 }
  0x77   : > { %985 = vmatprep.mubr.bf16.mxu0 %v2623_v29  ;;  %1098 = vmatprep.mubr.bf16.mxu1 %v2623_v29 }
  0x78   : > { %1717 = vperm.xlu0 %2509, %v3019_v2  }
  0x79   : > { %1713 = vperm.xlu1 %2508, %v2967_v52  }
  0x7c   : > { %1725 = vperm.xlu0 %2509, %v3040_v9  }
  0x7d   : > { %1721 = vperm.xlu1 %2508, %v2990_v59  }
  0x7e   : > { %986 = vmatmul.mubr.bf16.gmra.mxu0 %v2625_v31  ;;  %1099 = vmatmul.mubr.bf16.gmra.mxu1 %v2625_v31 }
  0x7f   : > { %995 = vmatprep.mubr.bf16.mxu0 %v2626_v32  ;;  %1108 = vmatprep.mubr.bf16.mxu1 %v2626_v32 }
  0x80   : > { %1733 = vperm.xlu0 %2509, %v3057_v14  }
  0x81   : > { %1729 = vperm.xlu1 %2508, %v3013_v0  }
  0x84   : > { %2510 = vset.pattern.permute.xlu0 %v2713_v39 }
  0x85   : > { %1737 = vperm.xlu1 %2508, %v3037_v8   ;;  %1869 = vperm.xlu0 %2510, %v2917_v37  }
  0x86   : > { %996 = vmatmul.mubr.bf16.gmra.mxu0 %v2628_v34  ;;  %1109 = vmatmul.mubr.bf16.gmra.mxu1 %v2628_v34 }
  0x87   : > { %1005 = vmatprep.mubr.bf16.mxu0 %v2629_v35  ;;  %1118 = vmatprep.mubr.bf16.mxu1 %v2629_v35 }
  0x89   : > { %2511 = vset.pattern.permute.xlu1 %v2713_v39  ;;  %1881 = vperm.xlu0 %2510, %v2904_v33  }
  0x8a   : > { %1873 = vperm.xlu1 %2511, %v2936_v43  }
  0x8d   : > { %1889 = vperm.xlu0 %2510, %v2921_v38  }
  0x8e   : > { %1006 = vmatmul.mubr.bf16.gmra.mxu0 %v2631_v36  ;;  %1119 = vmatmul.mubr.bf16.gmra.mxu1 %v2631_v36 }
  0x8f   : > { %1877 = vperm.xlu1 %2511, %v2894_v30  }
  0x91   : > { %1897 = vperm.xlu0 %2510, %v2944_v45  }
  0x93   : > { %1885 = vperm.xlu1 %2511, %v2953_v48  }
  0x95   : > { %1905 = vperm.xlu0 %2510, %v2967_v52  }
  0x97   : > { %1893 = vperm.xlu1 %2511, %v2973_v54  }
  0x99   : > { %1913 = vperm.xlu0 %2510, %v2990_v59  }
  0x9b   : > { %1901 = vperm.xlu1 %2511, %v2993_v60  }
  0x9c   : > { %v3127_v37 = vpop.permute.xlu1 %1304 }
  0x9d   : > { %1921 = vperm.xlu0 %2510, %v3013_v0   ;;  %v1295_v33 = vpop.permute.xlu0 %1294 }
  0x9f   : > { %1909 = vperm.xlu1 %2511, %v3019_v2  }
  0xa0   : > { %v3131_v30 = vpop.permute.xlu1 %1309 }
  0xa1   : > { %1929 = vperm.xlu0 %2510, %v3037_v8   ;;  %v3137_v40 = vpop.permute.xlu0 %1299 }
  0xa3   : > { %1917 = vperm.xlu1 %2511, %v3040_v9  }
  0xa4   : > { %v3135_v38 = vpop.permute.xlu1 %1319 }
  0xa5   : > { %v3142_v42 = vpop.permute.xlu0 %1314 }
  0xa7   : > { %1925 = vperm.xlu1 %2511, %v3057_v14  }
  0xa8   : > { %v3140_v41 = vpop.permute.xlu1 %1329 }
  0xa9   : > { %v3146_v44 = vpop.permute.xlu0 %1324 }
  0xac   : > { %v3144_v43 = vpop.permute.xlu1 %1339 }
  0xad   : > { %v3150_v46 = vpop.permute.xlu0 %1334 }
  0xb0   : > { %v3148_v45 = vpop.permute.xlu1 %1349 }
  0xb1   : > { %v3154_v48 = vpop.permute.xlu0 %1344 }
  0xb4   : > { %v3152_v47 = vpop.permute.xlu1 %1359 }
  0xb5   : > { %v3158_v50 = vpop.permute.xlu0 %1354 }
  0xb8   : > { %v3156_v49 = vpop.permute.xlu1 %1369 }
  0xb9   : > { %v3162_v52 = vpop.permute.xlu0 %1364 }
  0xbd   : > { %v3160_v51 = vpop.permute.xlu1 %1489 }
  0xc0   : > { %v1486_v54 = vpop.permute.xlu0 %1485 }
  0xc1   : > { %v3164_v53 = vpop.permute.xlu1 %1493 }
  0xc4   : > { %v3168_v56 = vpop.permute.xlu0 %1497 }
  0xc5   : > { %v3166_v55 = vpop.permute.xlu1 %1501 }
  0xc8   : > { %v3172_v58 = vpop.permute.xlu0 %1505 }
  0xc9   : > { %v3170_v57 = vpop.permute.xlu1 %1509 }
  0xcc   : > { %v3176_v60 = vpop.permute.xlu0 %1513 }
  0xcd   : > { %v3174_v59 = vpop.permute.xlu1 %1517 }
  0xd0   : > { %v3180_v62 = vpop.permute.xlu0 %1521 }
  0xd3   : > { %v3178_v61 = vpop.permute.xlu1 %1525 }
  0xd4   : > { %v3184_v0 = vpop.permute.xlu0 %1529 }
  0xd7   : > { %v3182_v63 = vpop.permute.xlu1 %1533 }
  0xd8   : > { %v3188_v2 = vpop.permute.xlu0 %1537 }
  0xdb   : > { %v3186_v1 = vpop.permute.xlu1 %1541 }
  0xdc   : > { %v3190_v3 = vpop.permute.xlu0 %1545 }
  0xdd   : > { %3415 = vst [vmem:[#allocation6_spill] sm:$0xff] %v3190_v3 }
  0xe0   : > { %v1678_v4 = vpop.permute.xlu1 %1677 }
  0xe3   : > { %v1682_v6 = vpop.permute.xlu0 %1681 }
  0xe4   : > { %v1686_v5 = vpop.permute.xlu1 %1685 }
  0xe7   : > { %v3194_v8 = vpop.permute.xlu0 %1693 }
  0xe8   : > { %v3192_v7 = vpop.permute.xlu1 %1689 }
  0xeb   : > { %v3198_v10 = vpop.permute.xlu0 %1701 }
  0xec   : > { %v3196_v9 = vpop.permute.xlu1 %1697 }
  0xef   : > { %v3202_v12 = vpop.permute.xlu0 %1709 }
  0xf0   : > { %v3200_v11 = vpop.permute.xlu1 %1705 }
  0xf3   : > { %v3206_v14 = vpop.permute.xlu0 %1717 }
  0xf4   : > { %v3204_v13 = vpop.permute.xlu1 %1713 }
  0xf7   : > { %v3210_v16 = vpop.permute.xlu0 %1725 }
  0xf8   : > { %v3208_v15 = vpop.permute.xlu1 %1721 }
  0xfb   : > { %v3214_v18 = vpop.permute.xlu0 %1733 }
  0xfc   : > { %v3212_v17 = vpop.permute.xlu1 %1729 }
 0x100   : > { %v3217_v19 = vpop.permute.xlu1 %1737  ;;  %v1870_v20 = vpop.permute.xlu0 %1869 }
 0x105   : > { %v1874_v25 = vpop.permute.xlu1 %1873 }
 0x116   : > { %v937_v21 = vpop.f32.mrf.mxu0  ;;  %v1050_v22 = vpop.f32.mrf.mxu1 }
 0x117   : > { %v1372_v23 = vmul.f32 %v1295_v33, %v937_v21  ;;  %v1740_v24 = vmul.f32 %v1678_v4, %v1050_v22 }
 0x118   : > { %v939_v26 = vpop.f32.mrf.mxu0  ;;  %v1052_v27 = vpop.f32.mrf.mxu1 }
 0x119   : > { %v2377_v28 = vpack.c.bf16 %v1372_v23, %v1372_v23  ;;  %v2409_v29 = vpack.c.bf16 %v1740_v24, %v1740_v24  ;;  %v1548_v31 = vmul.f32 %v1486_v54, %v939_v26  ;;  %v1932_v32 = vmul.f32 %v1870_v20, %v1052_v27 }
 0x11a   : > { %v941_v34 = vpop.f32.mrf.mxu0  ;;  %v1054_v35 = vpop.f32.mrf.mxu1 }
 0x11b   : > { %1452 = vst [vmem:[%s3221_s5] sm:$0xf] %v2377_v28  ;;  %1820 = vst [vmem:[%s3221_s5 + $0x8] sm:$0xf] %v2409_v29  ;;  %v2393_v36 = vpack.c.bf16 %v1548_v31, %v1548_v31  ;;  %v1644_v39 = vadd.f32 %v1548_v31, %v1372_v23  ;;  %v2425_v33 = vpack.c.bf16 %v1932_v32, %v1932_v32  ;;  %v1878_v28 = vpop.permute.xlu1 %1877 }
 0x11c   : > { %v1373_v4 = vmul.f32 %v3137_v40, %v941_v34  ;;  %v1741_v21 = vmul.f32 %v1682_v6, %v1054_v35  ;;  %v943_v54 = vpop.f32.mrf.mxu0  ;;  %v1056_v20 = vpop.f32.mrf.mxu1 }
 0x11d   : > { %1628 = vst [vmem:[%s3221_s5 + $0x4] sm:$0xf] %v2393_v36  ;;  %v1836_v22 = vadd.f32 %v1740_v24, %v1644_v39  ;;  %2012 = vst [vmem:[%s3221_s5 + $0xc] sm:$0xf] %v2425_v33  ;;  %v1549_v27 = vmul.f32 %v3160_v51, %v943_v54  ;;  %v1933_v3 = vmul.f32 %v1874_v25, %v1056_v20 }
 0x11e   : > { %v2378_v26 = vpack.c.bf16 %v1373_v4, %v1373_v4  ;;  %v2410_v40 = vpack.c.bf16 %v1741_v21, %v1741_v21  ;;  %v947_v6 = vpop.f32.mrf.mxu0  ;;  %v1060_v23 = vpop.f32.mrf.mxu1 }
 0x11f   : > { %v2028_v29 = vadd.f32 %v1932_v32, %v1836_v22  ;;  %v2394_v24 = vpack.c.bf16 %v1549_v27, %v1549_v27  ;;  %v1645_v31 = vadd.f32 %v1549_v27, %v1373_v4  ;;  %v2426_v34 = vpack.c.bf16 %v1933_v3, %v1933_v3  ;;  %v1882_v32 = vpop.permute.xlu0 %1881 }
 0x120   : > { %1453 = vst [vmem:[%s3221_s5 + $0x10] sm:$0xf] %v2378_v26  ;;  %1821 = vst [vmem:[%s3221_s5 + $0x18] sm:$0xf] %v2410_v40  ;;  %v1374_v51 = vmul.f32 %v3127_v37, %v947_v6  ;;  %v1742_v25 = vmul.f32 %v1686_v5, %v1060_v23  ;;  %v949_v35 = vpop.f32.mrf.mxu0  ;;  %v1062_v36 = vpop.f32.mrf.mxu1 }
 0x121   : > { %2044 = vst [vmem:[%s3233_s13] sm:$0xff] %v2028_v29  ;;  %1629 = vst [vmem:[%s3221_s5 + $0x14] sm:$0xf] %v2394_v24  ;;  %v1837_v39 = vadd.f32 %v1741_v21, %v1645_v31  ;;  %v1550_v33 = vmul.f32 %v3164_v53, %v949_v35  ;;  %v1934_v54 = vmul.f32 %v1878_v28, %v1062_v36 }
 0x122   : > { %2013 = vst [vmem:[%s3221_s5 + $0x1c] sm:$0xf] %v2426_v34  ;;  %v2379_v4 = vpack.c.bf16 %v1374_v51, %v1374_v51  ;;  %v2411_v20 = vpack.c.bf16 %v1742_v25, %v1742_v25  ;;  %v951_v22 = vpop.f32.mrf.mxu0  ;;  %v1064_v37 = vpop.f32.mrf.mxu1 }
 0x123   : > { %v2029_v5 = vadd.f32 %v1933_v3, %v1837_v39  ;;  %v2395_v26 = vpack.c.bf16 %v1550_v33, %v1550_v33  ;;  %v1646_v27 = vadd.f32 %v1550_v33, %v1374_v51  ;;  %v2427_v40 = vpack.c.bf16 %v1934_v54, %v1934_v54  ;;  %v1886_v39 = vpop.permute.xlu1 %1885 }
 0x124   : > { %1454 = vst [vmem:[%s3221_s5 + $0x20] sm:$0xf] %v2379_v4  ;;  %1822 = vst [vmem:[%s3221_s5 + $0x28] sm:$0xf] %v2411_v20  ;;  %v1375_v21 = vmul.f32 %v3131_v30, %v951_v22  ;;  %v1743_v6 = vmul.f32 %v3192_v7, %v1064_v37  ;;  %v953_v53 = vpop.f32.mrf.mxu0  ;;  %v1066_v28 = vpop.f32.mrf.mxu1 }
 0x125   : > { %2045 = vst [vmem:[%s3233_s13 + $0x8] sm:$0xff] %v2029_v5  ;;  %1630 = vst [vmem:[%s3221_s5 + $0x24] sm:$0xf] %v2395_v26  ;;  %v1838_v23 = vadd.f32 %v1742_v25, %v1646_v27  ;;  %v1551_v29 = vmul.f32 %v3168_v56, %v953_v53  ;;  %v1935_v3 = vmul.f32 %v1882_v32, %v1066_v28 }
 0x126   : > { %2014 = vst [vmem:[%s3221_s5 + $0x2c] sm:$0xf] %v2427_v40  ;;  %v2380_v24 = vpack.c.bf16 %v1375_v21, %v1375_v21  ;;  %v2412_v31 = vpack.c.bf16 %v1743_v6, %v1743_v6  ;;  %v957_v34 = vpop.f32.mrf.mxu0  ;;  %v1070_v30 = vpop.f32.mrf.mxu1 }
 0x127   : > { %v2030_v51 = vadd.f32 %v1934_v54, %v1838_v23  ;;  %v2396_v7 = vpack.c.bf16 %v1551_v29, %v1551_v29  ;;  %v1647_v35 = vadd.f32 %v1551_v29, %v1375_v21  ;;  %v2428_v36 = vpack.c.bf16 %v1935_v3, %v1935_v3 }
 0x128   : > { %1455 = vst [vmem:[%s3221_s5 + $0x30] sm:$0xf] %v2380_v24  ;;  %1823 = vst [vmem:[%s3221_s5 + $0x38] sm:$0xf] %v2412_v31  ;;  %v1376_v25 = vmul.f32 %v3142_v42, %v957_v34  ;;  %v1744_v33 = vmul.f32 %v3194_v8, %v1070_v30  ;;  %v959_v56 = vpop.f32.mrf.mxu0  ;;  %v1072_v32 = vpop.f32.mrf.mxu1 }
 0x129   : > { %2046 = vst [vmem:[%s3233_s13 + $0x10] sm:$0xff] %v2030_v51  ;;  %1631 = vst [vmem:[%s3221_s5 + $0x34] sm:$0xf] %v2396_v7  ;;  %v1839_v4 = vadd.f32 %v1743_v6, %v1647_v35  ;;  %v1552_v54 = vmul.f32 %v3166_v55, %v959_v56  ;;  %v1936_v20 = vmul.f32 %v1886_v39, %v1072_v32  ;;  %v1890_v8 = vpop.permute.xlu0 %1889 }
 0x12a   : > { %2015 = vst [vmem:[%s3221_s5 + $0x3c] sm:$0xf] %v2428_v36  ;;  %v2381_v22 = vpack.c.bf16 %v1376_v25, %v1376_v25  ;;  %v2413_v37 = vpack.c.bf16 %v1744_v33, %v1744_v33  ;;  %v961_v5 = vpop.f32.mrf.mxu0  ;;  %v1074_v42 = vpop.f32.mrf.mxu1 }
 0x12b   : > { %v2031_v26 = vadd.f32 %v1935_v3, %v1839_v4  ;;  %v2397_v27 = vpack.c.bf16 %v1552_v54, %v1552_v54  ;;  %v1648_v40 = vadd.f32 %v1552_v54, %v1376_v25  ;;  %v2429_v21 = vpack.c.bf16 %v1936_v20, %v1936_v20 }
 0x12c   : > { %1456 = vst [vmem:[%s3221_s5 + $0x40] sm:$0xf] %v2381_v22  ;;  %1824 = vst [vmem:[%s3221_s5 + $0x48] sm:$0xf] %v2413_v37  ;;  %v1377_v6 = vmul.f32 %v3135_v38, %v961_v5  ;;  %v1745_v53 = vmul.f32 %v3196_v9, %v1074_v42  ;;  %v963_v55 = vpop.f32.mrf.mxu0  ;;  %v1076_v28 = vpop.f32.mrf.mxu1 }
 0x12d   : > { %2047 = vst [vmem:[%s3233_s13 + $0x18] sm:$0xff] %v2031_v26  ;;  %1632 = vst [vmem:[%s3221_s5 + $0x44] sm:$0xf] %v2397_v27  ;;  %v1840_v23 = vadd.f32 %v1744_v33, %v1648_v40  ;;  %v1553_v29 = vmul.f32 %v3172_v58, %v963_v55  ;;  %v1937_v3 = vmul.f32 %v1890_v8, %v1076_v28  ;;  %v1894_v9 = vpop.permute.xlu1 %1893  ;;  %v1898_v22 = vpop.permute.xlu0 %1897 }
 0x12e   : > { %2016 = vst [vmem:[%s3221_s5 + $0x4c] sm:$0xf] %v2429_v21  ;;  %v2382_v24 = vpack.c.bf16 %v1377_v6, %v1377_v6  ;;  %v2414_v31 = vpack.c.bf16 %v1745_v53, %v1745_v53  ;;  %v967_v34 = vpop.f32.mrf.mxu0  ;;  %v1080_v38 = vpop.f32.mrf.mxu1 }
 0x12f   : > { %v2032_v30 = vadd.f32 %v1936_v20, %v1840_v23  ;;  %v2398_v51 = vpack.c.bf16 %v1553_v29, %v1553_v29  ;;  %v1649_v7 = vadd.f32 %v1553_v29, %v1377_v6  ;;  %v2430_v35 = vpack.c.bf16 %v1937_v3, %v1937_v3 }
 0x130   : > { %1457 = vst [vmem:[%s3221_s5 + $0x50] sm:$0xf] %v2382_v24  ;;  %1825 = vst [vmem:[%s3221_s5 + $0x58] sm:$0xf] %v2414_v31  ;;  %v1378_v36 = vmul.f32 %v3146_v44, %v967_v34  ;;  %v1746_v39 = vmul.f32 %v3198_v10, %v1080_v38  ;;  %v969_v58 = vpop.f32.mrf.mxu0  ;;  %v1082_v25 = vpop.f32.mrf.mxu1 }
 0x131   : > { %2048 = vst [vmem:[%s3233_s13 + $0x20] sm:$0xff] %v2032_v30  ;;  %1633 = vst [vmem:[%s3221_s5 + $0x54] sm:$0xf] %v2398_v51  ;;  %v1841_v33 = vadd.f32 %v1745_v53, %v1649_v7  ;;  %v1554_v56 = vmul.f32 %v3170_v57, %v969_v58  ;;  %v1938_v32 = vmul.f32 %v1894_v9, %v1082_v25  ;;  %v1902_v23 = vpop.permute.xlu1 %1901 }
 0x132   : > { %2017 = vst [vmem:[%s3221_s5 + $0x5c] sm:$0xf] %v2430_v35  ;;  %v2383_v4 = vpack.c.bf16 %v1378_v36, %v1378_v36  ;;  %v2415_v54 = vpack.c.bf16 %v1746_v39, %v1746_v39  ;;  %v971_v20 = vpop.f32.mrf.mxu0  ;;  %v1084_v44 = vpop.f32.mrf.mxu1 }
 0x133   : > { %v2033_v10 = vadd.f32 %v1937_v3, %v1841_v33  ;;  %v2399_v37 = vpack.c.bf16 %v1554_v56, %v1554_v56  ;;  %v1650_v5 = vadd.f32 %v1554_v56, %v1378_v36  ;;  %v2431_v42 = vpack.c.bf16 %v1938_v32, %v1938_v32 }
 0x134   : > { %1458 = vst [vmem:[%s3221_s5 + $0x60] sm:$0xf] %v2383_v4  ;;  %1826 = vst [vmem:[%s3221_s5 + $0x68] sm:$0xf] %v2415_v54  ;;  %v1379_v26 = vmul.f32 %v3140_v41, %v971_v20  ;;  %v1747_v8 = vmul.f32 %v3200_v11, %v1084_v44  ;;  %v973_v57 = vpop.f32.mrf.mxu0  ;;  %v1086_v27 = vpop.f32.mrf.mxu1 }
 0x135   : > { %2049 = vst [vmem:[%s3233_s13 + $0x28] sm:$0xff] %v2033_v10  ;;  %1634 = vst [vmem:[%s3221_s5 + $0x64] sm:$0xf] %v2399_v37  ;;  %v1842_v40 = vadd.f32 %v1746_v39, %v1650_v5  ;;  %v1555_v21 = vmul.f32 %v3176_v60, %v973_v57  ;;  %v1939_v6 = vmul.f32 %v1898_v22, %v1086_v27  ;;  %v1906_v39 = vpop.permute.xlu0 %1905  ;;  %v1910_v5 = vpop.permute.xlu1 %1909 }
 0x136   : > { %2018 = vst [vmem:[%s3221_s5 + $0x6c] sm:$0xf] %v2431_v42  ;;  %v2384_v53 = vpack.c.bf16 %v1379_v26, %v1379_v26  ;;  %v2416_v55 = vpack.c.bf16 %v1747_v8, %v1747_v8  ;;  %v977_v28 = vpop.f32.mrf.mxu0  ;;  %v1090_v41 = vpop.f32.mrf.mxu1 }
 0x137   : > { %v2034_v11 = vadd.f32 %v1938_v32, %v1842_v40  ;;  %v2400_v29 = vpack.c.bf16 %v1555_v21, %v1555_v21  ;;  %v1651_v3 = vadd.f32 %v1555_v21, %v1379_v26  ;;  %v2432_v24 = vpack.c.bf16 %v1939_v6, %v1939_v6 }
 0x138   : > { %1459 = vst [vmem:[%s3221_s5 + $0x70] sm:$0xf] %v2384_v53  ;;  %1827 = vst [vmem:[%s3221_s5 + $0x78] sm:$0xf] %v2416_v55  ;;  %v1380_v31 = vmul.f32 %v3150_v46, %v977_v28  ;;  %v1748_v34 = vmul.f32 %v3202_v12, %v1090_v41  ;;  %v979_v60 = vpop.f32.mrf.mxu0  ;;  %v1092_v38 = vpop.f32.mrf.mxu1 }
 0x139   : > { %2050 = vst [vmem:[%s3233_s13 + $0x30] sm:$0xff] %v2034_v11  ;;  %1635 = vst [vmem:[%s3221_s5 + $0x74] sm:$0xf] %v2400_v29  ;;  %v1843_v30 = vadd.f32 %v1747_v8, %v1651_v3  ;;  %v1556_v9 = vmul.f32 %v3174_v59, %v979_v60  ;;  %v1940_v51 = vmul.f32 %v1902_v23, %v1092_v38  ;;  %v1914_v23 = vpop.permute.xlu0 %1913 }
 0x13a   : > { %2019 = vst [vmem:[%s3221_s5 + $0x7c] sm:$0xf] %v2432_v24  ;;  %v2385_v7 = vpack.c.bf16 %v1380_v31, %v1380_v31  ;;  %v2417_v35 = vpack.c.bf16 %v1748_v34, %v1748_v34  ;;  %v981_v36 = vpop.f32.mrf.mxu0  ;;  %v1094_v46 = vpop.f32.mrf.mxu1 }
 0x13b   : > { %v2035_v12 = vadd.f32 %v1939_v6, %v1843_v30  ;;  %v2401_v58 = vpack.c.bf16 %v1556_v9, %v1556_v9  ;;  %v1652_v25 = vadd.f32 %v1556_v9, %v1380_v31  ;;  %v2433_v33 = vpack.c.bf16 %v1940_v51, %v1940_v51 }
 0x13c   : > { %1460 = vst [vmem:[%s3221_s5 + $0x80] sm:$0xf] %v2385_v7  ;;  %1828 = vst [vmem:[%s3221_s5 + $0x88] sm:$0xf] %v2417_v35  ;;  %v1381_v56 = vmul.f32 %v3144_v43, %v981_v36  ;;  %v1749_v32 = vmul.f32 %v3204_v13, %v1094_v46  ;;  %v983_v59 = vpop.f32.mrf.mxu0  ;;  %v1096_v4 = vpop.f32.mrf.mxu1 }
 0x13d   : > { %2051 = vst [vmem:[%s3233_s13 + $0x38] sm:$0xff] %v2035_v12  ;;  %1636 = vst [vmem:[%s3221_s5 + $0x84] sm:$0xf] %v2401_v58  ;;  %v1844_v54 = vadd.f32 %v1748_v34, %v1652_v25  ;;  %v1557_v20 = vmul.f32 %v3180_v62, %v983_v59  ;;  %v1941_v44 = vmul.f32 %v1906_v39, %v1096_v4  ;;  %v1918_v35 = vpop.permute.xlu1 %1917 }
 0x13e   : > { %2020 = vst [vmem:[%s3221_s5 + $0x8c] sm:$0xf] %v2433_v33  ;;  %v2386_v22 = vpack.c.bf16 %v1381_v56, %v1381_v56  ;;  %v2418_v10 = vpack.c.bf16 %v1749_v32, %v1749_v32  ;;  %v987_v37 = vpop.f32.mrf.mxu0  ;;  %v1100_v43 = vpop.f32.mrf.mxu1 }
 0x13f   : > { %v2036_v13 = vadd.f32 %v1940_v51, %v1844_v54  ;;  %v2402_v42 = vpack.c.bf16 %v1557_v20, %v1557_v20  ;;  %v1653_v26 = vadd.f32 %v1557_v20, %v1381_v56  ;;  %v2434_v8 = vpack.c.bf16 %v1941_v44, %v1941_v44  ;;  %v1922_v20 = vpop.permute.xlu0 %1921 }
 0x140   : > { %1461 = vst [vmem:[%s3221_s5 + $0x90] sm:$0xf] %v2386_v22  ;;  %1829 = vst [vmem:[%s3221_s5 + $0x98] sm:$0xf] %v2418_v10  ;;  %v1382_v57 = vmul.f32 %v3154_v48, %v987_v37  ;;  %v1750_v27 = vmul.f32 %v3206_v14, %v1100_v43  ;;  %v989_v62 = vpop.f32.mrf.mxu0  ;;  %v1102_v40 = vpop.f32.mrf.mxu1 }
 0x141   : > { %2052 = vst [vmem:[%s3233_s13 + $0x40] sm:$0xff] %v2036_v13  ;;  %1637 = vst [vmem:[%s3221_s5 + $0x94] sm:$0xf] %v2402_v42  ;;  %v1845_v21 = vadd.f32 %v1749_v32, %v1653_v26  ;;  %v1558_v6 = vmul.f32 %v3178_v61, %v989_v62  ;;  %v1942_v53 = vmul.f32 %v1910_v5, %v1102_v40  ;;  %v1926_v62 = vpop.permute.xlu1 %1925 }
 0x142   : > { %2021 = vst [vmem:[%s3221_s5 + $0x9c] sm:$0xf] %v2434_v8  ;;  %v2387_v55 = vpack.c.bf16 %v1382_v57, %v1382_v57  ;;  %v2419_v28 = vpack.c.bf16 %v1750_v27, %v1750_v27  ;;  %v991_v41 = vpop.f32.mrf.mxu0  ;;  %v1104_v48 = vpop.f32.mrf.mxu1 }
 0x143   : > { %v2037_v14 = vadd.f32 %v1941_v44, %v1845_v21  ;;  %v2403_v11 = vpack.c.bf16 %v1558_v6, %v1558_v6  ;;  %v1654_v29 = vadd.f32 %v1558_v6, %v1382_v57  ;;  %v2435_v3 = vpack.c.bf16 %v1942_v53, %v1942_v53 }
 0x144   : > { %1462 = vst [vmem:[%s3221_s5 + $0xa0] sm:$0xf] %v2387_v55  ;;  %1830 = vst [vmem:[%s3221_s5 + $0xa8] sm:$0xf] %v2419_v28  ;;  %v1383_v24 = vmul.f32 %v3148_v45, %v991_v41  ;;  %v1751_v31 = vmul.f32 %v3208_v15, %v1104_v48  ;;  %v993_v61 = vpop.f32.mrf.mxu0  ;;  %v1106_v34 = vpop.f32.mrf.mxu1 }
 0x145   : > { %2053 = vst [vmem:[%s3233_s13 + $0x48] sm:$0xff] %v2037_v14  ;;  %1638 = vst [vmem:[%s3221_s5 + $0xa4] sm:$0xf] %v2403_v11  ;;  %v1846_v60 = vadd.f32 %v1750_v27, %v1654_v29  ;;  %v1559_v38 = vmul.f32 %v3184_v0, %v993_v61  ;;  %v1943_v30 = vmul.f32 %v1914_v23, %v1106_v34 }
 0x146   : > { %2022 = vst [vmem:[%s3221_s5 + $0xac] sm:$0xf] %v2435_v3  ;;  %v2388_v9 = vpack.c.bf16 %v1383_v24, %v1383_v24  ;;  %v2420_v51 = vpack.c.bf16 %v1751_v31, %v1751_v31  ;;  %v997_v7 = vpop.f32.mrf.mxu0  ;;  %v1110_v45 = vpop.f32.mrf.mxu1 }
 0x147   : > { %v2038_v15 = vadd.f32 %v1942_v53, %v1846_v60  ;;  %v2404_v36 = vpack.c.bf16 %v1559_v38, %v1559_v38  ;;  %v1655_v46 = vadd.f32 %v1559_v38, %v1383_v24  ;;  %v2436_v39 = vpack.c.bf16 %v1943_v30, %v1943_v30 }
 0x148   : > { %1463 = vst [vmem:[%s3221_s5 + $0xb0] sm:$0xf] %v2388_v9  ;;  %1831 = vst [vmem:[%s3221_s5 + $0xb8] sm:$0xf] %v2420_v51  ;;  %v1384_v12 = vmul.f32 %v3158_v50, %v997_v7  ;;  %v1752_v58 = vmul.f32 %v3210_v16, %v1110_v45  ;;  %v999_v0 = vpop.f32.mrf.mxu0  ;;  %v1112_v25 = vpop.f32.mrf.mxu1  ;;  %v3416_v9 = vld [vmem:[#allocation6_spill] sm:$0xff] }
 0x149   : > { %2054 = vst [vmem:[%s3233_s13 + $0x50] sm:$0xff] %v2038_v15  ;;  %1639 = vst [vmem:[%s3221_s5 + $0xb4] sm:$0xf] %v2404_v36  ;;  %v1847_v33 = vadd.f32 %v1751_v31, %v1655_v46  ;;  %v1560_v56 = vmul.f32 %v3182_v63, %v999_v0  ;;  %v1944_v32 = vmul.f32 %v1918_v35, %v1112_v25 }
 0x14a   : > { %2023 = vst [vmem:[%s3221_s5 + $0xbc] sm:$0xf] %v2436_v39  ;;  %v2389_v59 = vpack.c.bf16 %v1384_v12, %v1384_v12  ;;  %v2421_v4 = vpack.c.bf16 %v1752_v58, %v1752_v58  ;;  %v1001_v54 = vpop.f32.mrf.mxu0  ;;  %v1114_v50 = vpop.f32.mrf.mxu1 }
 0x14b   : > { %v2039_v16 = vadd.f32 %v1943_v30, %v1847_v33  ;;  %v2405_v44 = vpack.c.bf16 %v1560_v56, %v1560_v56  ;;  %v1656_v22 = vadd.f32 %v1560_v56, %v1384_v12  ;;  %v2437_v10 = vpack.c.bf16 %v1944_v32, %v1944_v32 }
 0x14c   : > { %1464 = vst [vmem:[%s3221_s5 + $0xc0] sm:$0xf] %v2389_v59  ;;  %1832 = vst [vmem:[%s3221_s5 + $0xc8] sm:$0xf] %v2421_v4  ;;  %v1385_v37 = vmul.f32 %v3152_v47, %v1001_v54  ;;  %v1753_v43 = vmul.f32 %v3212_v17, %v1114_v50  ;;  %v1003_v63 = vpop.f32.mrf.mxu0  ;;  %v1116_v5 = vpop.f32.mrf.mxu1 }
 0x14d   : > { %2055 = vst [vmem:[%s3233_s13 + $0x58] sm:$0xff] %v2039_v16  ;;  %1640 = vst [vmem:[%s3221_s5 + $0xc4] sm:$0xf] %v2405_v44  ;;  %v1848_v13 = vadd.f32 %v1752_v58, %v1656_v22  ;;  %v1561_v42 = vmul.f32 %v3188_v2, %v1003_v63  ;;  %v1945_v26 = vmul.f32 %v1922_v20, %v1116_v5 }
 0x14e   : > { %2024 = vst [vmem:[%s3221_s5 + $0xcc] sm:$0xf] %v2437_v10  ;;  %v2390_v8 = vpack.c.bf16 %v1385_v37, %v1385_v37  ;;  %v2422_v57 = vpack.c.bf16 %v1753_v43, %v1753_v43  ;;  %v1007_v27 = vpop.f32.mrf.mxu0  ;;  %v1120_v47 = vpop.f32.mrf.mxu1 }
 0x14f   : > { %v2040_v17 = vadd.f32 %v1944_v32, %v1848_v13  ;;  %v2406_v40 = vpack.c.bf16 %v1561_v42, %v1561_v42  ;;  %v1657_v21 = vadd.f32 %v1561_v42, %v1385_v37  ;;  %v2438_v6 = vpack.c.bf16 %v1945_v26, %v1945_v26 }
 0x150   : > { %1465 = vst [vmem:[%s3221_s5 + $0xd0] sm:$0xf] %v2390_v8  ;;  %1833 = vst [vmem:[%s3221_s5 + $0xd8] sm:$0xf] %v2422_v57  ;;  %v1386_v53 = vmul.f32 %v3162_v52, %v1007_v27  ;;  %v1754_v55 = vmul.f32 %v3214_v18, %v1120_v47  ;;  %v1009_v2 = vpop.f32.mrf.mxu0  ;;  %v1122_v28 = vpop.f32.mrf.mxu1 }
 0x151   : > { %2056 = vst [vmem:[%s3233_s13 + $0x60] sm:$0xff] %v2040_v17  ;;  %1641 = vst [vmem:[%s3221_s5 + $0xd4] sm:$0xf] %v2406_v40  ;;  %v1849_v41 = vadd.f32 %v1753_v43, %v1657_v21  ;;  %v1562_v48 = vmul.f32 %v3186_v1, %v1009_v2  ;;  %v1946_v23 = vmul.f32 %v1926_v62, %v1122_v28  ;;  %v1930_v18 = vpop.permute.xlu0 %1929 }
 0x152   : > { %2025 = vst [vmem:[%s3221_s5 + $0xdc] sm:$0xf] %v2438_v6  ;;  %v2391_v14 = vpack.c.bf16 %v1386_v53, %v1386_v53  ;;  %v2423_v11 = vpack.c.bf16 %v1754_v55, %v1754_v55  ;;  %v1011_v29 = vpop.f32.mrf.mxu0  ;;  %v1124_v52 = vpop.f32.mrf.mxu1 }
 0x153   : > { %v2041_v3 = vadd.f32 %v1945_v26, %v1849_v41  ;;  %v2407_v24 = vpack.c.bf16 %v1562_v48, %v1562_v48  ;;  %v1658_v31 = vadd.f32 %v1562_v48, %v1386_v53  ;;  %v2439_v61 = vpack.c.bf16 %v1946_v23, %v1946_v23 }
 0x154   : > { %1466 = vst [vmem:[%s3221_s5 + $0xe0] sm:$0xf] %v2391_v14  ;;  %1834 = vst [vmem:[%s3221_s5 + $0xe8] sm:$0xf] %v2423_v11  ;;  %v1387_v34 = vmul.f32 %v3156_v49, %v1011_v29  ;;  %v1755_v1 = vmul.f32 %v3217_v19, %v1124_v52  ;;  %v1013_v60 = vpop.f32.mrf.mxu0  ;;  %v1126_v38 = vpop.f32.mrf.mxu1 }
 0x155   : > { %2057 = vst [vmem:[%s3233_s13 + $0x68] sm:$0xff] %v2041_v3  ;;  %1642 = vst [vmem:[%s3221_s5 + $0xe4] sm:$0xf] %v2407_v24  ;;  %v1850_v30 = vadd.f32 %v1754_v55, %v1658_v31  ;;  %v1563_v51 = vmul.f32 %v3416_v9, %v1013_v60  ;;  %v1947_v7 = vmul.f32 %v1930_v18, %v1126_v38 }
 0x156   : > { %2026 = vst [vmem:[%s3221_s5 + $0xec] sm:$0xf] %v2439_v61  ;;  %v2392_v45 = vpack.c.bf16 %v1387_v34, %v1387_v34  ;;  %v2424_v35 = vpack.c.bf16 %v1755_v1, %v1755_v1 }
 0x157   : > { %v2042_v49 = vadd.f32 %v1946_v23, %v1850_v30  ;;  %v2408_v19 = vpack.c.bf16 %v1563_v51, %v1563_v51  ;;  %v1659_v15 = vadd.f32 %v1563_v51, %v1387_v34  ;;  %v2440_v36 = vpack.c.bf16 %v1947_v7, %v1947_v7 }
 0x158   : > { %1467 = vst [vmem:[%s3221_s5 + $0xf0] sm:$0xf] %v2392_v45  ;;  %1835 = vst [vmem:[%s3221_s5 + $0xf8] sm:$0xf] %v2424_v35 }
 0x159   : > { %2058 = vst [vmem:[%s3233_s13 + $0x70] sm:$0xff] %v2042_v49  ;;  %1643 = vst [vmem:[%s3221_s5 + $0xf4] sm:$0xf] %v2408_v19  ;;  %v1851_v46 = vadd.f32 %v1755_v1, %v1659_v15 }
 0x15a   : > { %2027 = vst [vmem:[%s3221_s5 + $0xfc] sm:$0xf] %v2440_v36 }
 0x15b   : > { %2645 = shalt.err (!%p2642_p5)
}
 0x15c   : > { %s2646_s8 = scalar_lea.hbm %s3351_s22, 4096  ;;  %s2650_s5 = scalar_lea.hbm %s3411_s3, 8192 }
 0x15d   : > { %p2647_p6 = scmp.ne.s32.totalorder %s3351_s22, %s2646_s8  ;;  %p2651_p10 = scmp.lt.s32.totalorder %s3351_s22, %s3411_s3 }
 0x15e   : > { %p2652_p11 = scmp.lt.s32.totalorder %s2650_s5, %s2646_s8 }
 0x15f   : > { %p2648_p7 = pnand %p2647_p6, %p2782_p4 }
 0x160   : > { %p2653_p12 = por %p2652_p11, %p2651_p10 }
 0x161   : > { %p2649_p9 = pneg %p2648_p7 }
 0x163   : > { %p2654_p13 = pnand %p2653_p12, %p2649_p9 }
 0x165   : > { %2657 = shalt.err (!%p2654_p13)
}
 0x166   : > { %s2715_s24 = smov 256   ;;  %s2716_s18 = smov 16   ;;  %v2043_v39 = vadd.f32 %v1947_v7, %v1851_v46 }
 0x167   : > { %2443 = dma.vmem_to_hbm [thread:$0]  (%p2782_p4), %s3353_s14, 4096, %s3351_s22, %s3362_s26, %s2715_s24, %s2715_s24, %s2716_s18  }
 0x168   : > { %2059 = vst [vmem:[%s3233_s13 + $0x78] sm:$0xff] %v2043_v39 }
 0x169 PF: > { %p2449_p0 = scmp.ge.s32.totalorder %s2708_s20, 2  ;;  %s2099_s21 = sand.u32 1, %s2688_s15  }
 0x16a   : > { %s2100_s29 = scalar_lea.sflag [#allocation4], %s2099_s21 }
 0x16b   : > { %p2446_p1 = pnand %p2449_p0, %p2789_p8 }
 0x16d   : > { %p2447_p2 = pneg %p2446_p1 }
 0x16f   : > { %2683 = dma.done.wait (%p2447_p2), %s2100_s29, 4096  }
 0x170   : > { %2685 = vsyncadd (%p2447_p2), %s2100_s29, 4294963200  ;;  %s18_s20 = sadd.s32 1, %s2708_s20   ;;  %s3417_s15 = smov %s2692_s16 }
 0x171   : > { %p15_p3 = scmp.ge.s32.totalorder %s18_s20, 4   ;;  %s3418_s16 = smov %s2696_s17 }
 0x172   : > { %s3419_s17 = smov %s2795_s28  ;;  %s3420_s18 = smov %s2704_s19 }
 0x173   : > { %s3421_s19 = smov %s3423_s23  ;;  %17 = sbr.rel (!%p15_p3) target bundleno = 4 (0x4), region = 93 }
 0x178   :  { %2113 = vsyncpa [#allocation4], 1 }
 0x179   :  { %2115 = vsyncpa [#allocation4 + $0x1], 1 }

</bundles_post_ra>
